<compile_context>
chip_gen: v7x
topology: tpu7x:2x2x1
jax: 0.10.0
libtpu: 0.0.40
codegen_flags: <defaults>
</compile_context>

<pallas_src>
import functools

import jax
import jax.numpy as jnp
from jax.experimental import pallas as pl
from jax.experimental.pallas import tpu as pltpu


_VMEM_LIMIT = 32 * 1024 * 1024  # explicit scoped-VMEM limit (safe on v5e/v6e/v7x)


def _row_tile(n):
    # Production: 256-512 rows per tile.  Demo shapes are tiny, so keep 8.
    return 8 if n % 8 == 0 else n


# ----------------------------------------------------------------------------
# Kernel 1: fused bidirectional input projection (hoisted out of the
# recurrence).  Computes gate pre-activations for BOTH directions:
#     gates_f = sum_i x_i @ Wf_i + b_f      gates_b = sum_i x_i @ Wb_i + b_b
# x pieces are bf16, weights bf16, accumulation f32.  Row-tiled grid; weights
# resident via constant index maps.
# ----------------------------------------------------------------------------
def _gates_proj_kernel(*refs, n_pieces):
    xs = refs[:n_pieces]
    wf = refs[n_pieces:2 * n_pieces]
    wb = refs[2 * n_pieces:3 * n_pieces]
    b_f = refs[3 * n_pieces]
    b_b = refs[3 * n_pieces + 1]
    out_f = refs[3 * n_pieces + 2]
    out_b = refs[3 * n_pieces + 3]

    gf = b_f[...]                                   # (1, 4H) f32, broadcasts
    gb = b_b[...]
    for i in range(n_pieces):
        x = xs[i][...]                              # (rt, Din_i) bf16
        gf = gf + jnp.dot(x, wf[i][...], preferred_element_type=jnp.float32)
        gb = gb + jnp.dot(x, wb[i][...], preferred_element_type=jnp.float32)
    out_f[...] = gf
    out_b[...] = gb


def gates_projection(x_pieces, wf_pieces, wb_pieces, b_f, b_b):
    n = len(x_pieces)
    N = x_pieces[0].shape[0]
    G4 = wf_pieces[0].shape[1]
    rt = _row_tile(N)

    in_specs = [pl.BlockSpec((rt, xp.shape[1]), lambda r: (r, 0))
                for xp in x_pieces]
    in_specs += [pl.BlockSpec(w.shape, lambda r: (0, 0)) for w in wf_pieces]
    in_specs += [pl.BlockSpec(w.shape, lambda r: (0, 0)) for w in wb_pieces]
    in_specs += [pl.BlockSpec(b_f.shape, lambda r: (0, 0)),
                 pl.BlockSpec(b_b.shape, lambda r: (0, 0))]

    return pl.pallas_call(
        functools.partial(_gates_proj_kernel, n_pieces=n),
        out_shape=(jax.ShapeDtypeStruct((N, G4), jnp.float32),
                   jax.ShapeDtypeStruct((N, G4), jnp.float32)),
        grid=(N // rt,),
        in_specs=in_specs,
        out_specs=(pl.BlockSpec((rt, G4), lambda r: (r, 0)),
                   pl.BlockSpec((rt, G4), lambda r: (r, 0))),
        compiler_params=pltpu.CompilerParams(
            dimension_semantics=("parallel",),
            vmem_limit_bytes=_VMEM_LIMIT),
    )(*x_pieces, *wf_pieces, *wb_pieces, b_f, b_b)


# ----------------------------------------------------------------------------
# Kernel 2: fused bidirectional LSTM recurrence over precomputed gates.
# grid = (T/chunk,), sequential ("arbitrary").  Each grid step processes a
# chunk of timesteps with an unrolled inner loop: forward direction walks the
# chunk ascending, backward direction walks its (mirrored) chunk descending.
# h/c state (f32) for both directions lives in VMEM scratch across steps.
# Packed-sequence masking: h/c hold and outputs are zeroed at padded steps.
# ----------------------------------------------------------------------------
def _bilstm_chunk_kernel(mf_ref, mb_ref, gf_ref, gb_ref, whhf_ref, whhb_ref,
                         of_ref, ob_ref, hf_sc, cf_sc, hb_sc, cb_sc,
                         *, hidden, chunk):
    s = pl.program_id(0)

    @pl.when(s == 0)
    def _():
        hf_sc[...] = jnp.zeros_like(hf_sc)
        cf_sc[...] = jnp.zeros_like(cf_sc)
        hb_sc[...] = jnp.zeros_like(hb_sc)
        cb_sc[...] = jnp.zeros_like(cb_sc)

    whh_f = whhf_ref[...]                         # (H, 4H) bf16, resident
    whh_b = whhb_ref[...]

    def cell(g_pre, h, c, whh, m):
        # g_pre: (B, 4H) f32 precomputed x@W_ih + b;  only h@W_hh done here.
        gates = g_pre + jnp.dot(h.astype(jnp.bfloat16), whh,
                                preferred_element_type=jnp.float32)
        i_g = jax.nn.sigmoid(gates[:, 0 * hidden:1 * hidden])
        f_g = jax.nn.sigmoid(gates[:, 1 * hidden:2 * hidden])
        g_g = jnp.tanh(gates[:, 2 * hidden:3 * hidden])
        o_g = jax.nn.sigmoid(gates[:, 3 * hidden:4 * hidden])
        c_new = f_g * c + i_g * g_g
        h_new = o_g * jnp.tanh(c_new)
        h_keep = m * h_new + (1.0 - m) * h        # hold state at padded steps
        c_keep = m * c_new + (1.0 - m) * c
        return h_keep, c_keep, m * h_new          # zero output at padded steps

    def body(i, carry):
        hf, cf, hb, cb = carry
        # forward: local index i (ascending global time)
        hf, cf, out_f = cell(gf_ref[i].astype(jnp.float32), hf, cf,
                             whh_f, mf_ref[i])
        of_ref[i] = out_f.astype(of_ref.dtype)
        # backward: local index chunk-1-i (descending global time)
        j = chunk - 1 - i
        hb, cb, out_b = cell(gb_ref[j].astype(jnp.float32), hb, cb,
                             whh_b, mb_ref[j])
        ob_ref[j] = out_b.astype(ob_ref.dtype)
        return hf, cf, hb, cb

    init = (hf_sc[...], cf_sc[...], hb_sc[...], cb_sc[...])
    hf, cf, hb, cb = jax.lax.fori_loop(0, chunk, body, init, unroll=True)
    hf_sc[...] = hf
    cf_sc[...] = cf
    hb_sc[...] = hb
    cb_sc[...] = cb


def bilstm_recurrence(gates_f, gates_b, mask_tmaj, whh_f, whh_b, *, chunk=8):
    """gates_*: (T, B, 4H) f32 time-major; mask_tmaj: (T, B, 1) f32.
    Returns (out_fwd, out_bwd), each (T, B, H) bf16 in natural time order."""
    T, B, G4 = gates_f.shape
    H = whh_f.shape[0]
    if T % chunk != 0:
        chunk = 1
    nc = T // chunk

    fwd_map = lambda s: (s, 0, 0)
    bwd_map = lambda s: (nc - 1 - s, 0, 0)

    return pl.pallas_call(
        functools.partial(_bilstm_chunk_kernel, hidden=H, chunk=chunk),
        out_shape=(jax.ShapeDtypeStruct((T, B, H), jnp.bfloat16),
                   jax.ShapeDtypeStruct((T, B, H), jnp.bfloat16)),
        grid=(nc,),
        in_specs=[
            pl.BlockSpec((chunk, B, 1), fwd_map),       # valid mask (fwd order)
            pl.BlockSpec((chunk, B, 1), bwd_map),       # valid mask (bwd order)
            pl.BlockSpec((chunk, B, G4), fwd_map),      # gates fwd
            pl.BlockSpec((chunk, B, G4), bwd_map),      # gates bwd
            pl.BlockSpec((H, G4), lambda s: (0, 0)),    # W_hh fwd (bf16)
            pl.BlockSpec((H, G4), lambda s: (0, 0)),    # W_hh bwd (bf16)
        ],
        out_specs=(pl.BlockSpec((chunk, B, H), fwd_map),
                   pl.BlockSpec((chunk, B, H), bwd_map)),
        scratch_shapes=[pltpu.VMEM((B, H), jnp.float32)] * 4,  # h_f c_f h_b c_b
        compiler_params=pltpu.CompilerParams(
            dimension_semantics=("arbitrary",),
            vmem_limit_bytes=_VMEM_LIMIT),
    )(mask_tmaj, mask_tmaj, gates_f, gates_b, whh_f, whh_b)


# ----------------------------------------------------------------------------
# Kernel 3: visual classifier head (row-tiled).  Consumes the fwd/bwd halves
# with pre-split weights (no concat): relu(hf@W1f + hb@W1b + b1) @ W2 + b2.
# ----------------------------------------------------------------------------
def _visual_cls_kernel(hf_ref, hb_ref, w1f, w1b, b1, w2, b2, o_ref):
    h = (jnp.dot(hf_ref[...], w1f[...], preferred_element_type=jnp.float32)
         + jnp.dot(hb_ref[...], w1b[...], preferred_element_type=jnp.float32)
         + b1[...])
    h = jnp.maximum(h, 0.0)                              # ReLU (Dropout = id)
    o = jnp.dot(h.astype(jnp.bfloat16), w2[...],
                preferred_element_type=jnp.float32) + b2[...]
    o_ref[...] = jax.nn.sigmoid(o)


def visual_classifier(hf, hb, p):
    N, H = hf.shape
    rt = _row_tile(N)
    const = lambda r: (0, 0)
    return pl.pallas_call(
        _visual_cls_kernel,
        out_shape=jax.ShapeDtypeStruct((N, 1), jnp.float32),
        grid=(N // rt,),
        in_specs=[pl.BlockSpec((rt, H), lambda r: (r, 0)),
                  pl.BlockSpec((rt, H), lambda r: (r, 0)),
                  pl.BlockSpec(p["w1f"].shape, const),
                  pl.BlockSpec(p["w1b"].shape, const),
                  pl.BlockSpec(p["b1"].shape, const),
                  pl.BlockSpec(p["w2"].shape, const),
                  pl.BlockSpec(p["b2"].shape, const)],
        out_specs=pl.BlockSpec((rt, 1), lambda r: (r, 0)),
        compiler_params=pltpu.CompilerParams(
            dimension_semantics=("parallel",),
            vmem_limit_bytes=_VMEM_LIMIT),
    )(hf, hb, p["w1f"], p["w1b"], p["b1"], p["w2"], p["b2"])


# ----------------------------------------------------------------------------
# Kernel 4: audio score predictor MLP (row-tiled, resident bf16 weights).
# ----------------------------------------------------------------------------
def _audio_mlp_kernel(x_ref, w1, b1, w2, b2, w3, b3, w4, b4, w5, b5, o_ref):
    def lin(h, w, b):
        return jnp.dot(h, w[...], preferred_element_type=jnp.float32) + b[...]

    h = x_ref[...]                                        # bf16
    h = jnp.maximum(lin(h, w1, b1), 0.0).astype(jnp.bfloat16)
    h = jnp.maximum(lin(h, w2, b2), 0.0).astype(jnp.bfloat16)
    h = jnp.maximum(lin(h, w3, b3), 0.0).astype(jnp.bfloat16)
    h = jnp.maximum(lin(h, w4, b4), 0.0).astype(jnp.bfloat16)
    o_ref[...] = jax.nn.sigmoid(lin(h, w5, b5))


def audio_predictor(x, p):
    N, Da = x.shape
    rt = _row_tile(N)
    const = lambda r: (0, 0)
    in_specs = [pl.BlockSpec((rt, Da), lambda r: (r, 0))]
    operands = [x]
    for i in range(1, 6):
        in_specs += [pl.BlockSpec(p[f"w{i}"].shape, const),
                     pl.BlockSpec(p[f"b{i}"].shape, const)]
        operands += [p[f"w{i}"], p[f"b{i}"]]
    return pl.pallas_call(
        _audio_mlp_kernel,
        out_shape=jax.ShapeDtypeStruct((N, 1), jnp.float32),
        grid=(N // rt,),
        in_specs=in_specs,
        out_specs=pl.BlockSpec((rt, 1), lambda r: (r, 0)),
        compiler_params=pltpu.CompilerParams(
            dimension_semantics=("parallel",),
            vmem_limit_bytes=_VMEM_LIMIT),
    )(*operands)


# ----------------------------------------------------------------------------
# Full forward pass (glue in plain JAX: one bf16 transpose of the input, cheap
# reshapes, and the final (v+a)/2 which XLA fuses).
# ----------------------------------------------------------------------------
def audio_visual_predictor(params, visual_features, audio_features, lengths):
    B, T, Dv = visual_features.shape
    H = params["lstm"][0]["fwd"]["whh"].shape[0]

    # Valid-position mask, time-major (pack_padded_sequence semantics).
    mask_tmaj = (jnp.arange(T)[:, None] < lengths[None, :].astype(jnp.int32)
                 ).astype(jnp.float32)[:, :, None]                 # (T, B, 1)

    # One transpose of the (bf16) input to time-major; everything downstream
    # stays time-major so no further activation transposes are needed.
    # TODO(synk): at full scale this transpose could be folded into the layer-0
    # projection's index_map (batch-first (B, Tc, Dv) blocks) to save the pass.
    x2d = jnp.transpose(visual_features, (1, 0, 2)
                        ).astype(jnp.bfloat16).reshape(T * B, Dv)

    l0, l1 = params["lstm"]

    # ---- layer 0: hoisted input projection (one big GEMM, both directions) --
    gf0, gb0 = gates_projection([x2d],
                                [l0["fwd"]["wih"][0]], [l0["bwd"]["wih"][0]],
                                l0["fwd"]["b"], l0["bwd"]["b"])
    hf0, hb0 = bilstm_recurrence(gf0.reshape(T, B, 4 * H),
                                 gb0.reshape(T, B, 4 * H),
                                 mask_tmaj, l0["fwd"]["whh"], l0["bwd"]["whh"])
    # inter-layer Dropout(0.5): identity in eval mode.

    # ---- layer 1 (layer-1 W_ih consumed pre-split -> no concat) -------------
    gf1, gb1 = gates_projection([hf0.reshape(T * B, H), hb0.reshape(T * B, H)],
                                list(l1["fwd"]["wih"]), list(l1["bwd"]["wih"]),
                                l1["fwd"]["b"], l1["bwd"]["b"])
    hf1, hb1 = bilstm_recurrence(gf1.reshape(T, B, 4 * H),
                                 gb1.reshape(T, B, 4 * H),
                                 mask_tmaj, l1["fwd"]["whh"], l1["bwd"]["whh"])

    # ---- visual classifier (rows are in (t, b) order) ------------------------
    vs_rows = visual_classifier(hf1.reshape(T * B, H), hb1.reshape(T * B, H),
                                params["vis_cls"])                 # (T*B, 1)
    visual_scores = jnp.transpose(vs_rows.reshape(T, B, 1), (1, 0, 2))  # (B,T,1)

    # ---- audio predictor (batch-first rows) ----------------------------------
    a2d = audio_features.astype(jnp.bfloat16).reshape(B * T, -1)
    audio_scores = audio_predictor(a2d, params["audio"]).reshape(B, T, 1)

    # combine: trivial elementwise op, left to XLA fusion (no kernel needed).
    combined = (visual_scores + audio_scores) * 0.5
    return combined, visual_scores, audio_scores


# ----------------------------------------------------------------------------
# Deterministic parameter init (shapes follow the nn.Module, scaled down).
# Weights stored transposed (in_dim, out_dim), bf16; biases f32.
# ----------------------------------------------------------------------------
def _u(key, shape, scale):
    return jax.random.uniform(key, shape, jnp.float32, -scale, scale)


def init_params(key, dv, da, hidden, cls_hidden, audio_dims):
    keys = iter(jax.random.split(key, 64))
    k_rec = hidden ** -0.5

    def lstm_dir(in_pieces):
        w_full = _u(next(keys), (sum(in_pieces), 4 * hidden), k_rec)
        pieces, off = [], 0
        for p in in_pieces:                      # pre-split per input piece
            pieces.append(w_full[off:off + p].astype(jnp.bfloat16))
            off += p
        return {
            "wih": tuple(pieces),                                    # bf16
            "whh": _u(next(keys), (hidden, 4 * hidden), k_rec
                      ).astype(jnp.bfloat16),                        # bf16
            "b": _u(next(keys), (1, 4 * hidden), k_rec),             # b_ih+b_hh
        }

    lstm = []
    for layer in range(2):
        pieces = (dv,) if layer == 0 else (hidden, hidden)
        lstm.append({"fwd": lstm_dir(pieces), "bwd": lstm_dir(pieces)})

    s1 = (2 * hidden) ** -0.5
    s2 = cls_hidden ** -0.5
    w1 = _u(next(keys), (2 * hidden, cls_hidden), s1)
    vis_cls = {
        "w1f": w1[:hidden].astype(jnp.bfloat16),
        "w1b": w1[hidden:].astype(jnp.bfloat16),
        "b1": _u(next(keys), (1, cls_hidden), s1),
        "w2": _u(next(keys), (cls_hidden, 1), s2).astype(jnp.bfloat16),
        "b2": _u(next(keys), (1, 1), s2),
    }

    audio = {}
    for i in range(5):
        s = audio_dims[i] ** -0.5
        audio[f"w{i+1}"] = _u(next(keys), (audio_dims[i], audio_dims[i + 1]), s
                              ).astype(jnp.bfloat16)
        audio[f"b{i+1}"] = _u(next(keys), (1, audio_dims[i + 1]), s)

    return {"lstm": lstm, "vis_cls": vis_cls, "audio": audio}


# ----------------------------------------------------------------------------
# Pure-JAX reference (same bf16-operand / f32-accumulate numerics) for a
# correctness sanity check of the Pallas pipeline.
# ----------------------------------------------------------------------------
def _bdot(a, b):
    return jnp.dot(a.astype(jnp.bfloat16), b.astype(jnp.bfloat16),
                   preferred_element_type=jnp.float32)


def _ref_lstm_dir(x_tmaj, lengths, wih_full, whh, b, reverse):
    T, B, _ = x_tmaj.shape
    H = whh.shape[0]
    gates_x = (_bdot(x_tmaj.reshape(T * B, -1), wih_full).reshape(T, B, 4 * H)
               + b[0])
    order = jnp.arange(T - 1, -1, -1) if reverse else jnp.arange(T)

    def step(carry, t):
        h, c = carry
        g = gates_x[t] + _bdot(h, whh)
        i = jax.nn.sigmoid(g[:, :H]); f = jax.nn.sigmoid(g[:, H:2 * H])
        gg = jnp.tanh(g[:, 2 * H:3 * H]); o = jax.nn.sigmoid(g[:, 3 * H:])
        c_new = f * c + i * gg
        h_new = o * jnp.tanh(c_new)
        valid = (lengths > t)[:, None]
        return ((jnp.where(valid, h_new, h), jnp.where(valid, c_new, c)),
                jnp.where(valid, h_new, 0.0))

    _, outs = jax.lax.scan(step, (jnp.zeros((B, H), jnp.float32),
                                  jnp.zeros((B, H), jnp.float32)), order)
    return outs[::-1] if reverse else outs


def _ref_forward(params, vf, af, lengths):
    B, T, _ = vf.shape
    x = jnp.transpose(vf, (1, 0, 2))
    l0, l1 = params["lstm"]

    def full(dp):
        return jnp.concatenate(dp["wih"], axis=0), dp["whh"], dp["b"]

    hf0 = _ref_lstm_dir(x, lengths, *full(l0["fwd"]), False)
    hb0 = _ref_lstm_dir(x, lengths, *full(l0["bwd"]), True)
    h0 = jnp.concatenate([hf0, hb0], axis=-1)
    hf1 = _ref_lstm_dir(h0, lengths, *full(l1["fwd"]), False)
    hb1 = _ref_lstm_dir(h0, lengths, *full(l1["bwd"]), True)
    vo = jnp.transpose(jnp.concatenate([hf1, hb1], axis=-1), (1, 0, 2))
    vo2d = vo.reshape(B * T, -1)

    c = params["vis_cls"]
    w1 = jnp.concatenate([c["w1f"], c["w1b"]], axis=0)
    h = jnp.maximum(_bdot(vo2d, w1) + c["b1"], 0.0)
    vs = jax.nn.sigmoid(_bdot(h, c["w2"]) + c["b2"]).reshape(B, T, 1)

    a = params["audio"]
    h = af.reshape(B * T, -1)
    for i in range(1, 5):
        h = jnp.maximum(_bdot(h, a[f"w{i}"]) + a[f"b{i}"], 0.0)
    ascore = jax.nn.sigmoid(_bdot(h, a["w5"]) + a["b5"]).reshape(B, T, 1)
    return (vs + ascore) * 0.5, vs, ascore


if __name__ == "__main__":
    B, T = 2, 8
    DV, DA, H = 32, 24, 16          # scaled-down: 4096, 384, 512
    CLS_HID = 16                    # scaled-down: 512
    AUDIO_DIMS = (DA, 64, 32, 64, 32, 1)   # scaled-down: 384,2048,1024,2048,1024,1

    key = jax.random.PRNGKey(0)
    kp, kv, ka = jax.random.split(key, 3)
    params = init_params(kp, DV, DA, H, CLS_HID, AUDIO_DIMS)

    visual_features = jax.random.normal(kv, (B, T, DV), jnp.float32)
    audio_features = jax.random.normal(ka, (B, T, DA), jnp.float32)
    lengths = jnp.array([T, 5], jnp.int32)   # max(lengths) == T

    fwd = jax.jit(audio_visual_predictor)
    combined, visual_scores, audio_scores = fwd(
        params, visual_features, audio_features, lengths)
    jax.block_until_ready((combined, visual_scores, audio_scores))

    ref_c, ref_v, ref_a = _ref_forward(params, visual_features,
                                       audio_features, lengths)
    assert combined.shape == (B, T, 1)
    assert jnp.allclose(visual_scores, ref_v, atol=1e-2, rtol=1e-2)
    assert jnp.allclose(audio_scores, ref_a, atol=1e-2, rtol=1e-2)
    assert jnp.allclose(combined, ref_c, atol=1e-2, rtol=1e-2)

    print("KERNEL_OK")
</pallas_src>

<mosaic_0001>
module attributes {stable_mosaic.version = 11 : i64} {
  func.func @_audio_mlp_kernel(%arg0: i32, %arg1: memref<8x24xbf16, #tpu.memory_space<vmem>>, %arg2: memref<24x64xbf16, #tpu.memory_space<vmem>>, %arg3: memref<1x64xf32, #tpu.memory_space<vmem>>, %arg4: memref<64x32xbf16, #tpu.memory_space<vmem>>, %arg5: memref<1x32xf32, #tpu.memory_space<vmem>>, %arg6: memref<32x64xbf16, #tpu.memory_space<vmem>>, %arg7: memref<1x64xf32, #tpu.memory_space<vmem>>, %arg8: memref<64x32xbf16, #tpu.memory_space<vmem>>, %arg9: memref<1x32xf32, #tpu.memory_space<vmem>>, %arg10: memref<32x1xbf16, #tpu.memory_space<vmem>>, %arg11: memref<1x1xf32, #tpu.memory_space<vmem>>, %arg12: memref<8x1xf32, #tpu.memory_space<vmem>>) attributes {dimension_semantics = [#tpu.dimension_semantics<parallel>], iteration_bounds = array<i64: 2>, scalar_prefetch = 0 : i64, scratch_operands = 0 : i64, tpu.core_type = #tpu.core_type<tc>, window_params = [{transform_indices = @transform_0, window_bounds = array<i64: 8, 24>}, {pipeline_mode = #tpu.pipeline_mode<synchronous>, transform_indices = @transform_1, window_bounds = array<i64: 24, 64>}, {pipeline_mode = #tpu.pipeline_mode<synchronous>, transform_indices = @transform_2, window_bounds = array<i64: 1, 64>}, {pipeline_mode = #tpu.pipeline_mode<synchronous>, transform_indices = @transform_3, window_bounds = array<i64: 64, 32>}, {pipeline_mode = #tpu.pipeline_mode<synchronous>, transform_indices = @transform_4, window_bounds = array<i64: 1, 32>}, {pipeline_mode = #tpu.pipeline_mode<synchronous>, transform_indices = @transform_5, window_bounds = array<i64: 32, 64>}, {pipeline_mode = #tpu.pipeline_mode<synchronous>, transform_indices = @transform_6, window_bounds = array<i64: 1, 64>}, {pipeline_mode = #tpu.pipeline_mode<synchronous>, transform_indices = @transform_7, window_bounds = array<i64: 64, 32>}, {pipeline_mode = #tpu.pipeline_mode<synchronous>, transform_indices = @transform_8, window_bounds = array<i64: 1, 32>}, {pipeline_mode = #tpu.pipeline_mode<synchronous>, transform_indices = @transform_9, window_bounds = array<i64: 32, 1>}, {pipeline_mode = #tpu.pipeline_mode<synchronous>, transform_indices = @transform_10, window_bounds = array<i64: 1, 1>}, {transform_indices = @transform_11, window_bounds = array<i64: 8, 1>}]} {
    %c0 = arith.constant 0 : index
    %c0_0 = arith.constant 0 : index
    %0 = vector.load %arg1[%c0, %c0_0] : memref<8x24xbf16, #tpu.memory_space<vmem>>, vector<8x24xbf16>
    %c0_1 = arith.constant 0 : index
    %c0_2 = arith.constant 0 : index
    %1 = vector.load %arg2[%c0_1, %c0_2] : memref<24x64xbf16, #tpu.memory_space<vmem>>, vector<24x64xbf16>
    %cst = arith.constant dense<0.000000e+00> : vector<8x64xf32>
    %2 = tpu.matmul %0, %1, %cst {dimension_numbers = #tpu.dot_dimension_numbers<[1], [0], [0], [1], [0, 0, 1, 1], [], []>} : vector<8x24xbf16>, vector<24x64xbf16>, vector<8x64xf32> -> vector<8x64xf32>
    %c0_3 = arith.constant 0 : index
    %c0_4 = arith.constant 0 : index
    %3 = vector.load %arg3[%c0_3, %c0_4] : memref<1x64xf32, #tpu.memory_space<vmem>>, vector<1x64xf32>
    %4 = vector.broadcast %3 : vector<1x64xf32> to vector<8x64xf32>
    %5 = arith.addf %2, %4 : vector<8x64xf32>
    %cst_5 = arith.constant 0.000000e+00 : f32
    %6 = vector.broadcast %cst_5 : f32 to vector<8x64xf32>
    %7 = arith.maximumf %5, %6 : vector<8x64xf32>
    %8 = arith.truncf %7 : vector<8x64xf32> to vector<8x64xbf16>
    %c0_6 = arith.constant 0 : index
    %c0_7 = arith.constant 0 : index
    %9 = vector.load %arg4[%c0_6, %c0_7] : memref<64x32xbf16, #tpu.memory_space<vmem>>, vector<64x32xbf16>
    %cst_8 = arith.constant dense<0.000000e+00> : vector<8x32xf32>
    %10 = tpu.matmul %8, %9, %cst_8 {dimension_numbers = #tpu.dot_dimension_numbers<[1], [0], [0], [1], [0, 0, 1, 1], [], []>} : vector<8x64xbf16>, vector<64x32xbf16>, vector<8x32xf32> -> vector<8x32xf32>
    %c0_9 = arith.constant 0 : index
    %c0_10 = arith.constant 0 : index
    %11 = vector.load %arg5[%c0_9, %c0_10] : memref<1x32xf32, #tpu.memory_space<vmem>>, vector<1x32xf32>
    %12 = vector.broadcast %11 : vector<1x32xf32> to vector<8x32xf32>
    %13 = arith.addf %10, %12 : vector<8x32xf32>
    %cst_11 = arith.constant 0.000000e+00 : f32
    %14 = vector.broadcast %cst_11 : f32 to vector<8x32xf32>
    %15 = arith.maximumf %13, %14 : vector<8x32xf32>
    %16 = arith.truncf %15 : vector<8x32xf32> to vector<8x32xbf16>
    %c0_12 = arith.constant 0 : index
    %c0_13 = arith.constant 0 : index
    %17 = vector.load %arg6[%c0_12, %c0_13] : memref<32x64xbf16, #tpu.memory_space<vmem>>, vector<32x64xbf16>
    %cst_14 = arith.constant dense<0.000000e+00> : vector<8x64xf32>
    %18 = tpu.matmul %16, %17, %cst_14 {dimension_numbers = #tpu.dot_dimension_numbers<[1], [0], [0], [1], [0, 0, 1, 1], [], []>} : vector<8x32xbf16>, vector<32x64xbf16>, vector<8x64xf32> -> vector<8x64xf32>
    %c0_15 = arith.constant 0 : index
    %c0_16 = arith.constant 0 : index
    %19 = vector.load %arg7[%c0_15, %c0_16] : memref<1x64xf32, #tpu.memory_space<vmem>>, vector<1x64xf32>
    %20 = vector.broadcast %19 : vector<1x64xf32> to vector<8x64xf32>
    %21 = arith.addf %18, %20 : vector<8x64xf32>
    %cst_17 = arith.constant 0.000000e+00 : f32
    %22 = vector.broadcast %cst_17 : f32 to vector<8x64xf32>
    %23 = arith.maximumf %21, %22 : vector<8x64xf32>
    %24 = arith.truncf %23 : vector<8x64xf32> to vector<8x64xbf16>
    %c0_18 = arith.constant 0 : index
    %c0_19 = arith.constant 0 : index
    %25 = vector.load %arg8[%c0_18, %c0_19] : memref<64x32xbf16, #tpu.memory_space<vmem>>, vector<64x32xbf16>
    %cst_20 = arith.constant dense<0.000000e+00> : vector<8x32xf32>
    %26 = tpu.matmul %24, %25, %cst_20 {dimension_numbers = #tpu.dot_dimension_numbers<[1], [0], [0], [1], [0, 0, 1, 1], [], []>} : vector<8x64xbf16>, vector<64x32xbf16>, vector<8x32xf32> -> vector<8x32xf32>
    %c0_21 = arith.constant 0 : index
    %c0_22 = arith.constant 0 : index
    %27 = vector.load %arg9[%c0_21, %c0_22] : memref<1x32xf32, #tpu.memory_space<vmem>>, vector<1x32xf32>
    %28 = vector.broadcast %27 : vector<1x32xf32> to vector<8x32xf32>
    %29 = arith.addf %26, %28 : vector<8x32xf32>
    %cst_23 = arith.constant 0.000000e+00 : f32
    %30 = vector.broadcast %cst_23 : f32 to vector<8x32xf32>
    %31 = arith.maximumf %29, %30 : vector<8x32xf32>
    %32 = arith.truncf %31 : vector<8x32xf32> to vector<8x32xbf16>
    %c0_24 = arith.constant 0 : index
    %c0_25 = arith.constant 0 : index
    %33 = vector.load %arg10[%c0_24, %c0_25] : memref<32x1xbf16, #tpu.memory_space<vmem>>, vector<32x1xbf16>
    %cst_26 = arith.constant dense<0.000000e+00> : vector<8x1xf32>
    %34 = tpu.matmul %32, %33, %cst_26 {dimension_numbers = #tpu.dot_dimension_numbers<[1], [0], [0], [1], [0, 0, 1, 1], [], []>} : vector<8x32xbf16>, vector<32x1xbf16>, vector<8x1xf32> -> vector<8x1xf32>
    %c0_27 = arith.constant 0 : index
    %c0_28 = arith.constant 0 : index
    %35 = vector.load %arg11[%c0_27, %c0_28] : memref<1x1xf32, #tpu.memory_space<vmem>>, vector<1x1xf32>
    %36 = vector.broadcast %35 : vector<1x1xf32> to vector<8x1xf32>
    %37 = arith.addf %34, %36 : vector<8x1xf32>
    %38 = arith.negf %37 : vector<8x1xf32>
    %39 = math.exp %38 : vector<8x1xf32>
    %cst_29 = arith.constant 1.000000e+00 : f32
    %40 = vector.broadcast %cst_29 : f32 to vector<8x1xf32>
    %41 = arith.addf %40, %39 : vector<8x1xf32>
    %42 = arith.divf %40, %41 : vector<8x1xf32>
    %c0_30 = arith.constant 0 : index
    %c0_31 = arith.constant 0 : index
    %43 = vector.load %arg12[%c0_30, %c0_31] : memref<8x1xf32, #tpu.memory_space<vmem>>, vector<8x1xf32>
    tpu.vector_store %arg12[%c0_30, %c0_31], %42 {strides = array<i32>} : memref<8x1xf32, #tpu.memory_space<vmem>>, vector<8x1xf32>,
    return
  }
  func.func @transform_0(%arg0: i32) -> (i32, i32) {
    %c0_i32 = arith.constant 0 : i32
    %c0_i32_0 = arith.constant 0 : i32
    return %arg0, %c0_i32 : i32, i32
  }
  func.func @transform_1(%arg0: i32) -> (i32, i32) {
    %c0_i32 = arith.constant 0 : i32
    %c0_i32_0 = arith.constant 0 : i32
    %c0_i32_1 = arith.constant 0 : i32
    return %c0_i32, %c0_i32_0 : i32, i32
  }
  func.func @transform_2(%arg0: i32) -> (i32, i32) {
    %c0_i32 = arith.constant 0 : i32
    %c0_i32_0 = arith.constant 0 : i32
    %c0_i32_1 = arith.constant 0 : i32
    return %c0_i32, %c0_i32_0 : i32, i32
  }
  func.func @transform_3(%arg0: i32) -> (i32, i32) {
    %c0_i32 = arith.constant 0 : i32
    %c0_i32_0 = arith.constant 0 : i32
    %c0_i32_1 = arith.constant 0 : i32
    return %c0_i32, %c0_i32_0 : i32, i32
  }
  func.func @transform_4(%arg0: i32) -> (i32, i32) {
    %c0_i32 = arith.constant 0 : i32
    %c0_i32_0 = arith.constant 0 : i32
    %c0_i32_1 = arith.constant 0 : i32
    return %c0_i32, %c0_i32_0 : i32, i32
  }
  func.func @transform_5(%arg0: i32) -> (i32, i32) {
    %c0_i32 = arith.constant 0 : i32
    %c0_i32_0 = arith.constant 0 : i32
    %c0_i32_1 = arith.constant 0 : i32
    return %c0_i32, %c0_i32_0 : i32, i32
  }
  func.func @transform_6(%arg0: i32) -> (i32, i32) {
    %c0_i32 = arith.constant 0 : i32
    %c0_i32_0 = arith.constant 0 : i32
    %c0_i32_1 = arith.constant 0 : i32
    return %c0_i32, %c0_i32_0 : i32, i32
  }
  func.func @transform_7(%arg0: i32) -> (i32, i32) {
    %c0_i32 = arith.constant 0 : i32
    %c0_i32_0 = arith.constant 0 : i32
    %c0_i32_1 = arith.constant 0 : i32
    return %c0_i32, %c0_i32_0 : i32, i32
  }
  func.func @transform_8(%arg0: i32) -> (i32, i32) {
    %c0_i32 = arith.constant 0 : i32
    %c0_i32_0 = arith.constant 0 : i32
    %c0_i32_1 = arith.constant 0 : i32
    return %c0_i32, %c0_i32_0 : i32, i32
  }
  func.func @transform_9(%arg0: i32) -> (i32, i32) {
    %c0_i32 = arith.constant 0 : i32
    %c0_i32_0 = arith.constant 0 : i32
    %c0_i32_1 = arith.constant 0 : i32
    return %c0_i32, %c0_i32_0 : i32, i32
  }
  func.func @transform_10(%arg0: i32) -> (i32, i32) {
    %c0_i32 = arith.constant 0 : i32
    %c0_i32_0 = arith.constant 0 : i32
    %c0_i32_1 = arith.constant 0 : i32
    return %c0_i32, %c0_i32_0 : i32, i32
  }
  func.func @transform_11(%arg0: i32) -> (i32, i32) {
    %c0_i32 = arith.constant 0 : i32
    %c0_i32_0 = arith.constant 0 : i32
    return %arg0, %c0_i32 : i32, i32
  }
}

module attributes {stable_mosaic.version = 11 : i64} {
  func.func @_gates_proj_kernel(%arg0: i32, %arg1: memref<8x16xbf16, #tpu.memory_space<vmem>>, %arg2: memref<8x16xbf16, #tpu.memory_space<vmem>>, %arg3: memref<16x64xbf16, #tpu.memory_space<vmem>>, %arg4: memref<16x64xbf16, #tpu.memory_space<vmem>>, %arg5: memref<16x64xbf16, #tpu.memory_space<vmem>>, %arg6: memref<16x64xbf16, #tpu.memory_space<vmem>>, %arg7: memref<1x64xf32, #tpu.memory_space<vmem>>, %arg8: memref<1x64xf32, #tpu.memory_space<vmem>>, %arg9: memref<8x64xf32, #tpu.memory_space<vmem>>, %arg10: memref<8x64xf32, #tpu.memory_space<vmem>>) attributes {dimension_semantics = [#tpu.dimension_semantics<parallel>], iteration_bounds = array<i64: 2>, scalar_prefetch = 0 : i64, scratch_operands = 0 : i64, tpu.core_type = #tpu.core_type<tc>, window_params = [{transform_indices = @transform_0, window_bounds = array<i64: 8, 16>}, {transform_indices = @transform_1, window_bounds = array<i64: 8, 16>}, {pipeline_mode = #tpu.pipeline_mode<synchronous>, transform_indices = @transform_2, window_bounds = array<i64: 16, 64>}, {pipeline_mode = #tpu.pipeline_mode<synchronous>, transform_indices = @transform_3, window_bounds = array<i64: 16, 64>}, {pipeline_mode = #tpu.pipeline_mode<synchronous>, transform_indices = @transform_4, window_bounds = array<i64: 16, 64>}, {pipeline_mode = #tpu.pipeline_mode<synchronous>, transform_indices = @transform_5, window_bounds = array<i64: 16, 64>}, {pipeline_mode = #tpu.pipeline_mode<synchronous>, transform_indices = @transform_6, window_bounds = array<i64: 1, 64>}, {pipeline_mode = #tpu.pipeline_mode<synchronous>, transform_indices = @transform_7, window_bounds = array<i64: 1, 64>}, {transform_indices = @transform_8, window_bounds = array<i64: 8, 64>}, {transform_indices = @transform_9, window_bounds = array<i64: 8, 64>}]} {
    %c0 = arith.constant 0 : index
    %c0_0 = arith.constant 0 : index
    %0 = vector.load %arg7[%c0, %c0_0] : memref<1x64xf32, #tpu.memory_space<vmem>>, vector<1x64xf32>
    %c0_1 = arith.constant 0 : index
    %c0_2 = arith.constant 0 : index
    %1 = vector.load %arg8[%c0_1, %c0_2] : memref<1x64xf32, #tpu.memory_space<vmem>>, vector<1x64xf32>
    %c0_3 = arith.constant 0 : index
    %c0_4 = arith.constant 0 : index
    %2 = vector.load %arg1[%c0_3, %c0_4] : memref<8x16xbf16, #tpu.memory_space<vmem>>, vector<8x16xbf16>
    %c0_5 = arith.constant 0 : index
    %c0_6 = arith.constant 0 : index
    %3 = vector.load %arg3[%c0_5, %c0_6] : memref<16x64xbf16, #tpu.memory_space<vmem>>, vector<16x64xbf16>
    %cst = arith.constant dense<0.000000e+00> : vector<8x64xf32>
    %4 = tpu.matmul %2, %3, %cst {dimension_numbers = #tpu.dot_dimension_numbers<[1], [0], [0], [1], [0, 0, 1, 1], [], []>} : vector<8x16xbf16>, vector<16x64xbf16>, vector<8x64xf32> -> vector<8x64xf32>
    %5 = vector.broadcast %0 : vector<1x64xf32> to vector<8x64xf32>
    %6 = arith.addf %5, %4 : vector<8x64xf32>
    %c0_7 = arith.constant 0 : index
    %c0_8 = arith.constant 0 : index
    %7 = vector.load %arg5[%c0_7, %c0_8] : memref<16x64xbf16, #tpu.memory_space<vmem>>, vector<16x64xbf16>
    %cst_9 = arith.constant dense<0.000000e+00> : vector<8x64xf32>
    %8 = tpu.matmul %2, %7, %cst_9 {dimension_numbers = #tpu.dot_dimension_numbers<[1], [0], [0], [1], [0, 0, 1, 1], [], []>} : vector<8x16xbf16>, vector<16x64xbf16>, vector<8x64xf32> -> vector<8x64xf32>
    %9 = vector.broadcast %1 : vector<1x64xf32> to vector<8x64xf32>
    %10 = arith.addf %9, %8 : vector<8x64xf32>
    %c0_10 = arith.constant 0 : index
    %c0_11 = arith.constant 0 : index
    %11 = vector.load %arg2[%c0_10, %c0_11] : memref<8x16xbf16, #tpu.memory_space<vmem>>, vector<8x16xbf16>
    %c0_12 = arith.constant 0 : index
    %c0_13 = arith.constant 0 : index
    %12 = vector.load %arg4[%c0_12, %c0_13] : memref<16x64xbf16, #tpu.memory_space<vmem>>, vector<16x64xbf16>
    %cst_14 = arith.constant dense<0.000000e+00> : vector<8x64xf32>
    %13 = tpu.matmul %11, %12, %cst_14 {dimension_numbers = #tpu.dot_dimension_numbers<[1], [0], [0], [1], [0, 0, 1, 1], [], []>} : vector<8x16xbf16>, vector<16x64xbf16>, vector<8x64xf32> -> vector<8x64xf32>
    %14 = arith.addf %6, %13 : vector<8x64xf32>
    %c0_15 = arith.constant 0 : index
    %c0_16 = arith.constant 0 : index
    %15 = vector.load %arg6[%c0_15, %c0_16] : memref<16x64xbf16, #tpu.memory_space<vmem>>, vector<16x64xbf16>
    %cst_17 = arith.constant dense<0.000000e+00> : vector<8x64xf32>
    %16 = tpu.matmul %11, %15, %cst_17 {dimension_numbers = #tpu.dot_dimension_numbers<[1], [0], [0], [1], [0, 0, 1, 1], [], []>} : vector<8x16xbf16>, vector<16x64xbf16>, vector<8x64xf32> -> vector<8x64xf32>
    %17 = arith.addf %10, %16 : vector<8x64xf32>
    %c0_18 = arith.constant 0 : index
    %c0_19 = arith.constant 0 : index
    %18 = vector.load %arg9[%c0_18, %c0_19] : memref<8x64xf32, #tpu.memory_space<vmem>>, vector<8x64xf32>
    tpu.vector_store %arg9[%c0_18, %c0_19], %14 {strides = array<i32>} : memref<8x64xf32, #tpu.memory_space<vmem>>, vector<8x64xf32>,
    %c0_20 = arith.constant 0 : index
    %c0_21 = arith.constant 0 : index
    %19 = vector.load %arg10[%c0_20, %c0_21] : memref<8x64xf32, #tpu.memory_space<vmem>>, vector<8x64xf32>
    tpu.vector_store %arg10[%c0_20, %c0_21], %17 {strides = array<i32>} : memref<8x64xf32, #tpu.memory_space<vmem>>, vector<8x64xf32>,
    return
  }
  func.func @transform_0(%arg0: i32) -> (i32, i32) {
    %c0_i32 = arith.constant 0 : i32
    %c0_i32_0 = arith.constant 0 : i32
    return %arg0, %c0_i32 : i32, i32
  }
  func.func @transform_1(%arg0: i32) -> (i32, i32) {
    %c0_i32 = arith.constant 0 : i32
    %c0_i32_0 = arith.constant 0 : i32
    return %arg0, %c0_i32 : i32, i32
  }
  func.func @transform_2(%arg0: i32) -> (i32, i32) {
    %c0_i32 = arith.constant 0 : i32
    %c0_i32_0 = arith.constant 0 : i32
    %c0_i32_1 = arith.constant 0 : i32
    return %c0_i32, %c0_i32_0 : i32, i32
  }
  func.func @transform_3(%arg0: i32) -> (i32, i32) {
    %c0_i32 = arith.constant 0 : i32
    %c0_i32_0 = arith.constant 0 : i32
    %c0_i32_1 = arith.constant 0 : i32
    return %c0_i32, %c0_i32_0 : i32, i32
  }
  func.func @transform_4(%arg0: i32) -> (i32, i32) {
    %c0_i32 = arith.constant 0 : i32
    %c0_i32_0 = arith.constant 0 : i32
    %c0_i32_1 = arith.constant 0 : i32
    return %c0_i32, %c0_i32_0 : i32, i32
  }
  func.func @transform_5(%arg0: i32) -> (i32, i32) {
    %c0_i32 = arith.constant 0 : i32
    %c0_i32_0 = arith.constant 0 : i32
    %c0_i32_1 = arith.constant 0 : i32
    return %c0_i32, %c0_i32_0 : i32, i32
  }
  func.func @transform_6(%arg0: i32) -> (i32, i32) {
    %c0_i32 = arith.constant 0 : i32
    %c0_i32_0 = arith.constant 0 : i32
    %c0_i32_1 = arith.constant 0 : i32
    return %c0_i32, %c0_i32_0 : i32, i32
  }
  func.func @transform_7(%arg0: i32) -> (i32, i32) {
    %c0_i32 = arith.constant 0 : i32
    %c0_i32_0 = arith.constant 0 : i32
    %c0_i32_1 = arith.constant 0 : i32
    return %c0_i32, %c0_i32_0 : i32, i32
  }
  func.func @transform_8(%arg0: i32) -> (i32, i32) {
    %c0_i32 = arith.constant 0 : i32
    %c0_i32_0 = arith.constant 0 : i32
    return %arg0, %c0_i32 : i32, i32
  }
  func.func @transform_9(%arg0: i32) -> (i32, i32) {
    %c0_i32 = arith.constant 0 : i32
    %c0_i32_0 = arith.constant 0 : i32
    return %arg0, %c0_i32 : i32, i32
  }
}

module attributes {stable_mosaic.version = 11 : i64} {
  func.func @_bilstm_chunk_kernel(%arg0: i32, %arg1: memref<8x2x1xf32, #tpu.memory_space<vmem>>, %arg2: memref<8x2x1xf32, #tpu.memory_space<vmem>>, %arg3: memref<8x2x64xf32, #tpu.memory_space<vmem>>, %arg4: memref<8x2x64xf32, #tpu.memory_space<vmem>>, %arg5: memref<16x64xbf16, #tpu.memory_space<vmem>>, %arg6: memref<16x64xbf16, #tpu.memory_space<vmem>>, %arg7: memref<8x2x16xbf16, #tpu.memory_space<vmem>>, %arg8: memref<8x2x16xbf16, #tpu.memory_space<vmem>>, %arg9: memref<2x16xf32, #tpu.memory_space<vmem>>, %arg10: memref<2x16xf32, #tpu.memory_space<vmem>>, %arg11: memref<2x16xf32, #tpu.memory_space<vmem>>, %arg12: memref<2x16xf32, #tpu.memory_space<vmem>>) attributes {dimension_semantics = [#tpu.dimension_semantics<arbitrary>], iteration_bounds = array<i64: 1>, scalar_prefetch = 0 : i64, scratch_operands = 4 : i64, tpu.core_type = #tpu.core_type<tc>, window_params = [{transform_indices = @transform_0, window_bounds = array<i64: 8, 2, 1>}, {transform_indices = @transform_1, window_bounds = array<i64: 8, 2, 1>}, {transform_indices = @transform_2, window_bounds = array<i64: 8, 2, 64>}, {transform_indices = @transform_3, window_bounds = array<i64: 8, 2, 64>}, {pipeline_mode = #tpu.pipeline_mode<synchronous>, transform_indices = @transform_4, window_bounds = array<i64: 16, 64>}, {pipeline_mode = #tpu.pipeline_mode<synchronous>, transform_indices = @transform_5, window_bounds = array<i64: 16, 64>}, {transform_indices = @transform_6, window_bounds = array<i64: 8, 2, 16>}, {transform_indices = @transform_7, window_bounds = array<i64: 8, 2, 16>}]} {
    %c0_i32 = arith.constant 0 : i32
    %0 = arith.cmpi eq, %arg0, %c0_i32 : i32
    %1 = arith.extui %0 : i1 to i32
    %c0_i32_0 = arith.constant 0 : i32
    %2 = arith.cmpi ne, %1, %c0_i32_0 : i32
    scf.if %2 {
      %cst_220 = arith.constant 0.000000e+00 : f32
      %901 = vector.broadcast %cst_220 : f32 to vector<2x16xf32>
      %c0_221 = arith.constant 0 : index
      %c0_222 = arith.constant 0 : index
      %902 = vector.load %arg9[%c0_221, %c0_222] : memref<2x16xf32, #tpu.memory_space<vmem>>, vector<2x16xf32>
      tpu.vector_store %arg9[%c0_221, %c0_222], %901 {strides = array<i32>} : memref<2x16xf32, #tpu.memory_space<vmem>>, vector<2x16xf32>,
      %cst_223 = arith.constant 0.000000e+00 : f32
      %903 = vector.broadcast %cst_223 : f32 to vector<2x16xf32>
      %c0_224 = arith.constant 0 : index
      %c0_225 = arith.constant 0 : index
      %904 = vector.load %arg10[%c0_224, %c0_225] : memref<2x16xf32, #tpu.memory_space<vmem>>, vector<2x16xf32>
      tpu.vector_store %arg10[%c0_224, %c0_225], %903 {strides = array<i32>} : memref<2x16xf32, #tpu.memory_space<vmem>>, vector<2x16xf32>,
      %cst_226 = arith.constant 0.000000e+00 : f32
      %905 = vector.broadcast %cst_226 : f32 to vector<2x16xf32>
      %c0_227 = arith.constant 0 : index
      %c0_228 = arith.constant 0 : index
      %906 = vector.load %arg11[%c0_227, %c0_228] : memref<2x16xf32, #tpu.memory_space<vmem>>, vector<2x16xf32>
      tpu.vector_store %arg11[%c0_227, %c0_228], %905 {strides = array<i32>} : memref<2x16xf32, #tpu.memory_space<vmem>>, vector<2x16xf32>,
      %cst_229 = arith.constant 0.000000e+00 : f32
      %907 = vector.broadcast %cst_229 : f32 to vector<2x16xf32>
      %c0_230 = arith.constant 0 : index
      %c0_231 = arith.constant 0 : index
      %908 = vector.load %arg12[%c0_230, %c0_231] : memref<2x16xf32, #tpu.memory_space<vmem>>, vector<2x16xf32>
      tpu.vector_store %arg12[%c0_230, %c0_231], %907 {strides = array<i32>} : memref<2x16xf32, #tpu.memory_space<vmem>>, vector<2x16xf32>,
    } else {
    }
    %c0 = arith.constant 0 : index
    %c0_1 = arith.constant 0 : index
    %3 = vector.load %arg5[%c0, %c0_1] : memref<16x64xbf16, #tpu.memory_space<vmem>>, vector<16x64xbf16>
    %c0_2 = arith.constant 0 : index
    %c0_3 = arith.constant 0 : index
    %4 = vector.load %arg6[%c0_2, %c0_3] : memref<16x64xbf16, #tpu.memory_space<vmem>>, vector<16x64xbf16>
    %c0_4 = arith.constant 0 : index
    %c0_5 = arith.constant 0 : index
    %5 = vector.load %arg9[%c0_4, %c0_5] : memref<2x16xf32, #tpu.memory_space<vmem>>, vector<2x16xf32>
    %c0_6 = arith.constant 0 : index
    %c0_7 = arith.constant 0 : index
    %6 = vector.load %arg10[%c0_6, %c0_7] : memref<2x16xf32, #tpu.memory_space<vmem>>, vector<2x16xf32>
    %c0_8 = arith.constant 0 : index
    %c0_9 = arith.constant 0 : index
    %7 = vector.load %arg11[%c0_8, %c0_9] : memref<2x16xf32, #tpu.memory_space<vmem>>, vector<2x16xf32>
    %c0_10 = arith.constant 0 : index
    %c0_11 = arith.constant 0 : index
    %8 = vector.load %arg12[%c0_10, %c0_11] : memref<2x16xf32, #tpu.memory_space<vmem>>, vector<2x16xf32>
    %c0_i32_12 = arith.constant 0 : i32
    %9 = arith.index_cast %c0_i32_12 : i32 to index
    %c0_13 = arith.constant 0 : index
    %c0_14 = arith.constant 0 : index
    %10 = vector.load %arg3[%9, %c0_13, %c0_14] : memref<8x2x64xf32, #tpu.memory_space<vmem>>, vector<1x2x64xf32>
    %11 = vector.shape_cast %10 : vector<1x2x64xf32> to vector<2x64xf32>
    %12 = arith.index_cast %c0_i32_12 : i32 to index
    %c0_15 = arith.constant 0 : index
    %c0_16 = arith.constant 0 : index
    %13 = vector.load %arg1[%12, %c0_15, %c0_16] : memref<8x2x1xf32, #tpu.memory_space<vmem>>, vector<1x2x1xf32>
    %14 = vector.shape_cast %13 : vector<1x2x1xf32> to vector<2x1xf32>
    %15 = arith.truncf %5 : vector<2x16xf32> to vector<2x16xbf16>
    %cst = arith.constant dense<0.000000e+00> : vector<2x64xf32>
    %16 = tpu.matmul %15, %3, %cst {dimension_numbers = #tpu.dot_dimension_numbers<[1], [0], [0], [1], [0, 0, 1, 1], [], []>} : vector<2x16xbf16>, vector<16x64xbf16>, vector<2x64xf32> -> vector<2x64xf32>
    %17 = arith.addf %11, %16 : vector<2x64xf32>
    %18 = vector.extract_strided_slice %17 {offsets = [0, 0], sizes = [2, 16], strides = [1, 1]} : vector<2x64xf32> to vector<2x16xf32>
    %19 = arith.negf %18 : vector<2x16xf32>
    %20 = math.exp %19 : vector<2x16xf32>
    %cst_17 = arith.constant 1.000000e+00 : f32
    %21 = vector.broadcast %cst_17 : f32 to vector<2x16xf32>
    %22 = arith.addf %21, %20 : vector<2x16xf32>
    %23 = arith.divf %21, %22 : vector<2x16xf32>
    %24 = vector.extract_strided_slice %17 {offsets = [0, 16], sizes = [2, 16], strides = [1, 1]} : vector<2x64xf32> to vector<2x16xf32>
    %25 = arith.negf %24 : vector<2x16xf32>
    %26 = math.exp %25 : vector<2x16xf32>
    %cst_18 = arith.constant 1.000000e+00 : f32
    %27 = vector.broadcast %cst_18 : f32 to vector<2x16xf32>
    %28 = arith.addf %27, %26 : vector<2x16xf32>
    %29 = arith.divf %27, %28 : vector<2x16xf32>
    %30 = vector.extract_strided_slice %17 {offsets = [0, 32], sizes = [2, 16], strides = [1, 1]} : vector<2x64xf32> to vector<2x16xf32>
    %31 = math.tanh %30 : vector<2x16xf32>
    %32 = vector.extract_strided_slice %17 {offsets = [0, 48], sizes = [2, 16], strides = [1, 1]} : vector<2x64xf32> to vector<2x16xf32>
    %33 = arith.negf %32 : vector<2x16xf32>
    %34 = math.exp %33 : vector<2x16xf32>
    %cst_19 = arith.constant 1.000000e+00 : f32
    %35 = vector.broadcast %cst_19 : f32 to vector<2x16xf32>
    %36 = arith.addf %35, %34 : vector<2x16xf32>
    %37 = arith.divf %35, %36 : vector<2x16xf32>
    %38 = arith.mulf %29, %6 : vector<2x16xf32>
    %39 = arith.mulf %23, %31 : vector<2x16xf32>
    %40 = arith.addf %38, %39 : vector<2x16xf32>
    %41 = math.tanh %40 : vector<2x16xf32>
    %42 = arith.mulf %37, %41 : vector<2x16xf32>
    %43 = vector.broadcast %14 : vector<2x1xf32> to vector<2x16xf32>
    %44 = arith.mulf %43, %42 : vector<2x16xf32>
    %cst_20 = arith.constant 1.000000e+00 : f32
    %45 = vector.broadcast %cst_20 : f32 to vector<2x1xf32>
    %46 = arith.subf %45, %14 : vector<2x1xf32>
    %47 = vector.broadcast %46 : vector<2x1xf32> to vector<2x16xf32>
    %48 = arith.mulf %47, %5 : vector<2x16xf32>
    %49 = arith.addf %44, %48 : vector<2x16xf32>
    %50 = vector.broadcast %14 : vector<2x1xf32> to vector<2x16xf32>
    %51 = arith.mulf %50, %40 : vector<2x16xf32>
    %cst_21 = arith.constant 1.000000e+00 : f32
    %52 = vector.broadcast %cst_21 : f32 to vector<2x1xf32>
    %53 = arith.subf %52, %14 : vector<2x1xf32>
    %54 = vector.broadcast %53 : vector<2x1xf32> to vector<2x16xf32>
    %55 = arith.mulf %54, %6 : vector<2x16xf32>
    %56 = arith.addf %51, %55 : vector<2x16xf32>
    %57 = vector.broadcast %14 : vector<2x1xf32> to vector<2x16xf32>
    %58 = arith.mulf %57, %42 : vector<2x16xf32>
    %59 = arith.truncf %58 : vector<2x16xf32> to vector<2x16xbf16>
    %60 = arith.index_cast %c0_i32_12 : i32 to index
    %c0_22 = arith.constant 0 : index
    %c0_23 = arith.constant 0 : index
    %61 = vector.load %arg7[%60, %c0_22, %c0_23] : memref<8x2x16xbf16, #tpu.memory_space<vmem>>, vector<1x2x16xbf16>
    %62 = vector.shape_cast %61 : vector<1x2x16xbf16> to vector<2x16xbf16>
    %63 = vector.shape_cast %59 : vector<2x16xbf16> to vector<1x2x16xbf16>
    tpu.vector_store %arg7[%60, %c0_22, %c0_23], %63 {strides = array<i32>} : memref<8x2x16xbf16, #tpu.memory_space<vmem>>, vector<1x2x16xbf16>,
    %c7_i32 = arith.constant 7 : i32
    %64 = arith.subi %c7_i32, %c0_i32_12 : i32
    %65 = arith.index_cast %64 : i32 to index
    %c0_24 = arith.constant 0 : index
    %c0_25 = arith.constant 0 : index
    %66 = vector.load %arg4[%65, %c0_24, %c0_25] : memref<8x2x64xf32, #tpu.memory_space<vmem>>, vector<1x2x64xf32>
    %67 = vector.shape_cast %66 : vector<1x2x64xf32> to vector<2x64xf32>
    %68 = arith.index_cast %64 : i32 to index
    %c0_26 = arith.constant 0 : index
    %c0_27 = arith.constant 0 : index
    %69 = vector.load %arg2[%68, %c0_26, %c0_27] : memref<8x2x1xf32, #tpu.memory_space<vmem>>, vector<1x2x1xf32>
    %70 = vector.shape_cast %69 : vector<1x2x1xf32> to vector<2x1xf32>
    %71 = arith.truncf %7 : vector<2x16xf32> to vector<2x16xbf16>
    %cst_28 = arith.constant dense<0.000000e+00> : vector<2x64xf32>
    %72 = tpu.matmul %71, %4, %cst_28 {dimension_numbers = #tpu.dot_dimension_numbers<[1], [0], [0], [1], [0, 0, 1, 1], [], []>} : vector<2x16xbf16>, vector<16x64xbf16>, vector<2x64xf32> -> vector<2x64xf32>
    %73 = arith.addf %67, %72 : vector<2x64xf32>
    %74 = vector.extract_strided_slice %73 {offsets = [0, 0], sizes = [2, 16], strides = [1, 1]} : vector<2x64xf32> to vector<2x16xf32>
    %75 = arith.negf %74 : vector<2x16xf32>
    %76 = math.exp %75 : vector<2x16xf32>
    %cst_29 = arith.constant 1.000000e+00 : f32
    %77 = vector.broadcast %cst_29 : f32 to vector<2x16xf32>
    %78 = arith.addf %77, %76 : vector<2x16xf32>
    %79 = arith.divf %77, %78 : vector<2x16xf32>
    %80 = vector.extract_strided_slice %73 {offsets = [0, 16], sizes = [2, 16], strides = [1, 1]} : vector<2x64xf32> to vector<2x16xf32>
    %81 = arith.negf %80 : vector<2x16xf32>
    %82 = math.exp %81 : vector<2x16xf32>
    %cst_30 = arith.constant 1.000000e+00 : f32
    %83 = vector.broadcast %cst_30 : f32 to vector<2x16xf32>
    %84 = arith.addf %83, %82 : vector<2x16xf32>
    %85 = arith.divf %83, %84 : vector<2x16xf32>
    %86 = vector.extract_strided_slice %73 {offsets = [0, 32], sizes = [2, 16], strides = [1, 1]} : vector<2x64xf32> to vector<2x16xf32>
    %87 = math.tanh %86 : vector<2x16xf32>
    %88 = vector.extract_strided_slice %73 {offsets = [0, 48], sizes = [2, 16], strides = [1, 1]} : vector<2x64xf32> to vector<2x16xf32>
    %89 = arith.negf %88 : vector<2x16xf32>
    %90 = math.exp %89 : vector<2x16xf32>
    %cst_31 = arith.constant 1.000000e+00 : f32
    %91 = vector.broadcast %cst_31 : f32 to vector<2x16xf32>
    %92 = arith.addf %91, %90 : vector<2x16xf32>
    %93 = arith.divf %91, %92 : vector<2x16xf32>
    %94 = arith.mulf %85, %8 : vector<2x16xf32>
    %95 = arith.mulf %79, %87 : vector<2x16xf32>
    %96 = arith.addf %94, %95 : vector<2x16xf32>
    %97 = math.tanh %96 : vector<2x16xf32>
    %98 = arith.mulf %93, %97 : vector<2x16xf32>
    %99 = vector.broadcast %70 : vector<2x1xf32> to vector<2x16xf32>
    %100 = arith.mulf %99, %98 : vector<2x16xf32>
    %cst_32 = arith.constant 1.000000e+00 : f32
    %101 = vector.broadcast %cst_32 : f32 to vector<2x1xf32>
    %102 = arith.subf %101, %70 : vector<2x1xf32>
    %103 = vector.broadcast %102 : vector<2x1xf32> to vector<2x16xf32>
    %104 = arith.mulf %103, %7 : vector<2x16xf32>
    %105 = arith.addf %100, %104 : vector<2x16xf32>
    %106 = vector.broadcast %70 : vector<2x1xf32> to vector<2x16xf32>
    %107 = arith.mulf %106, %96 : vector<2x16xf32>
    %cst_33 = arith.constant 1.000000e+00 : f32
    %108 = vector.broadcast %cst_33 : f32 to vector<2x1xf32>
    %109 = arith.subf %108, %70 : vector<2x1xf32>
    %110 = vector.broadcast %109 : vector<2x1xf32> to vector<2x16xf32>
    %111 = arith.mulf %110, %8 : vector<2x16xf32>
    %112 = arith.addf %107, %111 : vector<2x16xf32>
    %113 = vector.broadcast %70 : vector<2x1xf32> to vector<2x16xf32>
    %114 = arith.mulf %113, %98 : vector<2x16xf32>
    %115 = arith.truncf %114 : vector<2x16xf32> to vector<2x16xbf16>
    %116 = arith.index_cast %64 : i32 to index
    %c0_34 = arith.constant 0 : index
    %c0_35 = arith.constant 0 : index
    %117 = vector.load %arg8[%116, %c0_34, %c0_35] : memref<8x2x16xbf16, #tpu.memory_space<vmem>>, vector<1x2x16xbf16>
    %118 = vector.shape_cast %117 : vector<1x2x16xbf16> to vector<2x16xbf16>
    %119 = vector.shape_cast %115 : vector<2x16xbf16> to vector<1x2x16xbf16>
    tpu.vector_store %arg8[%116, %c0_34, %c0_35], %119 {strides = array<i32>} : memref<8x2x16xbf16, #tpu.memory_space<vmem>>, vector<1x2x16xbf16>,
    %c1_i32 = arith.constant 1 : i32
    %120 = arith.index_cast %c1_i32 : i32 to index
    %c0_36 = arith.constant 0 : index
    %c0_37 = arith.constant 0 : index
    %121 = vector.load %arg3[%120, %c0_36, %c0_37] : memref<8x2x64xf32, #tpu.memory_space<vmem>>, vector<1x2x64xf32>
    %122 = vector.shape_cast %121 : vector<1x2x64xf32> to vector<2x64xf32>
    %123 = arith.index_cast %c1_i32 : i32 to index
    %c0_38 = arith.constant 0 : index
    %c0_39 = arith.constant 0 : index
    %124 = vector.load %arg1[%123, %c0_38, %c0_39] : memref<8x2x1xf32, #tpu.memory_space<vmem>>, vector<1x2x1xf32>
    %125 = vector.shape_cast %124 : vector<1x2x1xf32> to vector<2x1xf32>
    %126 = arith.truncf %49 : vector<2x16xf32> to vector<2x16xbf16>
    %cst_40 = arith.constant dense<0.000000e+00> : vector<2x64xf32>
    %127 = tpu.matmul %126, %3, %cst_40 {dimension_numbers = #tpu.dot_dimension_numbers<[1], [0], [0], [1], [0, 0, 1, 1], [], []>} : vector<2x16xbf16>, vector<16x64xbf16>, vector<2x64xf32> -> vector<2x64xf32>
    %128 = arith.addf %122, %127 : vector<2x64xf32>
    %129 = vector.extract_strided_slice %128 {offsets = [0, 0], sizes = [2, 16], strides = [1, 1]} : vector<2x64xf32> to vector<2x16xf32>
    %130 = arith.negf %129 : vector<2x16xf32>
    %131 = math.exp %130 : vector<2x16xf32>
    %cst_41 = arith.constant 1.000000e+00 : f32
    %132 = vector.broadcast %cst_41 : f32 to vector<2x16xf32>
    %133 = arith.addf %132, %131 : vector<2x16xf32>
    %134 = arith.divf %132, %133 : vector<2x16xf32>
    %135 = vector.extract_strided_slice %128 {offsets = [0, 16], sizes = [2, 16], strides = [1, 1]} : vector<2x64xf32> to vector<2x16xf32>
    %136 = arith.negf %135 : vector<2x16xf32>
    %137 = math.exp %136 : vector<2x16xf32>
    %cst_42 = arith.constant 1.000000e+00 : f32
    %138 = vector.broadcast %cst_42 : f32 to vector<2x16xf32>
    %139 = arith.addf %138, %137 : vector<2x16xf32>
    %140 = arith.divf %138, %139 : vector<2x16xf32>
    %141 = vector.extract_strided_slice %128 {offsets = [0, 32], sizes = [2, 16], strides = [1, 1]} : vector<2x64xf32> to vector<2x16xf32>
    %142 = math.tanh %141 : vector<2x16xf32>
    %143 = vector.extract_strided_slice %128 {offsets = [0, 48], sizes = [2, 16], strides = [1, 1]} : vector<2x64xf32> to vector<2x16xf32>
    %144 = arith.negf %143 : vector<2x16xf32>
    %145 = math.exp %144 : vector<2x16xf32>
    %cst_43 = arith.constant 1.000000e+00 : f32
    %146 = vector.broadcast %cst_43 : f32 to vector<2x16xf32>
    %147 = arith.addf %146, %145 : vector<2x16xf32>
    %148 = arith.divf %146, %147 : vector<2x16xf32>
    %149 = arith.mulf %140, %56 : vector<2x16xf32>
    %150 = arith.mulf %134, %142 : vector<2x16xf32>
    %151 = arith.addf %149, %150 : vector<2x16xf32>
    %152 = math.tanh %151 : vector<2x16xf32>
    %153 = arith.mulf %148, %152 : vector<2x16xf32>
    %154 = vector.broadcast %125 : vector<2x1xf32> to vector<2x16xf32>
    %155 = arith.mulf %154, %153 : vector<2x16xf32>
    %cst_44 = arith.constant 1.000000e+00 : f32
    %156 = vector.broadcast %cst_44 : f32 to vector<2x1xf32>
    %157 = arith.subf %156, %125 : vector<2x1xf32>
    %158 = vector.broadcast %157 : vector<2x1xf32> to vector<2x16xf32>
    %159 = arith.mulf %158, %49 : vector<2x16xf32>
    %160 = arith.addf %155, %159 : vector<2x16xf32>
    %161 = vector.broadcast %125 : vector<2x1xf32> to vector<2x16xf32>
    %162 = arith.mulf %161, %151 : vector<2x16xf32>
    %cst_45 = arith.constant 1.000000e+00 : f32
    %163 = vector.broadcast %cst_45 : f32 to vector<2x1xf32>
    %164 = arith.subf %163, %125 : vector<2x1xf32>
    %165 = vector.broadcast %164 : vector<2x1xf32> to vector<2x16xf32>
    %166 = arith.mulf %165, %56 : vector<2x16xf32>
    %167 = arith.addf %162, %166 : vector<2x16xf32>
    %168 = vector.broadcast %125 : vector<2x1xf32> to vector<2x16xf32>
    %169 = arith.mulf %168, %153 : vector<2x16xf32>
    %170 = arith.truncf %169 : vector<2x16xf32> to vector<2x16xbf16>
    %171 = arith.index_cast %c1_i32 : i32 to index
    %c0_46 = arith.constant 0 : index
    %c0_47 = arith.constant 0 : index
    %172 = vector.load %arg7[%171, %c0_46, %c0_47] : memref<8x2x16xbf16, #tpu.memory_space<vmem>>, vector<1x2x16xbf16>
    %173 = vector.shape_cast %172 : vector<1x2x16xbf16> to vector<2x16xbf16>
    %174 = vector.shape_cast %170 : vector<2x16xbf16> to vector<1x2x16xbf16>
    tpu.vector_store %arg7[%171, %c0_46, %c0_47], %174 {strides = array<i32>} : memref<8x2x16xbf16, #tpu.memory_space<vmem>>, vector<1x2x16xbf16>,
    %c7_i32_48 = arith.constant 7 : i32
    %175 = arith.subi %c7_i32_48, %c1_i32 : i32
    %176 = arith.index_cast %175 : i32 to index
    %c0_49 = arith.constant 0 : index
    %c0_50 = arith.constant 0 : index
    %177 = vector.load %arg4[%176, %c0_49, %c0_50] : memref<8x2x64xf32, #tpu.memory_space<vmem>>, vector<1x2x64xf32>
    %178 = vector.shape_cast %177 : vector<1x2x64xf32> to vector<2x64xf32>
    %179 = arith.index_cast %175 : i32 to index
    %c0_51 = arith.constant 0 : index
    %c0_52 = arith.constant 0 : index
    %180 = vector.load %arg2[%179, %c0_51, %c0_52] : memref<8x2x1xf32, #tpu.memory_space<vmem>>, vector<1x2x1xf32>
    %181 = vector.shape_cast %180 : vector<1x2x1xf32> to vector<2x1xf32>
    %182 = arith.truncf %105 : vector<2x16xf32> to vector<2x16xbf16>
    %cst_53 = arith.constant dense<0.000000e+00> : vector<2x64xf32>
    %183 = tpu.matmul %182, %4, %cst_53 {dimension_numbers = #tpu.dot_dimension_numbers<[1], [0], [0], [1], [0, 0, 1, 1], [], []>} : vector<2x16xbf16>, vector<16x64xbf16>, vector<2x64xf32> -> vector<2x64xf32>
    %184 = arith.addf %178, %183 : vector<2x64xf32>
    %185 = vector.extract_strided_slice %184 {offsets = [0, 0], sizes = [2, 16], strides = [1, 1]} : vector<2x64xf32> to vector<2x16xf32>
    %186 = arith.negf %185 : vector<2x16xf32>
    %187 = math.exp %186 : vector<2x16xf32>
    %cst_54 = arith.constant 1.000000e+00 : f32
    %188 = vector.broadcast %cst_54 : f32 to vector<2x16xf32>
    %189 = arith.addf %188, %187 : vector<2x16xf32>
    %190 = arith.divf %188, %189 : vector<2x16xf32>
    %191 = vector.extract_strided_slice %184 {offsets = [0, 16], sizes = [2, 16], strides = [1, 1]} : vector<2x64xf32> to vector<2x16xf32>
    %192 = arith.negf %191 : vector<2x16xf32>
    %193 = math.exp %192 : vector<2x16xf32>
    %cst_55 = arith.constant 1.000000e+00 : f32
    %194 = vector.broadcast %cst_55 : f32 to vector<2x16xf32>
    %195 = arith.addf %194, %193 : vector<2x16xf32>
    %196 = arith.divf %194, %195 : vector<2x16xf32>
    %197 = vector.extract_strided_slice %184 {offsets = [0, 32], sizes = [2, 16], strides = [1, 1]} : vector<2x64xf32> to vector<2x16xf32>
    %198 = math.tanh %197 : vector<2x16xf32>
    %199 = vector.extract_strided_slice %184 {offsets = [0, 48], sizes = [2, 16], strides = [1, 1]} : vector<2x64xf32> to vector<2x16xf32>
    %200 = arith.negf %199 : vector<2x16xf32>
    %201 = math.exp %200 : vector<2x16xf32>
    %cst_56 = arith.constant 1.000000e+00 : f32
    %202 = vector.broadcast %cst_56 : f32 to vector<2x16xf32>
    %203 = arith.addf %202, %201 : vector<2x16xf32>
    %204 = arith.divf %202, %203 : vector<2x16xf32>
    %205 = arith.mulf %196, %112 : vector<2x16xf32>
    %206 = arith.mulf %190, %198 : vector<2x16xf32>
    %207 = arith.addf %205, %206 : vector<2x16xf32>
    %208 = math.tanh %207 : vector<2x16xf32>
    %209 = arith.mulf %204, %208 : vector<2x16xf32>
    %210 = vector.broadcast %181 : vector<2x1xf32> to vector<2x16xf32>
    %211 = arith.mulf %210, %209 : vector<2x16xf32>
    %cst_57 = arith.constant 1.000000e+00 : f32
    %212 = vector.broadcast %cst_57 : f32 to vector<2x1xf32>
    %213 = arith.subf %212, %181 : vector<2x1xf32>
    %214 = vector.broadcast %213 : vector<2x1xf32> to vector<2x16xf32>
    %215 = arith.mulf %214, %105 : vector<2x16xf32>
    %216 = arith.addf %211, %215 : vector<2x16xf32>
    %217 = vector.broadcast %181 : vector<2x1xf32> to vector<2x16xf32>
    %218 = arith.mulf %217, %207 : vector<2x16xf32>
    %cst_58 = arith.constant 1.000000e+00 : f32
    %219 = vector.broadcast %cst_58 : f32 to vector<2x1xf32>
    %220 = arith.subf %219, %181 : vector<2x1xf32>
    %221 = vector.broadcast %220 : vector<2x1xf32> to vector<2x16xf32>
    %222 = arith.mulf %221, %112 : vector<2x16xf32>
    %223 = arith.addf %218, %222 : vector<2x16xf32>
    %224 = vector.broadcast %181 : vector<2x1xf32> to vector<2x16xf32>
    %225 = arith.mulf %224, %209 : vector<2x16xf32>
    %226 = arith.truncf %225 : vector<2x16xf32> to vector<2x16xbf16>
    %227 = arith.index_cast %175 : i32 to index
    %c0_59 = arith.constant 0 : index
    %c0_60 = arith.constant 0 : index
    %228 = vector.load %arg8[%227, %c0_59, %c0_60] : memref<8x2x16xbf16, #tpu.memory_space<vmem>>, vector<1x2x16xbf16>
    %229 = vector.shape_cast %228 : vector<1x2x16xbf16> to vector<2x16xbf16>
    %230 = vector.shape_cast %226 : vector<2x16xbf16> to vector<1x2x16xbf16>
    tpu.vector_store %arg8[%227, %c0_59, %c0_60], %230 {strides = array<i32>} : memref<8x2x16xbf16, #tpu.memory_space<vmem>>, vector<1x2x16xbf16>,
    %c2_i32 = arith.constant 2 : i32
    %231 = arith.index_cast %c2_i32 : i32 to index
    %c0_61 = arith.constant 0 : index
    %c0_62 = arith.constant 0 : index
    %232 = vector.load %arg3[%231, %c0_61, %c0_62] : memref<8x2x64xf32, #tpu.memory_space<vmem>>, vector<1x2x64xf32>
    %233 = vector.shape_cast %232 : vector<1x2x64xf32> to vector<2x64xf32>
    %234 = arith.index_cast %c2_i32 : i32 to index
    %c0_63 = arith.constant 0 : index
    %c0_64 = arith.constant 0 : index
    %235 = vector.load %arg1[%234, %c0_63, %c0_64] : memref<8x2x1xf32, #tpu.memory_space<vmem>>, vector<1x2x1xf32>
    %236 = vector.shape_cast %235 : vector<1x2x1xf32> to vector<2x1xf32>
    %237 = arith.truncf %160 : vector<2x16xf32> to vector<2x16xbf16>
    %cst_65 = arith.constant dense<0.000000e+00> : vector<2x64xf32>
    %238 = tpu.matmul %237, %3, %cst_65 {dimension_numbers = #tpu.dot_dimension_numbers<[1], [0], [0], [1], [0, 0, 1, 1], [], []>} : vector<2x16xbf16>, vector<16x64xbf16>, vector<2x64xf32> -> vector<2x64xf32>
    %239 = arith.addf %233, %238 : vector<2x64xf32>
    %240 = vector.extract_strided_slice %239 {offsets = [0, 0], sizes = [2, 16], strides = [1, 1]} : vector<2x64xf32> to vector<2x16xf32>
    %241 = arith.negf %240 : vector<2x16xf32>
    %242 = math.exp %241 : vector<2x16xf32>
    %cst_66 = arith.constant 1.000000e+00 : f32
    %243 = vector.broadcast %cst_66 : f32 to vector<2x16xf32>
    %244 = arith.addf %243, %242 : vector<2x16xf32>
    %245 = arith.divf %243, %244 : vector<2x16xf32>
    %246 = vector.extract_strided_slice %239 {offsets = [0, 16], sizes = [2, 16], strides = [1, 1]} : vector<2x64xf32> to vector<2x16xf32>
    %247 = arith.negf %246 : vector<2x16xf32>
    %248 = math.exp %247 : vector<2x16xf32>
    %cst_67 = arith.constant 1.000000e+00 : f32
    %249 = vector.broadcast %cst_67 : f32 to vector<2x16xf32>
    %250 = arith.addf %249, %248 : vector<2x16xf32>
    %251 = arith.divf %249, %250 : vector<2x16xf32>
    %252 = vector.extract_strided_slice %239 {offsets = [0, 32], sizes = [2, 16], strides = [1, 1]} : vector<2x64xf32> to vector<2x16xf32>
    %253 = math.tanh %252 : vector<2x16xf32>
    %254 = vector.extract_strided_slice %239 {offsets = [0, 48], sizes = [2, 16], strides = [1, 1]} : vector<2x64xf32> to vector<2x16xf32>
    %255 = arith.negf %254 : vector<2x16xf32>
    %256 = math.exp %255 : vector<2x16xf32>
    %cst_68 = arith.constant 1.000000e+00 : f32
    %257 = vector.broadcast %cst_68 : f32 to vector<2x16xf32>
    %258 = arith.addf %257, %256 : vector<2x16xf32>
    %259 = arith.divf %257, %258 : vector<2x16xf32>
    %260 = arith.mulf %251, %167 : vector<2x16xf32>
    %261 = arith.mulf %245, %253 : vector<2x16xf32>
    %262 = arith.addf %260, %261 : vector<2x16xf32>
    %263 = math.tanh %262 : vector<2x16xf32>
    %264 = arith.mulf %259, %263 : vector<2x16xf32>
    %265 = vector.broadcast %236 : vector<2x1xf32> to vector<2x16xf32>
    %266 = arith.mulf %265, %264 : vector<2x16xf32>
    %cst_69 = arith.constant 1.000000e+00 : f32
    %267 = vector.broadcast %cst_69 : f32 to vector<2x1xf32>
    %268 = arith.subf %267, %236 : vector<2x1xf32>
    %269 = vector.broadcast %268 : vector<2x1xf32> to vector<2x16xf32>
    %270 = arith.mulf %269, %160 : vector<2x16xf32>
    %271 = arith.addf %266, %270 : vector<2x16xf32>
    %272 = vector.broadcast %236 : vector<2x1xf32> to vector<2x16xf32>
    %273 = arith.mulf %272, %262 : vector<2x16xf32>
    %cst_70 = arith.constant 1.000000e+00 : f32
    %274 = vector.broadcast %cst_70 : f32 to vector<2x1xf32>
    %275 = arith.subf %274, %236 : vector<2x1xf32>
    %276 = vector.broadcast %275 : vector<2x1xf32> to vector<2x16xf32>
    %277 = arith.mulf %276, %167 : vector<2x16xf32>
    %278 = arith.addf %273, %277 : vector<2x16xf32>
    %279 = vector.broadcast %236 : vector<2x1xf32> to vector<2x16xf32>
    %280 = arith.mulf %279, %264 : vector<2x16xf32>
    %281 = arith.truncf %280 : vector<2x16xf32> to vector<2x16xbf16>
    %282 = arith.index_cast %c2_i32 : i32 to index
    %c0_71 = arith.constant 0 : index
    %c0_72 = arith.constant 0 : index
    %283 = vector.load %arg7[%282, %c0_71, %c0_72] : memref<8x2x16xbf16, #tpu.memory_space<vmem>>, vector<1x2x16xbf16>
    %284 = vector.shape_cast %283 : vector<1x2x16xbf16> to vector<2x16xbf16>
    %285 = vector.shape_cast %281 : vector<2x16xbf16> to vector<1x2x16xbf16>
    tpu.vector_store %arg7[%282, %c0_71, %c0_72], %285 {strides = array<i32>} : memref<8x2x16xbf16, #tpu.memory_space<vmem>>, vector<1x2x16xbf16>,
    %c7_i32_73 = arith.constant 7 : i32
    %286 = arith.subi %c7_i32_73, %c2_i32 : i32
    %287 = arith.index_cast %286 : i32 to index
    %c0_74 = arith.constant 0 : index
    %c0_75 = arith.constant 0 : index
    %288 = vector.load %arg4[%287, %c0_74, %c0_75] : memref<8x2x64xf32, #tpu.memory_space<vmem>>, vector<1x2x64xf32>
    %289 = vector.shape_cast %288 : vector<1x2x64xf32> to vector<2x64xf32>
    %290 = arith.index_cast %286 : i32 to index
    %c0_76 = arith.constant 0 : index
    %c0_77 = arith.constant 0 : index
    %291 = vector.load %arg2[%290, %c0_76, %c0_77] : memref<8x2x1xf32, #tpu.memory_space<vmem>>, vector<1x2x1xf32>
    %292 = vector.shape_cast %291 : vector<1x2x1xf32> to vector<2x1xf32>
    %293 = arith.truncf %216 : vector<2x16xf32> to vector<2x16xbf16>
    %cst_78 = arith.constant dense<0.000000e+00> : vector<2x64xf32>
    %294 = tpu.matmul %293, %4, %cst_78 {dimension_numbers = #tpu.dot_dimension_numbers<[1], [0], [0], [1], [0, 0, 1, 1], [], []>} : vector<2x16xbf16>, vector<16x64xbf16>, vector<2x64xf32> -> vector<2x64xf32>
    %295 = arith.addf %289, %294 : vector<2x64xf32>
    %296 = vector.extract_strided_slice %295 {offsets = [0, 0], sizes = [2, 16], strides = [1, 1]} : vector<2x64xf32> to vector<2x16xf32>
    %297 = arith.negf %296 : vector<2x16xf32>
    %298 = math.exp %297 : vector<2x16xf32>
    %cst_79 = arith.constant 1.000000e+00 : f32
    %299 = vector.broadcast %cst_79 : f32 to vector<2x16xf32>
    %300 = arith.addf %299, %298 : vector<2x16xf32>
    %301 = arith.divf %299, %300 : vector<2x16xf32>
    %302 = vector.extract_strided_slice %295 {offsets = [0, 16], sizes = [2, 16], strides = [1, 1]} : vector<2x64xf32> to vector<2x16xf32>
    %303 = arith.negf %302 : vector<2x16xf32>
    %304 = math.exp %303 : vector<2x16xf32>
    %cst_80 = arith.constant 1.000000e+00 : f32
    %305 = vector.broadcast %cst_80 : f32 to vector<2x16xf32>
    %306 = arith.addf %305, %304 : vector<2x16xf32>
    %307 = arith.divf %305, %306 : vector<2x16xf32>
    %308 = vector.extract_strided_slice %295 {offsets = [0, 32], sizes = [2, 16], strides = [1, 1]} : vector<2x64xf32> to vector<2x16xf32>
    %309 = math.tanh %308 : vector<2x16xf32>
    %310 = vector.extract_strided_slice %295 {offsets = [0, 48], sizes = [2, 16], strides = [1, 1]} : vector<2x64xf32> to vector<2x16xf32>
    %311 = arith.negf %310 : vector<2x16xf32>
    %312 = math.exp %311 : vector<2x16xf32>
    %cst_81 = arith.constant 1.000000e+00 : f32
    %313 = vector.broadcast %cst_81 : f32 to vector<2x16xf32>
    %314 = arith.addf %313, %312 : vector<2x16xf32>
    %315 = arith.divf %313, %314 : vector<2x16xf32>
    %316 = arith.mulf %307, %223 : vector<2x16xf32>
    %317 = arith.mulf %301, %309 : vector<2x16xf32>
    %318 = arith.addf %316, %317 : vector<2x16xf32>
    %319 = math.tanh %318 : vector<2x16xf32>
    %320 = arith.mulf %315, %319 : vector<2x16xf32>
    %321 = vector.broadcast %292 : vector<2x1xf32> to vector<2x16xf32>
    %322 = arith.mulf %321, %320 : vector<2x16xf32>
    %cst_82 = arith.constant 1.000000e+00 : f32
    %323 = vector.broadcast %cst_82 : f32 to vector<2x1xf32>
    %324 = arith.subf %323, %292 : vector<2x1xf32>
    %325 = vector.broadcast %324 : vector<2x1xf32> to vector<2x16xf32>
    %326 = arith.mulf %325, %216 : vector<2x16xf32>
    %327 = arith.addf %322, %326 : vector<2x16xf32>
    %328 = vector.broadcast %292 : vector<2x1xf32> to vector<2x16xf32>
    %329 = arith.mulf %328, %318 : vector<2x16xf32>
    %cst_83 = arith.constant 1.000000e+00 : f32
    %330 = vector.broadcast %cst_83 : f32 to vector<2x1xf32>
    %331 = arith.subf %330, %292 : vector<2x1xf32>
    %332 = vector.broadcast %331 : vector<2x1xf32> to vector<2x16xf32>
    %333 = arith.mulf %332, %223 : vector<2x16xf32>
    %334 = arith.addf %329, %333 : vector<2x16xf32>
    %335 = vector.broadcast %292 : vector<2x1xf32> to vector<2x16xf32>
    %336 = arith.mulf %335, %320 : vector<2x16xf32>
    %337 = arith.truncf %336 : vector<2x16xf32> to vector<2x16xbf16>
    %338 = arith.index_cast %286 : i32 to index
    %c0_84 = arith.constant 0 : index
    %c0_85 = arith.constant 0 : index
    %339 = vector.load %arg8[%338, %c0_84, %c0_85] : memref<8x2x16xbf16, #tpu.memory_space<vmem>>, vector<1x2x16xbf16>
    %340 = vector.shape_cast %339 : vector<1x2x16xbf16> to vector<2x16xbf16>
    %341 = vector.shape_cast %337 : vector<2x16xbf16> to vector<1x2x16xbf16>
    tpu.vector_store %arg8[%338, %c0_84, %c0_85], %341 {strides = array<i32>} : memref<8x2x16xbf16, #tpu.memory_space<vmem>>, vector<1x2x16xbf16>,
    %c3_i32 = arith.constant 3 : i32
    %342 = arith.index_cast %c3_i32 : i32 to index
    %c0_86 = arith.constant 0 : index
    %c0_87 = arith.constant 0 : index
    %343 = vector.load %arg3[%342, %c0_86, %c0_87] : memref<8x2x64xf32, #tpu.memory_space<vmem>>, vector<1x2x64xf32>
    %344 = vector.shape_cast %343 : vector<1x2x64xf32> to vector<2x64xf32>
    %345 = arith.index_cast %c3_i32 : i32 to index
    %c0_88 = arith.constant 0 : index
    %c0_89 = arith.constant 0 : index
    %346 = vector.load %arg1[%345, %c0_88, %c0_89] : memref<8x2x1xf32, #tpu.memory_space<vmem>>, vector<1x2x1xf32>
    %347 = vector.shape_cast %346 : vector<1x2x1xf32> to vector<2x1xf32>
    %348 = arith.truncf %271 : vector<2x16xf32> to vector<2x16xbf16>
    %cst_90 = arith.constant dense<0.000000e+00> : vector<2x64xf32>
    %349 = tpu.matmul %348, %3, %cst_90 {dimension_numbers = #tpu.dot_dimension_numbers<[1], [0], [0], [1], [0, 0, 1, 1], [], []>} : vector<2x16xbf16>, vector<16x64xbf16>, vector<2x64xf32> -> vector<2x64xf32>
    %350 = arith.addf %344, %349 : vector<2x64xf32>
    %351 = vector.extract_strided_slice %350 {offsets = [0, 0], sizes = [2, 16], strides = [1, 1]} : vector<2x64xf32> to vector<2x16xf32>
    %352 = arith.negf %351 : vector<2x16xf32>
    %353 = math.exp %352 : vector<2x16xf32>
    %cst_91 = arith.constant 1.000000e+00 : f32
    %354 = vector.broadcast %cst_91 : f32 to vector<2x16xf32>
    %355 = arith.addf %354, %353 : vector<2x16xf32>
    %356 = arith.divf %354, %355 : vector<2x16xf32>
    %357 = vector.extract_strided_slice %350 {offsets = [0, 16], sizes = [2, 16], strides = [1, 1]} : vector<2x64xf32> to vector<2x16xf32>
    %358 = arith.negf %357 : vector<2x16xf32>
    %359 = math.exp %358 : vector<2x16xf32>
    %cst_92 = arith.constant 1.000000e+00 : f32
    %360 = vector.broadcast %cst_92 : f32 to vector<2x16xf32>
    %361 = arith.addf %360, %359 : vector<2x16xf32>
    %362 = arith.divf %360, %361 : vector<2x16xf32>
    %363 = vector.extract_strided_slice %350 {offsets = [0, 32], sizes = [2, 16], strides = [1, 1]} : vector<2x64xf32> to vector<2x16xf32>
    %364 = math.tanh %363 : vector<2x16xf32>
    %365 = vector.extract_strided_slice %350 {offsets = [0, 48], sizes = [2, 16], strides = [1, 1]} : vector<2x64xf32> to vector<2x16xf32>
    %366 = arith.negf %365 : vector<2x16xf32>
    %367 = math.exp %366 : vector<2x16xf32>
    %cst_93 = arith.constant 1.000000e+00 : f32
    %368 = vector.broadcast %cst_93 : f32 to vector<2x16xf32>
    %369 = arith.addf %368, %367 : vector<2x16xf32>
    %370 = arith.divf %368, %369 : vector<2x16xf32>
    %371 = arith.mulf %362, %278 : vector<2x16xf32>
    %372 = arith.mulf %356, %364 : vector<2x16xf32>
    %373 = arith.addf %371, %372 : vector<2x16xf32>
    %374 = math.tanh %373 : vector<2x16xf32>
    %375 = arith.mulf %370, %374 : vector<2x16xf32>
    %376 = vector.broadcast %347 : vector<2x1xf32> to vector<2x16xf32>
    %377 = arith.mulf %376, %375 : vector<2x16xf32>
    %cst_94 = arith.constant 1.000000e+00 : f32
    %378 = vector.broadcast %cst_94 : f32 to vector<2x1xf32>
    %379 = arith.subf %378, %347 : vector<2x1xf32>
    %380 = vector.broadcast %379 : vector<2x1xf32> to vector<2x16xf32>
    %381 = arith.mulf %380, %271 : vector<2x16xf32>
    %382 = arith.addf %377, %381 : vector<2x16xf32>
    %383 = vector.broadcast %347 : vector<2x1xf32> to vector<2x16xf32>
    %384 = arith.mulf %383, %373 : vector<2x16xf32>
    %cst_95 = arith.constant 1.000000e+00 : f32
    %385 = vector.broadcast %cst_95 : f32 to vector<2x1xf32>
    %386 = arith.subf %385, %347 : vector<2x1xf32>
    %387 = vector.broadcast %386 : vector<2x1xf32> to vector<2x16xf32>
    %388 = arith.mulf %387, %278 : vector<2x16xf32>
    %389 = arith.addf %384, %388 : vector<2x16xf32>
    %390 = vector.broadcast %347 : vector<2x1xf32> to vector<2x16xf32>
    %391 = arith.mulf %390, %375 : vector<2x16xf32>
    %392 = arith.truncf %391 : vector<2x16xf32> to vector<2x16xbf16>
    %393 = arith.index_cast %c3_i32 : i32 to index
    %c0_96 = arith.constant 0 : index
    %c0_97 = arith.constant 0 : index
    %394 = vector.load %arg7[%393, %c0_96, %c0_97] : memref<8x2x16xbf16, #tpu.memory_space<vmem>>, vector<1x2x16xbf16>
    %395 = vector.shape_cast %394 : vector<1x2x16xbf16> to vector<2x16xbf16>
    %396 = vector.shape_cast %392 : vector<2x16xbf16> to vector<1x2x16xbf16>
    tpu.vector_store %arg7[%393, %c0_96, %c0_97], %396 {strides = array<i32>} : memref<8x2x16xbf16, #tpu.memory_space<vmem>>, vector<1x2x16xbf16>,
    %c7_i32_98 = arith.constant 7 : i32
    %397 = arith.subi %c7_i32_98, %c3_i32 : i32
    %398 = arith.index_cast %397 : i32 to index
    %c0_99 = arith.constant 0 : index
    %c0_100 = arith.constant 0 : index
    %399 = vector.load %arg4[%398, %c0_99, %c0_100] : memref<8x2x64xf32, #tpu.memory_space<vmem>>, vector<1x2x64xf32>
    %400 = vector.shape_cast %399 : vector<1x2x64xf32> to vector<2x64xf32>
    %401 = arith.index_cast %397 : i32 to index
    %c0_101 = arith.constant 0 : index
    %c0_102 = arith.constant 0 : index
    %402 = vector.load %arg2[%401, %c0_101, %c0_102] : memref<8x2x1xf32, #tpu.memory_space<vmem>>, vector<1x2x1xf32>
    %403 = vector.shape_cast %402 : vector<1x2x1xf32> to vector<2x1xf32>
    %404 = arith.truncf %327 : vector<2x16xf32> to vector<2x16xbf16>
    %cst_103 = arith.constant dense<0.000000e+00> : vector<2x64xf32>
    %405 = tpu.matmul %404, %4, %cst_103 {dimension_numbers = #tpu.dot_dimension_numbers<[1], [0], [0], [1], [0, 0, 1, 1], [], []>} : vector<2x16xbf16>, vector<16x64xbf16>, vector<2x64xf32> -> vector<2x64xf32>
    %406 = arith.addf %400, %405 : vector<2x64xf32>
    %407 = vector.extract_strided_slice %406 {offsets = [0, 0], sizes = [2, 16], strides = [1, 1]} : vector<2x64xf32> to vector<2x16xf32>
    %408 = arith.negf %407 : vector<2x16xf32>
    %409 = math.exp %408 : vector<2x16xf32>
    %cst_104 = arith.constant 1.000000e+00 : f32
    %410 = vector.broadcast %cst_104 : f32 to vector<2x16xf32>
    %411 = arith.addf %410, %409 : vector<2x16xf32>
    %412 = arith.divf %410, %411 : vector<2x16xf32>
    %413 = vector.extract_strided_slice %406 {offsets = [0, 16], sizes = [2, 16], strides = [1, 1]} : vector<2x64xf32> to vector<2x16xf32>
    %414 = arith.negf %413 : vector<2x16xf32>
    %415 = math.exp %414 : vector<2x16xf32>
    %cst_105 = arith.constant 1.000000e+00 : f32
    %416 = vector.broadcast %cst_105 : f32 to vector<2x16xf32>
    %417 = arith.addf %416, %415 : vector<2x16xf32>
    %418 = arith.divf %416, %417 : vector<2x16xf32>
    %419 = vector.extract_strided_slice %406 {offsets = [0, 32], sizes = [2, 16], strides = [1, 1]} : vector<2x64xf32> to vector<2x16xf32>
    %420 = math.tanh %419 : vector<2x16xf32>
    %421 = vector.extract_strided_slice %406 {offsets = [0, 48], sizes = [2, 16], strides = [1, 1]} : vector<2x64xf32> to vector<2x16xf32>
    %422 = arith.negf %421 : vector<2x16xf32>
    %423 = math.exp %422 : vector<2x16xf32>
    %cst_106 = arith.constant 1.000000e+00 : f32
    %424 = vector.broadcast %cst_106 : f32 to vector<2x16xf32>
    %425 = arith.addf %424, %423 : vector<2x16xf32>
    %426 = arith.divf %424, %425 : vector<2x16xf32>
    %427 = arith.mulf %418, %334 : vector<2x16xf32>
    %428 = arith.mulf %412, %420 : vector<2x16xf32>
    %429 = arith.addf %427, %428 : vector<2x16xf32>
    %430 = math.tanh %429 : vector<2x16xf32>
    %431 = arith.mulf %426, %430 : vector<2x16xf32>
    %432 = vector.broadcast %403 : vector<2x1xf32> to vector<2x16xf32>
    %433 = arith.mulf %432, %431 : vector<2x16xf32>
    %cst_107 = arith.constant 1.000000e+00 : f32
    %434 = vector.broadcast %cst_107 : f32 to vector<2x1xf32>
    %435 = arith.subf %434, %403 : vector<2x1xf32>
    %436 = vector.broadcast %435 : vector<2x1xf32> to vector<2x16xf32>
    %437 = arith.mulf %436, %327 : vector<2x16xf32>
    %438 = arith.addf %433, %437 : vector<2x16xf32>
    %439 = vector.broadcast %403 : vector<2x1xf32> to vector<2x16xf32>
    %440 = arith.mulf %439, %429 : vector<2x16xf32>
    %cst_108 = arith.constant 1.000000e+00 : f32
    %441 = vector.broadcast %cst_108 : f32 to vector<2x1xf32>
    %442 = arith.subf %441, %403 : vector<2x1xf32>
    %443 = vector.broadcast %442 : vector<2x1xf32> to vector<2x16xf32>
    %444 = arith.mulf %443, %334 : vector<2x16xf32>
    %445 = arith.addf %440, %444 : vector<2x16xf32>
    %446 = vector.broadcast %403 : vector<2x1xf32> to vector<2x16xf32>
    %447 = arith.mulf %446, %431 : vector<2x16xf32>
    %448 = arith.truncf %447 : vector<2x16xf32> to vector<2x16xbf16>
    %449 = arith.index_cast %397 : i32 to index
    %c0_109 = arith.constant 0 : index
    %c0_110 = arith.constant 0 : index
    %450 = vector.load %arg8[%449, %c0_109, %c0_110] : memref<8x2x16xbf16, #tpu.memory_space<vmem>>, vector<1x2x16xbf16>
    %451 = vector.shape_cast %450 : vector<1x2x16xbf16> to vector<2x16xbf16>
    %452 = vector.shape_cast %448 : vector<2x16xbf16> to vector<1x2x16xbf16>
    tpu.vector_store %arg8[%449, %c0_109, %c0_110], %452 {strides = array<i32>} : memref<8x2x16xbf16, #tpu.memory_space<vmem>>, vector<1x2x16xbf16>,
    %c4_i32 = arith.constant 4 : i32
    %453 = arith.index_cast %c4_i32 : i32 to index
    %c0_111 = arith.constant 0 : index
    %c0_112 = arith.constant 0 : index
    %454 = vector.load %arg3[%453, %c0_111, %c0_112] : memref<8x2x64xf32, #tpu.memory_space<vmem>>, vector<1x2x64xf32>
    %455 = vector.shape_cast %454 : vector<1x2x64xf32> to vector<2x64xf32>
    %456 = arith.index_cast %c4_i32 : i32 to index
    %c0_113 = arith.constant 0 : index
    %c0_114 = arith.constant 0 : index
    %457 = vector.load %arg1[%456, %c0_113, %c0_114] : memref<8x2x1xf32, #tpu.memory_space<vmem>>, vector<1x2x1xf32>
    %458 = vector.shape_cast %457 : vector<1x2x1xf32> to vector<2x1xf32>
    %459 = arith.truncf %382 : vector<2x16xf32> to vector<2x16xbf16>
    %cst_115 = arith.constant dense<0.000000e+00> : vector<2x64xf32>
    %460 = tpu.matmul %459, %3, %cst_115 {dimension_numbers = #tpu.dot_dimension_numbers<[1], [0], [0], [1], [0, 0, 1, 1], [], []>} : vector<2x16xbf16>, vector<16x64xbf16>, vector<2x64xf32> -> vector<2x64xf32>
    %461 = arith.addf %455, %460 : vector<2x64xf32>
    %462 = vector.extract_strided_slice %461 {offsets = [0, 0], sizes = [2, 16], strides = [1, 1]} : vector<2x64xf32> to vector<2x16xf32>
    %463 = arith.negf %462 : vector<2x16xf32>
    %464 = math.exp %463 : vector<2x16xf32>
    %cst_116 = arith.constant 1.000000e+00 : f32
    %465 = vector.broadcast %cst_116 : f32 to vector<2x16xf32>
    %466 = arith.addf %465, %464 : vector<2x16xf32>
    %467 = arith.divf %465, %466 : vector<2x16xf32>
    %468 = vector.extract_strided_slice %461 {offsets = [0, 16], sizes = [2, 16], strides = [1, 1]} : vector<2x64xf32> to vector<2x16xf32>
    %469 = arith.negf %468 : vector<2x16xf32>
    %470 = math.exp %469 : vector<2x16xf32>
    %cst_117 = arith.constant 1.000000e+00 : f32
    %471 = vector.broadcast %cst_117 : f32 to vector<2x16xf32>
    %472 = arith.addf %471, %470 : vector<2x16xf32>
    %473 = arith.divf %471, %472 : vector<2x16xf32>
    %474 = vector.extract_strided_slice %461 {offsets = [0, 32], sizes = [2, 16], strides = [1, 1]} : vector<2x64xf32> to vector<2x16xf32>
    %475 = math.tanh %474 : vector<2x16xf32>
    %476 = vector.extract_strided_slice %461 {offsets = [0, 48], sizes = [2, 16], strides = [1, 1]} : vector<2x64xf32> to vector<2x16xf32>
    %477 = arith.negf %476 : vector<2x16xf32>
    %478 = math.exp %477 : vector<2x16xf32>
    %cst_118 = arith.constant 1.000000e+00 : f32
    %479 = vector.broadcast %cst_118 : f32 to vector<2x16xf32>
    %480 = arith.addf %479, %478 : vector<2x16xf32>
    %481 = arith.divf %479, %480 : vector<2x16xf32>
    %482 = arith.mulf %473, %389 : vector<2x16xf32>
    %483 = arith.mulf %467, %475 : vector<2x16xf32>
    %484 = arith.addf %482, %483 : vector<2x16xf32>
    %485 = math.tanh %484 : vector<2x16xf32>
    %486 = arith.mulf %481, %485 : vector<2x16xf32>
    %487 = vector.broadcast %458 : vector<2x1xf32> to vector<2x16xf32>
    %488 = arith.mulf %487, %486 : vector<2x16xf32>
    %cst_119 = arith.constant 1.000000e+00 : f32
    %489 = vector.broadcast %cst_119 : f32 to vector<2x1xf32>
    %490 = arith.subf %489, %458 : vector<2x1xf32>
    %491 = vector.broadcast %490 : vector<2x1xf32> to vector<2x16xf32>
    %492 = arith.mulf %491, %382 : vector<2x16xf32>
    %493 = arith.addf %488, %492 : vector<2x16xf32>
    %494 = vector.broadcast %458 : vector<2x1xf32> to vector<2x16xf32>
    %495 = arith.mulf %494, %484 : vector<2x16xf32>
    %cst_120 = arith.constant 1.000000e+00 : f32
    %496 = vector.broadcast %cst_120 : f32 to vector<2x1xf32>
    %497 = arith.subf %496, %458 : vector<2x1xf32>
    %498 = vector.broadcast %497 : vector<2x1xf32> to vector<2x16xf32>
    %499 = arith.mulf %498, %389 : vector<2x16xf32>
    %500 = arith.addf %495, %499 : vector<2x16xf32>
    %501 = vector.broadcast %458 : vector<2x1xf32> to vector<2x16xf32>
    %502 = arith.mulf %501, %486 : vector<2x16xf32>
    %503 = arith.truncf %502 : vector<2x16xf32> to vector<2x16xbf16>
    %504 = arith.index_cast %c4_i32 : i32 to index
    %c0_121 = arith.constant 0 : index
    %c0_122 = arith.constant 0 : index
    %505 = vector.load %arg7[%504, %c0_121, %c0_122] : memref<8x2x16xbf16, #tpu.memory_space<vmem>>, vector<1x2x16xbf16>
    %506 = vector.shape_cast %505 : vector<1x2x16xbf16> to vector<2x16xbf16>
    %507 = vector.shape_cast %503 : vector<2x16xbf16> to vector<1x2x16xbf16>
    tpu.vector_store %arg7[%504, %c0_121, %c0_122], %507 {strides = array<i32>} : memref<8x2x16xbf16, #tpu.memory_space<vmem>>, vector<1x2x16xbf16>,
    %c7_i32_123 = arith.constant 7 : i32
    %508 = arith.subi %c7_i32_123, %c4_i32 : i32
    %509 = arith.index_cast %508 : i32 to index
    %c0_124 = arith.constant 0 : index
    %c0_125 = arith.constant 0 : index
    %510 = vector.load %arg4[%509, %c0_124, %c0_125] : memref<8x2x64xf32, #tpu.memory_space<vmem>>, vector<1x2x64xf32>
    %511 = vector.shape_cast %510 : vector<1x2x64xf32> to vector<2x64xf32>
    %512 = arith.index_cast %508 : i32 to index
    %c0_126 = arith.constant 0 : index
    %c0_127 = arith.constant 0 : index
    %513 = vector.load %arg2[%512, %c0_126, %c0_127] : memref<8x2x1xf32, #tpu.memory_space<vmem>>, vector<1x2x1xf32>
    %514 = vector.shape_cast %513 : vector<1x2x1xf32> to vector<2x1xf32>
    %515 = arith.truncf %438 : vector<2x16xf32> to vector<2x16xbf16>
    %cst_128 = arith.constant dense<0.000000e+00> : vector<2x64xf32>
    %516 = tpu.matmul %515, %4, %cst_128 {dimension_numbers = #tpu.dot_dimension_numbers<[1], [0], [0], [1], [0, 0, 1, 1], [], []>} : vector<2x16xbf16>, vector<16x64xbf16>, vector<2x64xf32> -> vector<2x64xf32>
    %517 = arith.addf %511, %516 : vector<2x64xf32>
    %518 = vector.extract_strided_slice %517 {offsets = [0, 0], sizes = [2, 16], strides = [1, 1]} : vector<2x64xf32> to vector<2x16xf32>
    %519 = arith.negf %518 : vector<2x16xf32>
    %520 = math.exp %519 : vector<2x16xf32>
    %cst_129 = arith.constant 1.000000e+00 : f32
    %521 = vector.broadcast %cst_129 : f32 to vector<2x16xf32>
    %522 = arith.addf %521, %520 : vector<2x16xf32>
    %523 = arith.divf %521, %522 : vector<2x16xf32>
    %524 = vector.extract_strided_slice %517 {offsets = [0, 16], sizes = [2, 16], strides = [1, 1]} : vector<2x64xf32> to vector<2x16xf32>
    %525 = arith.negf %524 : vector<2x16xf32>
    %526 = math.exp %525 : vector<2x16xf32>
    %cst_130 = arith.constant 1.000000e+00 : f32
    %527 = vector.broadcast %cst_130 : f32 to vector<2x16xf32>
    %528 = arith.addf %527, %526 : vector<2x16xf32>
    %529 = arith.divf %527, %528 : vector<2x16xf32>
    %530 = vector.extract_strided_slice %517 {offsets = [0, 32], sizes = [2, 16], strides = [1, 1]} : vector<2x64xf32> to vector<2x16xf32>
    %531 = math.tanh %530 : vector<2x16xf32>
    %532 = vector.extract_strided_slice %517 {offsets = [0, 48], sizes = [2, 16], strides = [1, 1]} : vector<2x64xf32> to vector<2x16xf32>
    %533 = arith.negf %532 : vector<2x16xf32>
    %534 = math.exp %533 : vector<2x16xf32>
    %cst_131 = arith.constant 1.000000e+00 : f32
    %535 = vector.broadcast %cst_131 : f32 to vector<2x16xf32>
    %536 = arith.addf %535, %534 : vector<2x16xf32>
    %537 = arith.divf %535, %536 : vector<2x16xf32>
    %538 = arith.mulf %529, %445 : vector<2x16xf32>
    %539 = arith.mulf %523, %531 : vector<2x16xf32>
    %540 = arith.addf %538, %539 : vector<2x16xf32>
    %541 = math.tanh %540 : vector<2x16xf32>
    %542 = arith.mulf %537, %541 : vector<2x16xf32>
    %543 = vector.broadcast %514 : vector<2x1xf32> to vector<2x16xf32>
    %544 = arith.mulf %543, %542 : vector<2x16xf32>
    %cst_132 = arith.constant 1.000000e+00 : f32
    %545 = vector.broadcast %cst_132 : f32 to vector<2x1xf32>
    %546 = arith.subf %545, %514 : vector<2x1xf32>
    %547 = vector.broadcast %546 : vector<2x1xf32> to vector<2x16xf32>
    %548 = arith.mulf %547, %438 : vector<2x16xf32>
    %549 = arith.addf %544, %548 : vector<2x16xf32>
    %550 = vector.broadcast %514 : vector<2x1xf32> to vector<2x16xf32>
    %551 = arith.mulf %550, %540 : vector<2x16xf32>
    %cst_133 = arith.constant 1.000000e+00 : f32
    %552 = vector.broadcast %cst_133 : f32 to vector<2x1xf32>
    %553 = arith.subf %552, %514 : vector<2x1xf32>
    %554 = vector.broadcast %553 : vector<2x1xf32> to vector<2x16xf32>
    %555 = arith.mulf %554, %445 : vector<2x16xf32>
    %556 = arith.addf %551, %555 : vector<2x16xf32>
    %557 = vector.broadcast %514 : vector<2x1xf32> to vector<2x16xf32>
    %558 = arith.mulf %557, %542 : vector<2x16xf32>
    %559 = arith.truncf %558 : vector<2x16xf32> to vector<2x16xbf16>
    %560 = arith.index_cast %508 : i32 to index
    %c0_134 = arith.constant 0 : index
    %c0_135 = arith.constant 0 : index
    %561 = vector.load %arg8[%560, %c0_134, %c0_135] : memref<8x2x16xbf16, #tpu.memory_space<vmem>>, vector<1x2x16xbf16>
    %562 = vector.shape_cast %561 : vector<1x2x16xbf16> to vector<2x16xbf16>
    %563 = vector.shape_cast %559 : vector<2x16xbf16> to vector<1x2x16xbf16>
    tpu.vector_store %arg8[%560, %c0_134, %c0_135], %563 {strides = array<i32>} : memref<8x2x16xbf16, #tpu.memory_space<vmem>>, vector<1x2x16xbf16>,
    %c5_i32 = arith.constant 5 : i32
    %564 = arith.index_cast %c5_i32 : i32 to index
    %c0_136 = arith.constant 0 : index
    %c0_137 = arith.constant 0 : index
    %565 = vector.load %arg3[%564, %c0_136, %c0_137] : memref<8x2x64xf32, #tpu.memory_space<vmem>>, vector<1x2x64xf32>
    %566 = vector.shape_cast %565 : vector<1x2x64xf32> to vector<2x64xf32>
    %567 = arith.index_cast %c5_i32 : i32 to index
    %c0_138 = arith.constant 0 : index
    %c0_139 = arith.constant 0 : index
    %568 = vector.load %arg1[%567, %c0_138, %c0_139] : memref<8x2x1xf32, #tpu.memory_space<vmem>>, vector<1x2x1xf32>
    %569 = vector.shape_cast %568 : vector<1x2x1xf32> to vector<2x1xf32>
    %570 = arith.truncf %493 : vector<2x16xf32> to vector<2x16xbf16>
    %cst_140 = arith.constant dense<0.000000e+00> : vector<2x64xf32>
    %571 = tpu.matmul %570, %3, %cst_140 {dimension_numbers = #tpu.dot_dimension_numbers<[1], [0], [0], [1], [0, 0, 1, 1], [], []>} : vector<2x16xbf16>, vector<16x64xbf16>, vector<2x64xf32> -> vector<2x64xf32>
    %572 = arith.addf %566, %571 : vector<2x64xf32>
    %573 = vector.extract_strided_slice %572 {offsets = [0, 0], sizes = [2, 16], strides = [1, 1]} : vector<2x64xf32> to vector<2x16xf32>
    %574 = arith.negf %573 : vector<2x16xf32>
    %575 = math.exp %574 : vector<2x16xf32>
    %cst_141 = arith.constant 1.000000e+00 : f32
    %576 = vector.broadcast %cst_141 : f32 to vector<2x16xf32>
    %577 = arith.addf %576, %575 : vector<2x16xf32>
    %578 = arith.divf %576, %577 : vector<2x16xf32>
    %579 = vector.extract_strided_slice %572 {offsets = [0, 16], sizes = [2, 16], strides = [1, 1]} : vector<2x64xf32> to vector<2x16xf32>
    %580 = arith.negf %579 : vector<2x16xf32>
    %581 = math.exp %580 : vector<2x16xf32>
    %cst_142 = arith.constant 1.000000e+00 : f32
    %582 = vector.broadcast %cst_142 : f32 to vector<2x16xf32>
    %583 = arith.addf %582, %581 : vector<2x16xf32>
    %584 = arith.divf %582, %583 : vector<2x16xf32>
    %585 = vector.extract_strided_slice %572 {offsets = [0, 32], sizes = [2, 16], strides = [1, 1]} : vector<2x64xf32> to vector<2x16xf32>
    %586 = math.tanh %585 : vector<2x16xf32>
    %587 = vector.extract_strided_slice %572 {offsets = [0, 48], sizes = [2, 16], strides = [1, 1]} : vector<2x64xf32> to vector<2x16xf32>
    %588 = arith.negf %587 : vector<2x16xf32>
    %589 = math.exp %588 : vector<2x16xf32>
    %cst_143 = arith.constant 1.000000e+00 : f32
    %590 = vector.broadcast %cst_143 : f32 to vector<2x16xf32>
    %591 = arith.addf %590, %589 : vector<2x16xf32>
    %592 = arith.divf %590, %591 : vector<2x16xf32>
    %593 = arith.mulf %584, %500 : vector<2x16xf32>
    %594 = arith.mulf %578, %586 : vector<2x16xf32>
    %595 = arith.addf %593, %594 : vector<2x16xf32>
    %596 = math.tanh %595 : vector<2x16xf32>
    %597 = arith.mulf %592, %596 : vector<2x16xf32>
    %598 = vector.broadcast %569 : vector<2x1xf32> to vector<2x16xf32>
    %599 = arith.mulf %598, %597 : vector<2x16xf32>
    %cst_144 = arith.constant 1.000000e+00 : f32
    %600 = vector.broadcast %cst_144 : f32 to vector<2x1xf32>
    %601 = arith.subf %600, %569 : vector<2x1xf32>
    %602 = vector.broadcast %601 : vector<2x1xf32> to vector<2x16xf32>
    %603 = arith.mulf %602, %493 : vector<2x16xf32>
    %604 = arith.addf %599, %603 : vector<2x16xf32>
    %605 = vector.broadcast %569 : vector<2x1xf32> to vector<2x16xf32>
    %606 = arith.mulf %605, %595 : vector<2x16xf32>
    %cst_145 = arith.constant 1.000000e+00 : f32
    %607 = vector.broadcast %cst_145 : f32 to vector<2x1xf32>
    %608 = arith.subf %607, %569 : vector<2x1xf32>
    %609 = vector.broadcast %608 : vector<2x1xf32> to vector<2x16xf32>
    %610 = arith.mulf %609, %500 : vector<2x16xf32>
    %611 = arith.addf %606, %610 : vector<2x16xf32>
    %612 = vector.broadcast %569 : vector<2x1xf32> to vector<2x16xf32>
    %613 = arith.mulf %612, %597 : vector<2x16xf32>
    %614 = arith.truncf %613 : vector<2x16xf32> to vector<2x16xbf16>
    %615 = arith.index_cast %c5_i32 : i32 to index
    %c0_146 = arith.constant 0 : index
    %c0_147 = arith.constant 0 : index
    %616 = vector.load %arg7[%615, %c0_146, %c0_147] : memref<8x2x16xbf16, #tpu.memory_space<vmem>>, vector<1x2x16xbf16>
    %617 = vector.shape_cast %616 : vector<1x2x16xbf16> to vector<2x16xbf16>
    %618 = vector.shape_cast %614 : vector<2x16xbf16> to vector<1x2x16xbf16>
    tpu.vector_store %arg7[%615, %c0_146, %c0_147], %618 {strides = array<i32>} : memref<8x2x16xbf16, #tpu.memory_space<vmem>>, vector<1x2x16xbf16>,
    %c7_i32_148 = arith.constant 7 : i32
    %619 = arith.subi %c7_i32_148, %c5_i32 : i32
    %620 = arith.index_cast %619 : i32 to index
    %c0_149 = arith.constant 0 : index
    %c0_150 = arith.constant 0 : index
    %621 = vector.load %arg4[%620, %c0_149, %c0_150] : memref<8x2x64xf32, #tpu.memory_space<vmem>>, vector<1x2x64xf32>
    %622 = vector.shape_cast %621 : vector<1x2x64xf32> to vector<2x64xf32>
    %623 = arith.index_cast %619 : i32 to index
    %c0_151 = arith.constant 0 : index
    %c0_152 = arith.constant 0 : index
    %624 = vector.load %arg2[%623, %c0_151, %c0_152] : memref<8x2x1xf32, #tpu.memory_space<vmem>>, vector<1x2x1xf32>
    %625 = vector.shape_cast %624 : vector<1x2x1xf32> to vector<2x1xf32>
    %626 = arith.truncf %549 : vector<2x16xf32> to vector<2x16xbf16>
    %cst_153 = arith.constant dense<0.000000e+00> : vector<2x64xf32>
    %627 = tpu.matmul %626, %4, %cst_153 {dimension_numbers = #tpu.dot_dimension_numbers<[1], [0], [0], [1], [0, 0, 1, 1], [], []>} : vector<2x16xbf16>, vector<16x64xbf16>, vector<2x64xf32> -> vector<2x64xf32>
    %628 = arith.addf %622, %627 : vector<2x64xf32>
    %629 = vector.extract_strided_slice %628 {offsets = [0, 0], sizes = [2, 16], strides = [1, 1]} : vector<2x64xf32> to vector<2x16xf32>
    %630 = arith.negf %629 : vector<2x16xf32>
    %631 = math.exp %630 : vector<2x16xf32>
    %cst_154 = arith.constant 1.000000e+00 : f32
    %632 = vector.broadcast %cst_154 : f32 to vector<2x16xf32>
    %633 = arith.addf %632, %631 : vector<2x16xf32>
    %634 = arith.divf %632, %633 : vector<2x16xf32>
    %635 = vector.extract_strided_slice %628 {offsets = [0, 16], sizes = [2, 16], strides = [1, 1]} : vector<2x64xf32> to vector<2x16xf32>
    %636 = arith.negf %635 : vector<2x16xf32>
    %637 = math.exp %636 : vector<2x16xf32>
    %cst_155 = arith.constant 1.000000e+00 : f32
    %638 = vector.broadcast %cst_155 : f32 to vector<2x16xf32>
    %639 = arith.addf %638, %637 : vector<2x16xf32>
    %640 = arith.divf %638, %639 : vector<2x16xf32>
    %641 = vector.extract_strided_slice %628 {offsets = [0, 32], sizes = [2, 16], strides = [1, 1]} : vector<2x64xf32> to vector<2x16xf32>
    %642 = math.tanh %641 : vector<2x16xf32>
    %643 = vector.extract_strided_slice %628 {offsets = [0, 48], sizes = [2, 16], strides = [1, 1]} : vector<2x64xf32> to vector<2x16xf32>
    %644 = arith.negf %643 : vector<2x16xf32>
    %645 = math.exp %644 : vector<2x16xf32>
    %cst_156 = arith.constant 1.000000e+00 : f32
    %646 = vector.broadcast %cst_156 : f32 to vector<2x16xf32>
    %647 = arith.addf %646, %645 : vector<2x16xf32>
    %648 = arith.divf %646, %647 : vector<2x16xf32>
    %649 = arith.mulf %640, %556 : vector<2x16xf32>
    %650 = arith.mulf %634, %642 : vector<2x16xf32>
    %651 = arith.addf %649, %650 : vector<2x16xf32>
    %652 = math.tanh %651 : vector<2x16xf32>
    %653 = arith.mulf %648, %652 : vector<2x16xf32>
    %654 = vector.broadcast %625 : vector<2x1xf32> to vector<2x16xf32>
    %655 = arith.mulf %654, %653 : vector<2x16xf32>
    %cst_157 = arith.constant 1.000000e+00 : f32
    %656 = vector.broadcast %cst_157 : f32 to vector<2x1xf32>
    %657 = arith.subf %656, %625 : vector<2x1xf32>
    %658 = vector.broadcast %657 : vector<2x1xf32> to vector<2x16xf32>
    %659 = arith.mulf %658, %549 : vector<2x16xf32>
    %660 = arith.addf %655, %659 : vector<2x16xf32>
    %661 = vector.broadcast %625 : vector<2x1xf32> to vector<2x16xf32>
    %662 = arith.mulf %661, %651 : vector<2x16xf32>
    %cst_158 = arith.constant 1.000000e+00 : f32
    %663 = vector.broadcast %cst_158 : f32 to vector<2x1xf32>
    %664 = arith.subf %663, %625 : vector<2x1xf32>
    %665 = vector.broadcast %664 : vector<2x1xf32> to vector<2x16xf32>
    %666 = arith.mulf %665, %556 : vector<2x16xf32>
    %667 = arith.addf %662, %666 : vector<2x16xf32>
    %668 = vector.broadcast %625 : vector<2x1xf32> to vector<2x16xf32>
    %669 = arith.mulf %668, %653 : vector<2x16xf32>
    %670 = arith.truncf %669 : vector<2x16xf32> to vector<2x16xbf16>
    %671 = arith.index_cast %619 : i32 to index
    %c0_159 = arith.constant 0 : index
    %c0_160 = arith.constant 0 : index
    %672 = vector.load %arg8[%671, %c0_159, %c0_160] : memref<8x2x16xbf16, #tpu.memory_space<vmem>>, vector<1x2x16xbf16>
    %673 = vector.shape_cast %672 : vector<1x2x16xbf16> to vector<2x16xbf16>
    %674 = vector.shape_cast %670 : vector<2x16xbf16> to vector<1x2x16xbf16>
    tpu.vector_store %arg8[%671, %c0_159, %c0_160], %674 {strides = array<i32>} : memref<8x2x16xbf16, #tpu.memory_space<vmem>>, vector<1x2x16xbf16>,
    %c6_i32 = arith.constant 6 : i32
    %675 = arith.index_cast %c6_i32 : i32 to index
    %c0_161 = arith.constant 0 : index
    %c0_162 = arith.constant 0 : index
    %676 = vector.load %arg3[%675, %c0_161, %c0_162] : memref<8x2x64xf32, #tpu.memory_space<vmem>>, vector<1x2x64xf32>
    %677 = vector.shape_cast %676 : vector<1x2x64xf32> to vector<2x64xf32>
    %678 = arith.index_cast %c6_i32 : i32 to index
    %c0_163 = arith.constant 0 : index
    %c0_164 = arith.constant 0 : index
    %679 = vector.load %arg1[%678, %c0_163, %c0_164] : memref<8x2x1xf32, #tpu.memory_space<vmem>>, vector<1x2x1xf32>
    %680 = vector.shape_cast %679 : vector<1x2x1xf32> to vector<2x1xf32>
    %681 = arith.truncf %604 : vector<2x16xf32> to vector<2x16xbf16>
    %cst_165 = arith.constant dense<0.000000e+00> : vector<2x64xf32>
    %682 = tpu.matmul %681, %3, %cst_165 {dimension_numbers = #tpu.dot_dimension_numbers<[1], [0], [0], [1], [0, 0, 1, 1], [], []>} : vector<2x16xbf16>, vector<16x64xbf16>, vector<2x64xf32> -> vector<2x64xf32>
    %683 = arith.addf %677, %682 : vector<2x64xf32>
    %684 = vector.extract_strided_slice %683 {offsets = [0, 0], sizes = [2, 16], strides = [1, 1]} : vector<2x64xf32> to vector<2x16xf32>
    %685 = arith.negf %684 : vector<2x16xf32>
    %686 = math.exp %685 : vector<2x16xf32>
    %cst_166 = arith.constant 1.000000e+00 : f32
    %687 = vector.broadcast %cst_166 : f32 to vector<2x16xf32>
    %688 = arith.addf %687, %686 : vector<2x16xf32>
    %689 = arith.divf %687, %688 : vector<2x16xf32>
    %690 = vector.extract_strided_slice %683 {offsets = [0, 16], sizes = [2, 16], strides = [1, 1]} : vector<2x64xf32> to vector<2x16xf32>
    %691 = arith.negf %690 : vector<2x16xf32>
    %692 = math.exp %691 : vector<2x16xf32>
    %cst_167 = arith.constant 1.000000e+00 : f32
    %693 = vector.broadcast %cst_167 : f32 to vector<2x16xf32>
    %694 = arith.addf %693, %692 : vector<2x16xf32>
    %695 = arith.divf %693, %694 : vector<2x16xf32>
    %696 = vector.extract_strided_slice %683 {offsets = [0, 32], sizes = [2, 16], strides = [1, 1]} : vector<2x64xf32> to vector<2x16xf32>
    %697 = math.tanh %696 : vector<2x16xf32>
    %698 = vector.extract_strided_slice %683 {offsets = [0, 48], sizes = [2, 16], strides = [1, 1]} : vector<2x64xf32> to vector<2x16xf32>
    %699 = arith.negf %698 : vector<2x16xf32>
    %700 = math.exp %699 : vector<2x16xf32>
    %cst_168 = arith.constant 1.000000e+00 : f32
    %701 = vector.broadcast %cst_168 : f32 to vector<2x16xf32>
    %702 = arith.addf %701, %700 : vector<2x16xf32>
    %703 = arith.divf %701, %702 : vector<2x16xf32>
    %704 = arith.mulf %695, %611 : vector<2x16xf32>
    %705 = arith.mulf %689, %697 : vector<2x16xf32>
    %706 = arith.addf %704, %705 : vector<2x16xf32>
    %707 = math.tanh %706 : vector<2x16xf32>
    %708 = arith.mulf %703, %707 : vector<2x16xf32>
    %709 = vector.broadcast %680 : vector<2x1xf32> to vector<2x16xf32>
    %710 = arith.mulf %709, %708 : vector<2x16xf32>
    %cst_169 = arith.constant 1.000000e+00 : f32
    %711 = vector.broadcast %cst_169 : f32 to vector<2x1xf32>
    %712 = arith.subf %711, %680 : vector<2x1xf32>
    %713 = vector.broadcast %712 : vector<2x1xf32> to vector<2x16xf32>
    %714 = arith.mulf %713, %604 : vector<2x16xf32>
    %715 = arith.addf %710, %714 : vector<2x16xf32>
    %716 = vector.broadcast %680 : vector<2x1xf32> to vector<2x16xf32>
    %717 = arith.mulf %716, %706 : vector<2x16xf32>
    %cst_170 = arith.constant 1.000000e+00 : f32
    %718 = vector.broadcast %cst_170 : f32 to vector<2x1xf32>
    %719 = arith.subf %718, %680 : vector<2x1xf32>
    %720 = vector.broadcast %719 : vector<2x1xf32> to vector<2x16xf32>
    %721 = arith.mulf %720, %611 : vector<2x16xf32>
    %722 = arith.addf %717, %721 : vector<2x16xf32>
    %723 = vector.broadcast %680 : vector<2x1xf32> to vector<2x16xf32>
    %724 = arith.mulf %723, %708 : vector<2x16xf32>
    %725 = arith.truncf %724 : vector<2x16xf32> to vector<2x16xbf16>
    %726 = arith.index_cast %c6_i32 : i32 to index
    %c0_171 = arith.constant 0 : index
    %c0_172 = arith.constant 0 : index
    %727 = vector.load %arg7[%726, %c0_171, %c0_172] : memref<8x2x16xbf16, #tpu.memory_space<vmem>>, vector<1x2x16xbf16>
    %728 = vector.shape_cast %727 : vector<1x2x16xbf16> to vector<2x16xbf16>
    %729 = vector.shape_cast %725 : vector<2x16xbf16> to vector<1x2x16xbf16>
    tpu.vector_store %arg7[%726, %c0_171, %c0_172], %729 {strides = array<i32>} : memref<8x2x16xbf16, #tpu.memory_space<vmem>>, vector<1x2x16xbf16>,
    %c7_i32_173 = arith.constant 7 : i32
    %730 = arith.subi %c7_i32_173, %c6_i32 : i32
    %731 = arith.index_cast %730 : i32 to index
    %c0_174 = arith.constant 0 : index
    %c0_175 = arith.constant 0 : index
    %732 = vector.load %arg4[%731, %c0_174, %c0_175] : memref<8x2x64xf32, #tpu.memory_space<vmem>>, vector<1x2x64xf32>
    %733 = vector.shape_cast %732 : vector<1x2x64xf32> to vector<2x64xf32>
    %734 = arith.index_cast %730 : i32 to index
    %c0_176 = arith.constant 0 : index
    %c0_177 = arith.constant 0 : index
    %735 = vector.load %arg2[%734, %c0_176, %c0_177] : memref<8x2x1xf32, #tpu.memory_space<vmem>>, vector<1x2x1xf32>
    %736 = vector.shape_cast %735 : vector<1x2x1xf32> to vector<2x1xf32>
    %737 = arith.truncf %660 : vector<2x16xf32> to vector<2x16xbf16>
    %cst_178 = arith.constant dense<0.000000e+00> : vector<2x64xf32>
    %738 = tpu.matmul %737, %4, %cst_178 {dimension_numbers = #tpu.dot_dimension_numbers<[1], [0], [0], [1], [0, 0, 1, 1], [], []>} : vector<2x16xbf16>, vector<16x64xbf16>, vector<2x64xf32> -> vector<2x64xf32>
    %739 = arith.addf %733, %738 : vector<2x64xf32>
    %740 = vector.extract_strided_slice %739 {offsets = [0, 0], sizes = [2, 16], strides = [1, 1]} : vector<2x64xf32> to vector<2x16xf32>
    %741 = arith.negf %740 : vector<2x16xf32>
    %742 = math.exp %741 : vector<2x16xf32>
    %cst_179 = arith.constant 1.000000e+00 : f32
    %743 = vector.broadcast %cst_179 : f32 to vector<2x16xf32>
    %744 = arith.addf %743, %742 : vector<2x16xf32>
    %745 = arith.divf %743, %744 : vector<2x16xf32>
    %746 = vector.extract_strided_slice %739 {offsets = [0, 16], sizes = [2, 16], strides = [1, 1]} : vector<2x64xf32> to vector<2x16xf32>
    %747 = arith.negf %746 : vector<2x16xf32>
    %748 = math.exp %747 : vector<2x16xf32>
    %cst_180 = arith.constant 1.000000e+00 : f32
    %749 = vector.broadcast %cst_180 : f32 to vector<2x16xf32>
    %750 = arith.addf %749, %748 : vector<2x16xf32>
    %751 = arith.divf %749, %750 : vector<2x16xf32>
    %752 = vector.extract_strided_slice %739 {offsets = [0, 32], sizes = [2, 16], strides = [1, 1]} : vector<2x64xf32> to vector<2x16xf32>
    %753 = math.tanh %752 : vector<2x16xf32>
    %754 = vector.extract_strided_slice %739 {offsets = [0, 48], sizes = [2, 16], strides = [1, 1]} : vector<2x64xf32> to vector<2x16xf32>
    %755 = arith.negf %754 : vector<2x16xf32>
    %756 = math.exp %755 : vector<2x16xf32>
    %cst_181 = arith.constant 1.000000e+00 : f32
    %757 = vector.broadcast %cst_181 : f32 to vector<2x16xf32>
    %758 = arith.addf %757, %756 : vector<2x16xf32>
    %759 = arith.divf %757, %758 : vector<2x16xf32>
    %760 = arith.mulf %751, %667 : vector<2x16xf32>
    %761 = arith.mulf %745, %753 : vector<2x16xf32>
    %762 = arith.addf %760, %761 : vector<2x16xf32>
    %763 = math.tanh %762 : vector<2x16xf32>
    %764 = arith.mulf %759, %763 : vector<2x16xf32>
    %765 = vector.broadcast %736 : vector<2x1xf32> to vector<2x16xf32>
    %766 = arith.mulf %765, %764 : vector<2x16xf32>
    %cst_182 = arith.constant 1.000000e+00 : f32
    %767 = vector.broadcast %cst_182 : f32 to vector<2x1xf32>
    %768 = arith.subf %767, %736 : vector<2x1xf32>
    %769 = vector.broadcast %768 : vector<2x1xf32> to vector<2x16xf32>
    %770 = arith.mulf %769, %660 : vector<2x16xf32>
    %771 = arith.addf %766, %770 : vector<2x16xf32>
    %772 = vector.broadcast %736 : vector<2x1xf32> to vector<2x16xf32>
    %773 = arith.mulf %772, %762 : vector<2x16xf32>
    %cst_183 = arith.constant 1.000000e+00 : f32
    %774 = vector.broadcast %cst_183 : f32 to vector<2x1xf32>
    %775 = arith.subf %774, %736 : vector<2x1xf32>
    %776 = vector.broadcast %775 : vector<2x1xf32> to vector<2x16xf32>
    %777 = arith.mulf %776, %667 : vector<2x16xf32>
    %778 = arith.addf %773, %777 : vector<2x16xf32>
    %779 = vector.broadcast %736 : vector<2x1xf32> to vector<2x16xf32>
    %780 = arith.mulf %779, %764 : vector<2x16xf32>
    %781 = arith.truncf %780 : vector<2x16xf32> to vector<2x16xbf16>
    %782 = arith.index_cast %730 : i32 to index
    %c0_184 = arith.constant 0 : index
    %c0_185 = arith.constant 0 : index
    %783 = vector.load %arg8[%782, %c0_184, %c0_185] : memref<8x2x16xbf16, #tpu.memory_space<vmem>>, vector<1x2x16xbf16>
    %784 = vector.shape_cast %783 : vector<1x2x16xbf16> to vector<2x16xbf16>
    %785 = vector.shape_cast %781 : vector<2x16xbf16> to vector<1x2x16xbf16>
    tpu.vector_store %arg8[%782, %c0_184, %c0_185], %785 {strides = array<i32>} : memref<8x2x16xbf16, #tpu.memory_space<vmem>>, vector<1x2x16xbf16>,
    %c7_i32_186 = arith.constant 7 : i32
    %786 = arith.index_cast %c7_i32_186 : i32 to index
    %c0_187 = arith.constant 0 : index
    %c0_188 = arith.constant 0 : index
    %787 = vector.load %arg3[%786, %c0_187, %c0_188] : memref<8x2x64xf32, #tpu.memory_space<vmem>>, vector<1x2x64xf32>
    %788 = vector.shape_cast %787 : vector<1x2x64xf32> to vector<2x64xf32>
    %789 = arith.index_cast %c7_i32_186 : i32 to index
    %c0_189 = arith.constant 0 : index
    %c0_190 = arith.constant 0 : index
    %790 = vector.load %arg1[%789, %c0_189, %c0_190] : memref<8x2x1xf32, #tpu.memory_space<vmem>>, vector<1x2x1xf32>
    %791 = vector.shape_cast %790 : vector<1x2x1xf32> to vector<2x1xf32>
    %792 = arith.truncf %715 : vector<2x16xf32> to vector<2x16xbf16>
    %cst_191 = arith.constant dense<0.000000e+00> : vector<2x64xf32>
    %793 = tpu.matmul %792, %3, %cst_191 {dimension_numbers = #tpu.dot_dimension_numbers<[1], [0], [0], [1], [0, 0, 1, 1], [], []>} : vector<2x16xbf16>, vector<16x64xbf16>, vector<2x64xf32> -> vector<2x64xf32>
    %794 = arith.addf %788, %793 : vector<2x64xf32>
    %795 = vector.extract_strided_slice %794 {offsets = [0, 0], sizes = [2, 16], strides = [1, 1]} : vector<2x64xf32> to vector<2x16xf32>
    %796 = arith.negf %795 : vector<2x16xf32>
    %797 = math.exp %796 : vector<2x16xf32>
    %cst_192 = arith.constant 1.000000e+00 : f32
    %798 = vector.broadcast %cst_192 : f32 to vector<2x16xf32>
    %799 = arith.addf %798, %797 : vector<2x16xf32>
    %800 = arith.divf %798, %799 : vector<2x16xf32>
    %801 = vector.extract_strided_slice %794 {offsets = [0, 16], sizes = [2, 16], strides = [1, 1]} : vector<2x64xf32> to vector<2x16xf32>
    %802 = arith.negf %801 : vector<2x16xf32>
    %803 = math.exp %802 : vector<2x16xf32>
    %cst_193 = arith.constant 1.000000e+00 : f32
    %804 = vector.broadcast %cst_193 : f32 to vector<2x16xf32>
    %805 = arith.addf %804, %803 : vector<2x16xf32>
    %806 = arith.divf %804, %805 : vector<2x16xf32>
    %807 = vector.extract_strided_slice %794 {offsets = [0, 32], sizes = [2, 16], strides = [1, 1]} : vector<2x64xf32> to vector<2x16xf32>
    %808 = math.tanh %807 : vector<2x16xf32>
    %809 = vector.extract_strided_slice %794 {offsets = [0, 48], sizes = [2, 16], strides = [1, 1]} : vector<2x64xf32> to vector<2x16xf32>
    %810 = arith.negf %809 : vector<2x16xf32>
    %811 = math.exp %810 : vector<2x16xf32>
    %cst_194 = arith.constant 1.000000e+00 : f32
    %812 = vector.broadcast %cst_194 : f32 to vector<2x16xf32>
    %813 = arith.addf %812, %811 : vector<2x16xf32>
    %814 = arith.divf %812, %813 : vector<2x16xf32>
    %815 = arith.mulf %806, %722 : vector<2x16xf32>
    %816 = arith.mulf %800, %808 : vector<2x16xf32>
    %817 = arith.addf %815, %816 : vector<2x16xf32>
    %818 = math.tanh %817 : vector<2x16xf32>
    %819 = arith.mulf %814, %818 : vector<2x16xf32>
    %820 = vector.broadcast %791 : vector<2x1xf32> to vector<2x16xf32>
    %821 = arith.mulf %820, %819 : vector<2x16xf32>
    %cst_195 = arith.constant 1.000000e+00 : f32
    %822 = vector.broadcast %cst_195 : f32 to vector<2x1xf32>
    %823 = arith.subf %822, %791 : vector<2x1xf32>
    %824 = vector.broadcast %823 : vector<2x1xf32> to vector<2x16xf32>
    %825 = arith.mulf %824, %715 : vector<2x16xf32>
    %826 = arith.addf %821, %825 : vector<2x16xf32>
    %827 = vector.broadcast %791 : vector<2x1xf32> to vector<2x16xf32>
    %828 = arith.mulf %827, %817 : vector<2x16xf32>
    %cst_196 = arith.constant 1.000000e+00 : f32
    %829 = vector.broadcast %cst_196 : f32 to vector<2x1xf32>
    %830 = arith.subf %829, %791 : vector<2x1xf32>
    %831 = vector.broadcast %830 : vector<2x1xf32> to vector<2x16xf32>
    %832 = arith.mulf %831, %722 : vector<2x16xf32>
    %833 = arith.addf %828, %832 : vector<2x16xf32>
    %834 = vector.broadcast %791 : vector<2x1xf32> to vector<2x16xf32>
    %835 = arith.mulf %834, %819 : vector<2x16xf32>
    %836 = arith.truncf %835 : vector<2x16xf32> to vector<2x16xbf16>
    %837 = arith.index_cast %c7_i32_186 : i32 to index
    %c0_197 = arith.constant 0 : index
    %c0_198 = arith.constant 0 : index
    %838 = vector.load %arg7[%837, %c0_197, %c0_198] : memref<8x2x16xbf16, #tpu.memory_space<vmem>>, vector<1x2x16xbf16>
    %839 = vector.shape_cast %838 : vector<1x2x16xbf16> to vector<2x16xbf16>
    %840 = vector.shape_cast %836 : vector<2x16xbf16> to vector<1x2x16xbf16>
    tpu.vector_store %arg7[%837, %c0_197, %c0_198], %840 {strides = array<i32>} : memref<8x2x16xbf16, #tpu.memory_space<vmem>>, vector<1x2x16xbf16>,
    %c7_i32_199 = arith.constant 7 : i32
    %841 = arith.subi %c7_i32_199, %c7_i32_186 : i32
    %842 = arith.index_cast %841 : i32 to index
    %c0_200 = arith.constant 0 : index
    %c0_201 = arith.constant 0 : index
    %843 = vector.load %arg4[%842, %c0_200, %c0_201] : memref<8x2x64xf32, #tpu.memory_space<vmem>>, vector<1x2x64xf32>
    %844 = vector.shape_cast %843 : vector<1x2x64xf32> to vector<2x64xf32>
    %845 = arith.index_cast %841 : i32 to index
    %c0_202 = arith.constant 0 : index
    %c0_203 = arith.constant 0 : index
    %846 = vector.load %arg2[%845, %c0_202, %c0_203] : memref<8x2x1xf32, #tpu.memory_space<vmem>>, vector<1x2x1xf32>
    %847 = vector.shape_cast %846 : vector<1x2x1xf32> to vector<2x1xf32>
    %848 = arith.truncf %771 : vector<2x16xf32> to vector<2x16xbf16>
    %cst_204 = arith.constant dense<0.000000e+00> : vector<2x64xf32>
    %849 = tpu.matmul %848, %4, %cst_204 {dimension_numbers = #tpu.dot_dimension_numbers<[1], [0], [0], [1], [0, 0, 1, 1], [], []>} : vector<2x16xbf16>, vector<16x64xbf16>, vector<2x64xf32> -> vector<2x64xf32>
    %850 = arith.addf %844, %849 : vector<2x64xf32>
    %851 = vector.extract_strided_slice %850 {offsets = [0, 0], sizes = [2, 16], strides = [1, 1]} : vector<2x64xf32> to vector<2x16xf32>
    %852 = arith.negf %851 : vector<2x16xf32>
    %853 = math.exp %852 : vector<2x16xf32>
    %cst_205 = arith.constant 1.000000e+00 : f32
    %854 = vector.broadcast %cst_205 : f32 to vector<2x16xf32>
    %855 = arith.addf %854, %853 : vector<2x16xf32>
    %856 = arith.divf %854, %855 : vector<2x16xf32>
    %857 = vector.extract_strided_slice %850 {offsets = [0, 16], sizes = [2, 16], strides = [1, 1]} : vector<2x64xf32> to vector<2x16xf32>
    %858 = arith.negf %857 : vector<2x16xf32>
    %859 = math.exp %858 : vector<2x16xf32>
    %cst_206 = arith.constant 1.000000e+00 : f32
    %860 = vector.broadcast %cst_206 : f32 to vector<2x16xf32>
    %861 = arith.addf %860, %859 : vector<2x16xf32>
    %862 = arith.divf %860, %861 : vector<2x16xf32>
    %863 = vector.extract_strided_slice %850 {offsets = [0, 32], sizes = [2, 16], strides = [1, 1]} : vector<2x64xf32> to vector<2x16xf32>
    %864 = math.tanh %863 : vector<2x16xf32>
    %865 = vector.extract_strided_slice %850 {offsets = [0, 48], sizes = [2, 16], strides = [1, 1]} : vector<2x64xf32> to vector<2x16xf32>
    %866 = arith.negf %865 : vector<2x16xf32>
    %867 = math.exp %866 : vector<2x16xf32>
    %cst_207 = arith.constant 1.000000e+00 : f32
    %868 = vector.broadcast %cst_207 : f32 to vector<2x16xf32>
    %869 = arith.addf %868, %867 : vector<2x16xf32>
    %870 = arith.divf %868, %869 : vector<2x16xf32>
    %871 = arith.mulf %862, %778 : vector<2x16xf32>
    %872 = arith.mulf %856, %864 : vector<2x16xf32>
    %873 = arith.addf %871, %872 : vector<2x16xf32>
    %874 = math.tanh %873 : vector<2x16xf32>
    %875 = arith.mulf %870, %874 : vector<2x16xf32>
    %876 = vector.broadcast %847 : vector<2x1xf32> to vector<2x16xf32>
    %877 = arith.mulf %876, %875 : vector<2x16xf32>
    %cst_208 = arith.constant 1.000000e+00 : f32
    %878 = vector.broadcast %cst_208 : f32 to vector<2x1xf32>
    %879 = arith.subf %878, %847 : vector<2x1xf32>
    %880 = vector.broadcast %879 : vector<2x1xf32> to vector<2x16xf32>
    %881 = arith.mulf %880, %771 : vector<2x16xf32>
    %882 = arith.addf %877, %881 : vector<2x16xf32>
    %883 = vector.broadcast %847 : vector<2x1xf32> to vector<2x16xf32>
    %884 = arith.mulf %883, %873 : vector<2x16xf32>
    %cst_209 = arith.constant 1.000000e+00 : f32
    %885 = vector.broadcast %cst_209 : f32 to vector<2x1xf32>
    %886 = arith.subf %885, %847 : vector<2x1xf32>
    %887 = vector.broadcast %886 : vector<2x1xf32> to vector<2x16xf32>
    %888 = arith.mulf %887, %778 : vector<2x16xf32>
    %889 = arith.addf %884, %888 : vector<2x16xf32>
    %890 = vector.broadcast %847 : vector<2x1xf32> to vector<2x16xf32>
    %891 = arith.mulf %890, %875 : vector<2x16xf32>
    %892 = arith.truncf %891 : vector<2x16xf32> to vector<2x16xbf16>
    %893 = arith.index_cast %841 : i32 to index
    %c0_210 = arith.constant 0 : index
    %c0_211 = arith.constant 0 : index
    %894 = vector.load %arg8[%893, %c0_210, %c0_211] : memref<8x2x16xbf16, #tpu.memory_space<vmem>>, vector<1x2x16xbf16>
    %895 = vector.shape_cast %894 : vector<1x2x16xbf16> to vector<2x16xbf16>
    %896 = vector.shape_cast %892 : vector<2x16xbf16> to vector<1x2x16xbf16>
    tpu.vector_store %arg8[%893, %c0_210, %c0_211], %896 {strides = array<i32>} : memref<8x2x16xbf16, #tpu.memory_space<vmem>>, vector<1x2x16xbf16>,
    %c8_i32 = arith.constant 8 : i32
    %c0_212 = arith.constant 0 : index
    %c0_213 = arith.constant 0 : index
    %897 = vector.load %arg9[%c0_212, %c0_213] : memref<2x16xf32, #tpu.memory_space<vmem>>, vector<2x16xf32>
    tpu.vector_store %arg9[%c0_212, %c0_213], %826 {strides = array<i32>} : memref<2x16xf32, #tpu.memory_space<vmem>>, vector<2x16xf32>,
    %c0_214 = arith.constant 0 : index
    %c0_215 = arith.constant 0 : index
    %898 = vector.load %arg10[%c0_214, %c0_215] : memref<2x16xf32, #tpu.memory_space<vmem>>, vector<2x16xf32>
    tpu.vector_store %arg10[%c0_214, %c0_215], %833 {strides = array<i32>} : memref<2x16xf32, #tpu.memory_space<vmem>>, vector<2x16xf32>,
    %c0_216 = arith.constant 0 : index
    %c0_217 = arith.constant 0 : index
    %899 = vector.load %arg11[%c0_216, %c0_217] : memref<2x16xf32, #tpu.memory_space<vmem>>, vector<2x16xf32>
    tpu.vector_store %arg11[%c0_216, %c0_217], %882 {strides = array<i32>} : memref<2x16xf32, #tpu.memory_space<vmem>>, vector<2x16xf32>,
    %c0_218 = arith.constant 0 : index
    %c0_219 = arith.constant 0 : index
    %900 = vector.load %arg12[%c0_218, %c0_219] : memref<2x16xf32, #tpu.memory_space<vmem>>, vector<2x16xf32>
    tpu.vector_store %arg12[%c0_218, %c0_219], %889 {strides = array<i32>} : memref<2x16xf32, #tpu.memory_space<vmem>>, vector<2x16xf32>,
    return
  }
  func.func @transform_0(%arg0: i32) -> (i32, i32, i32) {
    %c0_i32 = arith.constant 0 : i32
    %c0_i32_0 = arith.constant 0 : i32
    %c0_i32_1 = arith.constant 0 : i32
    return %arg0, %c0_i32, %c0_i32_0 : i32, i32, i32
  }
  func.func @transform_1(%arg0: i32) -> (i32, i32, i32) {
    %c0_i32 = arith.constant 0 : i32
    %0 = arith.subi %c0_i32, %arg0 : i32
    %c0_i32_0 = arith.constant 0 : i32
    %c0_i32_1 = arith.constant 0 : i32
    %c0_i32_2 = arith.constant 0 : i32
    return %0, %c0_i32_0, %c0_i32_1 : i32, i32, i32
  }
  func.func @transform_2(%arg0: i32) -> (i32, i32, i32) {
    %c0_i32 = arith.constant 0 : i32
    %c0_i32_0 = arith.constant 0 : i32
    %c0_i32_1 = arith.constant 0 : i32
    return %arg0, %c0_i32, %c0_i32_0 : i32, i32, i32
  }
  func.func @transform_3(%arg0: i32) -> (i32, i32, i32) {
    %c0_i32 = arith.constant 0 : i32
    %0 = arith.subi %c0_i32, %arg0 : i32
    %c0_i32_0 = arith.constant 0 : i32
    %c0_i32_1 = arith.constant 0 : i32
    %c0_i32_2 = arith.constant 0 : i32
    return %0, %c0_i32_0, %c0_i32_1 : i32, i32, i32
  }
  func.func @transform_4(%arg0: i32) -> (i32, i32) {
    %c0_i32 = arith.constant 0 : i32
    %c0_i32_0 = arith.constant 0 : i32
    %c0_i32_1 = arith.constant 0 : i32
    return %c0_i32, %c0_i32_0 : i32, i32
  }
  func.func @transform_5(%arg0: i32) -> (i32, i32) {
    %c0_i32 = arith.constant 0 : i32
    %c0_i32_0 = arith.constant 0 : i32
    %c0_i32_1 = arith.constant 0 : i32
    return %c0_i32, %c0_i32_0 : i32, i32
  }
  func.func @transform_6(%arg0: i32) -> (i32, i32, i32) {
    %c0_i32 = arith.constant 0 : i32
    %c0_i32_0 = arith.constant 0 : i32
    %c0_i32_1 = arith.constant 0 : i32
    return %arg0, %c0_i32, %c0_i32_0 : i32, i32, i32
  }
  func.func @transform_7(%arg0: i32) -> (i32, i32, i32) {
    %c0_i32 = arith.constant 0 : i32
    %0 = arith.subi %c0_i32, %arg0 : i32
    %c0_i32_0 = arith.constant 0 : i32
    %c0_i32_1 = arith.constant 0 : i32
    %c0_i32_2 = arith.constant 0 : i32
    return %0, %c0_i32_0, %c0_i32_1 : i32, i32, i32
  }
}

module attributes {stable_mosaic.version = 11 : i64} {
  func.func @_gates_proj_kernel(%arg0: i32, %arg1: memref<8x32xbf16, #tpu.memory_space<vmem>>, %arg2: memref<32x64xbf16, #tpu.memory_space<vmem>>, %arg3: memref<32x64xbf16, #tpu.memory_space<vmem>>, %arg4: memref<1x64xf32, #tpu.memory_space<vmem>>, %arg5: memref<1x64xf32, #tpu.memory_space<vmem>>, %arg6: memref<8x64xf32, #tpu.memory_space<vmem>>, %arg7: memref<8x64xf32, #tpu.memory_space<vmem>>) attributes {dimension_semantics = [#tpu.dimension_semantics<parallel>], iteration_bounds = array<i64: 2>, scalar_prefetch = 0 : i64, scratch_operands = 0 : i64, tpu.core_type = #tpu.core_type<tc>, window_params = [{transform_indices = @transform_0, window_bounds = array<i64: 8, 32>}, {pipeline_mode = #tpu.pipeline_mode<synchronous>, transform_indices = @transform_1, window_bounds = array<i64: 32, 64>}, {pipeline_mode = #tpu.pipeline_mode<synchronous>, transform_indices = @transform_2, window_bounds = array<i64: 32, 64>}, {pipeline_mode = #tpu.pipeline_mode<synchronous>, transform_indices = @transform_3, window_bounds = array<i64: 1, 64>}, {pipeline_mode = #tpu.pipeline_mode<synchronous>, transform_indices = @transform_4, window_bounds = array<i64: 1, 64>}, {transform_indices = @transform_5, window_bounds = array<i64: 8, 64>}, {transform_indices = @transform_6, window_bounds = array<i64: 8, 64>}]} {
    %c0 = arith.constant 0 : index
    %c0_0 = arith.constant 0 : index
    %0 = vector.load %arg4[%c0, %c0_0] : memref<1x64xf32, #tpu.memory_space<vmem>>, vector<1x64xf32>
    %c0_1 = arith.constant 0 : index
    %c0_2 = arith.constant 0 : index
    %1 = vector.load %arg5[%c0_1, %c0_2] : memref<1x64xf32, #tpu.memory_space<vmem>>, vector<1x64xf32>
    %c0_3 = arith.constant 0 : index
    %c0_4 = arith.constant 0 : index
    %2 = vector.load %arg1[%c0_3, %c0_4] : memref<8x32xbf16, #tpu.memory_space<vmem>>, vector<8x32xbf16>
    %c0_5 = arith.constant 0 : index
    %c0_6 = arith.constant 0 : index
    %3 = vector.load %arg2[%c0_5, %c0_6] : memref<32x64xbf16, #tpu.memory_space<vmem>>, vector<32x64xbf16>
    %cst = arith.constant dense<0.000000e+00> : vector<8x64xf32>
    %4 = tpu.matmul %2, %3, %cst {dimension_numbers = #tpu.dot_dimension_numbers<[1], [0], [0], [1], [0, 0, 1, 1], [], []>} : vector<8x32xbf16>, vector<32x64xbf16>, vector<8x64xf32> -> vector<8x64xf32>
    %5 = vector.broadcast %0 : vector<1x64xf32> to vector<8x64xf32>
    %6 = arith.addf %5, %4 : vector<8x64xf32>
    %c0_7 = arith.constant 0 : index
    %c0_8 = arith.constant 0 : index
    %7 = vector.load %arg3[%c0_7, %c0_8] : memref<32x64xbf16, #tpu.memory_space<vmem>>, vector<32x64xbf16>
    %cst_9 = arith.constant dense<0.000000e+00> : vector<8x64xf32>
    %8 = tpu.matmul %2, %7, %cst_9 {dimension_numbers = #tpu.dot_dimension_numbers<[1], [0], [0], [1], [0, 0, 1, 1], [], []>} : vector<8x32xbf16>, vector<32x64xbf16>, vector<8x64xf32> -> vector<8x64xf32>
    %9 = vector.broadcast %1 : vector<1x64xf32> to vector<8x64xf32>
    %10 = arith.addf %9, %8 : vector<8x64xf32>
    %c0_10 = arith.constant 0 : index
    %c0_11 = arith.constant 0 : index
    %11 = vector.load %arg6[%c0_10, %c0_11] : memref<8x64xf32, #tpu.memory_space<vmem>>, vector<8x64xf32>
    tpu.vector_store %arg6[%c0_10, %c0_11], %6 {strides = array<i32>} : memref<8x64xf32, #tpu.memory_space<vmem>>, vector<8x64xf32>,
    %c0_12 = arith.constant 0 : index
    %c0_13 = arith.constant 0 : index
    %12 = vector.load %arg7[%c0_12, %c0_13] : memref<8x64xf32, #tpu.memory_space<vmem>>, vector<8x64xf32>
    tpu.vector_store %arg7[%c0_12, %c0_13], %10 {strides = array<i32>} : memref<8x64xf32, #tpu.memory_space<vmem>>, vector<8x64xf32>,
    return
  }
  func.func @transform_0(%arg0: i32) -> (i32, i32) {
    %c0_i32 = arith.constant 0 : i32
    %c0_i32_0 = arith.constant 0 : i32
    return %arg0, %c0_i32 : i32, i32
  }
  func.func @transform_1(%arg0: i32) -> (i32, i32) {
    %c0_i32 = arith.constant 0 : i32
    %c0_i32_0 = arith.constant 0 : i32
    %c0_i32_1 = arith.constant 0 : i32
    return %c0_i32, %c0_i32_0 : i32, i32
  }
  func.func @transform_2(%arg0: i32) -> (i32, i32) {
    %c0_i32 = arith.constant 0 : i32
    %c0_i32_0 = arith.constant 0 : i32
    %c0_i32_1 = arith.constant 0 : i32
    return %c0_i32, %c0_i32_0 : i32, i32
  }
  func.func @transform_3(%arg0: i32) -> (i32, i32) {
    %c0_i32 = arith.constant 0 : i32
    %c0_i32_0 = arith.constant 0 : i32
    %c0_i32_1 = arith.constant 0 : i32
    return %c0_i32, %c0_i32_0 : i32, i32
  }
  func.func @transform_4(%arg0: i32) -> (i32, i32) {
    %c0_i32 = arith.constant 0 : i32
    %c0_i32_0 = arith.constant 0 : i32
    %c0_i32_1 = arith.constant 0 : i32
    return %c0_i32, %c0_i32_0 : i32, i32
  }
  func.func @transform_5(%arg0: i32) -> (i32, i32) {
    %c0_i32 = arith.constant 0 : i32
    %c0_i32_0 = arith.constant 0 : i32
    return %arg0, %c0_i32 : i32, i32
  }
  func.func @transform_6(%arg0: i32) -> (i32, i32) {
    %c0_i32 = arith.constant 0 : i32
    %c0_i32_0 = arith.constant 0 : i32
    return %arg0, %c0_i32 : i32, i32
  }
}

module attributes {stable_mosaic.version = 11 : i64} {
  func.func @_visual_cls_kernel(%arg0: i32, %arg1: memref<8x16xbf16, #tpu.memory_space<vmem>>, %arg2: memref<8x16xbf16, #tpu.memory_space<vmem>>, %arg3: memref<16x16xbf16, #tpu.memory_space<vmem>>, %arg4: memref<16x16xbf16, #tpu.memory_space<vmem>>, %arg5: memref<1x16xf32, #tpu.memory_space<vmem>>, %arg6: memref<16x1xbf16, #tpu.memory_space<vmem>>, %arg7: memref<1x1xf32, #tpu.memory_space<vmem>>, %arg8: memref<8x1xf32, #tpu.memory_space<vmem>>) attributes {dimension_semantics = [#tpu.dimension_semantics<parallel>], iteration_bounds = array<i64: 2>, scalar_prefetch = 0 : i64, scratch_operands = 0 : i64, tpu.core_type = #tpu.core_type<tc>, window_params = [{transform_indices = @transform_0, window_bounds = array<i64: 8, 16>}, {transform_indices = @transform_1, window_bounds = array<i64: 8, 16>}, {pipeline_mode = #tpu.pipeline_mode<synchronous>, transform_indices = @transform_2, window_bounds = array<i64: 16, 16>}, {pipeline_mode = #tpu.pipeline_mode<synchronous>, transform_indices = @transform_3, window_bounds = array<i64: 16, 16>}, {pipeline_mode = #tpu.pipeline_mode<synchronous>, transform_indices = @transform_4, window_bounds = array<i64: 1, 16>}, {pipeline_mode = #tpu.pipeline_mode<synchronous>, transform_indices = @transform_5, window_bounds = array<i64: 16, 1>}, {pipeline_mode = #tpu.pipeline_mode<synchronous>, transform_indices = @transform_6, window_bounds = array<i64: 1, 1>}, {transform_indices = @transform_7, window_bounds = array<i64: 8, 1>}]} {
    %c0 = arith.constant 0 : index
    %c0_0 = arith.constant 0 : index
    %0 = vector.load %arg1[%c0, %c0_0] : memref<8x16xbf16, #tpu.memory_space<vmem>>, vector<8x16xbf16>
    %c0_1 = arith.constant 0 : index
    %c0_2 = arith.constant 0 : index
    %1 = vector.load %arg3[%c0_1, %c0_2] : memref<16x16xbf16, #tpu.memory_space<vmem>>, vector<16x16xbf16>
    %cst = arith.constant dense<0.000000e+00> : vector<8x16xf32>
    %2 = tpu.matmul %0, %1, %cst {dimension_numbers = #tpu.dot_dimension_numbers<[1], [0], [0], [1], [0, 0, 1, 1], [], []>} : vector<8x16xbf16>, vector<16x16xbf16>, vector<8x16xf32> -> vector<8x16xf32>
    %c0_3 = arith.constant 0 : index
    %c0_4 = arith.constant 0 : index
    %3 = vector.load %arg2[%c0_3, %c0_4] : memref<8x16xbf16, #tpu.memory_space<vmem>>, vector<8x16xbf16>
    %c0_5 = arith.constant 0 : index
    %c0_6 = arith.constant 0 : index
    %4 = vector.load %arg4[%c0_5, %c0_6] : memref<16x16xbf16, #tpu.memory_space<vmem>>, vector<16x16xbf16>
    %cst_7 = arith.constant dense<0.000000e+00> : vector<8x16xf32>
    %5 = tpu.matmul %3, %4, %cst_7 {dimension_numbers = #tpu.dot_dimension_numbers<[1], [0], [0], [1], [0, 0, 1, 1], [], []>} : vector<8x16xbf16>, vector<16x16xbf16>, vector<8x16xf32> -> vector<8x16xf32>
    %6 = arith.addf %2, %5 : vector<8x16xf32>
    %c0_8 = arith.constant 0 : index
    %c0_9 = arith.constant 0 : index
    %7 = vector.load %arg5[%c0_8, %c0_9] : memref<1x16xf32, #tpu.memory_space<vmem>>, vector<1x16xf32>
    %8 = vector.broadcast %7 : vector<1x16xf32> to vector<8x16xf32>
    %9 = arith.addf %6, %8 : vector<8x16xf32>
    %cst_10 = arith.constant 0.000000e+00 : f32
    %10 = vector.broadcast %cst_10 : f32 to vector<8x16xf32>
    %11 = arith.maximumf %9, %10 : vector<8x16xf32>
    %12 = arith.truncf %11 : vector<8x16xf32> to vector<8x16xbf16>
    %c0_11 = arith.constant 0 : index
    %c0_12 = arith.constant 0 : index
    %13 = vector.load %arg6[%c0_11, %c0_12] : memref<16x1xbf16, #tpu.memory_space<vmem>>, vector<16x1xbf16>
    %cst_13 = arith.constant dense<0.000000e+00> : vector<8x1xf32>
    %14 = tpu.matmul %12, %13, %cst_13 {dimension_numbers = #tpu.dot_dimension_numbers<[1], [0], [0], [1], [0, 0, 1, 1], [], []>} : vector<8x16xbf16>, vector<16x1xbf16>, vector<8x1xf32> -> vector<8x1xf32>
    %c0_14 = arith.constant 0 : index
    %c0_15 = arith.constant 0 : index
    %15 = vector.load %arg7[%c0_14, %c0_15] : memref<1x1xf32, #tpu.memory_space<vmem>>, vector<1x1xf32>
    %16 = vector.broadcast %15 : vector<1x1xf32> to vector<8x1xf32>
    %17 = arith.addf %14, %16 : vector<8x1xf32>
    %18 = arith.negf %17 : vector<8x1xf32>
    %19 = math.exp %18 : vector<8x1xf32>
    %cst_16 = arith.constant 1.000000e+00 : f32
    %20 = vector.broadcast %cst_16 : f32 to vector<8x1xf32>
    %21 = arith.addf %20, %19 : vector<8x1xf32>
    %22 = arith.divf %20, %21 : vector<8x1xf32>
    %c0_17 = arith.constant 0 : index
    %c0_18 = arith.constant 0 : index
    %23 = vector.load %arg8[%c0_17, %c0_18] : memref<8x1xf32, #tpu.memory_space<vmem>>, vector<8x1xf32>
    tpu.vector_store %arg8[%c0_17, %c0_18], %22 {strides = array<i32>} : memref<8x1xf32, #tpu.memory_space<vmem>>, vector<8x1xf32>,
    return
  }
  func.func @transform_0(%arg0: i32) -> (i32, i32) {
    %c0_i32 = arith.constant 0 : i32
    %c0_i32_0 = arith.constant 0 : i32
    return %arg0, %c0_i32 : i32, i32
  }
  func.func @transform_1(%arg0: i32) -> (i32, i32) {
    %c0_i32 = arith.constant 0 : i32
    %c0_i32_0 = arith.constant 0 : i32
    return %arg0, %c0_i32 : i32, i32
  }
  func.func @transform_2(%arg0: i32) -> (i32, i32) {
    %c0_i32 = arith.constant 0 : i32
    %c0_i32_0 = arith.constant 0 : i32
    %c0_i32_1 = arith.constant 0 : i32
    return %c0_i32, %c0_i32_0 : i32, i32
  }
  func.func @transform_3(%arg0: i32) -> (i32, i32) {
    %c0_i32 = arith.constant 0 : i32
    %c0_i32_0 = arith.constant 0 : i32
    %c0_i32_1 = arith.constant 0 : i32
    return %c0_i32, %c0_i32_0 : i32, i32
  }
  func.func @transform_4(%arg0: i32) -> (i32, i32) {
    %c0_i32 = arith.constant 0 : i32
    %c0_i32_0 = arith.constant 0 : i32
    %c0_i32_1 = arith.constant 0 : i32
    return %c0_i32, %c0_i32_0 : i32, i32
  }
  func.func @transform_5(%arg0: i32) -> (i32, i32) {
    %c0_i32 = arith.constant 0 : i32
    %c0_i32_0 = arith.constant 0 : i32
    %c0_i32_1 = arith.constant 0 : i32
    return %c0_i32, %c0_i32_0 : i32, i32
  }
  func.func @transform_6(%arg0: i32) -> (i32, i32) {
    %c0_i32 = arith.constant 0 : i32
    %c0_i32_0 = arith.constant 0 : i32
    %c0_i32_1 = arith.constant 0 : i32
    return %c0_i32, %c0_i32_0 : i32, i32
  }
  func.func @transform_7(%arg0: i32) -> (i32, i32) {
    %c0_i32 = arith.constant 0 : i32
    %c0_i32_0 = arith.constant 0 : i32
    return %arg0, %c0_i32 : i32, i32
  }
}

</mosaic_0001>

<bundles_post_ra>
// kernel: audio_visual_predictor.11
= control target key start
LH: loop header
LB: loop body
LE: loop exit
PB: predicated region body
PF: predicated region fallthrough
CT: control target
= control target key end

     0   :  { %s1022_s19 = smov 0   ;;  %s1125_s0 = inlined_call_operand.vmem [shape: bf16[16,24], index: 0, kind: input, shape index: {}]   ;;  %s1126_s1 = inlined_call_operand.vmem [shape: bf16[24,64], index: 1, kind: input, shape index: {}]   ;;  %s1127_s2 = inlined_call_operand.vmem [shape: f32[1,64], index: 2, kind: input, shape index: {}]   ;;  %s1128_s3 = inlined_call_operand.vmem [shape: bf16[64,32], index: 3, kind: input, shape index: {}]   ;;  %s1129_s4 = inlined_call_operand.vmem [shape: f32[1,32], index: 4, kind: input, shape index: {}]   ;;  %s1130_s5 = inlined_call_operand.vmem [shape: bf16[32,64], index: 5, kind: input, shape index: {}]   ;;  %s1131_s6 = inlined_call_operand.vmem [shape: f32[1,64], index: 6, kind: input, shape index: {}]   ;;  %s1132_s7 = inlined_call_operand.vmem [shape: bf16[64,32], index: 7, kind: input, shape index: {}]   ;;  %s1133_s8 = inlined_call_operand.vmem [shape: f32[1,32], index: 8, kind: input, shape index: {}]   ;;  %s1134_s9 = inlined_call_operand.vmem [shape: bf16[32,1], index: 9, kind: input, shape index: {}]   ;;  %s1135_s10 = inlined_call_operand.<no memory space> [shape: f32[1,1], index: 10, kind: input, shape index: {}]   ;;  %s1136_s11 = inlined_call_operand.vmem [shape: f32[16,1], index: 11, kind: output, shape index: {}]  }
   0x1   :  { %v16_v0 = vstv %s1135_s10 }
   0x2   :  { %17 = vst [vmem:[#allocation2] sm:$0x1] %v16_v0 }
   0x3 LB: > { %s820_s20 = sadd.s32 4294967295, %s955_s19   ;;  %p824_p0 = scmp.ge.s32.totalorder %s955_s19, 1  ;;  %s955_s19 = sphi %s1022_s19, %s23_s19  }
   0x4   : > { %p338_p1 = scmp.lt.s32.totalorder %s955_s19, 3 }
   0x6   : > { %p339_p2 = pnand %p824_p0, %p338_p1 }
   0x7   : > { %v931_v1 = vld [vmem:[%s1126_s1] sm:$0xff] (!%p339_p2)   ;;  %v957_v2 = vmov (!%p339_p2), 0.0   ;;  %v932_v3 = vld [vmem:[%s1126_s1 + $0x8] ss:$0 sps:$4 sm:$0xff] (!%p339_p2)   ;;  %vm409_vm0 = vcmask (!%p339_p2), 1043456   ;;  %vm958_vm1 = vmmov (!%p339_p2), 0  }
   0x8   : > { %342 = sbr.rel (%p339_p2) target bundleno = 1132 (0x46c), region = 64  ;;  %873 = vmatprep.subr.bf16.mxu0 (!%p339_p2), %v957_v2  ;;  %881 = vmatprep.subr.bf16.mxu1 (!%p339_p2), %v957_v2  ;;  %p376_p3 = scmp.lt.s32.totalorder (!%p339_p2), %s820_s20, 1  ;;  %v411_v4 = vsel (!%p339_p2), %vm409_vm0, %v932_v3, 0  ;;  %v933_v5 = vld [vmem:[%s1128_s3] sm:$0xff] (!%p339_p2)   ;;  %v934_v6 = vld [vmem:[%s1128_s3 + $0x8] sm:$0xff] (!%p339_p2)   ;;  %vm405_vm2 = vcmask (!%p339_p2), 195584  }
   0x9   : > { %874 = vmatpush3.bf16.msra.mxu0 (!%p339_p2), %v931_v1  ;;  %877 = vmatprep.mubr.msk.bf16.mxu0 (!%p339_p2), %vm958_vm1, %v957_v2  ;;  %v935_v8 = vld [vmem:[%s1128_s3 + $0x10] sm:$0xff] (!%p339_p2)   ;;  %v936_v9 = vld [vmem:[%s1128_s3 + $0x18] sm:$0xff] (!%p339_p2)   ;;  %v937_v10 = vld [vmem:[%s1130_s5] sm:$0xff] (!%p339_p2)   ;;  %vm494_vm3 = vcmask (!%p339_p2), 523264   ;;  %vm563_vm4 = vcmask (!%p339_p2), 261120   ;;  %vm765_vm5 = vcmask (!%p339_p2), 7168  }
   0xa   : > { %875 = vmatprep.subr.bf16.mxu0 (!%p339_p2), %v957_v2  ;;  %889 = vmatprep.mubr.msk.bf16.mxu1 (!%p339_p2), %vm958_vm1, %v957_v2  ;;  %v827_v11 = vld [vmem:[%s1127_s2] ss:$0 sm:$0xff] (!%p339_p2)  ;;  %v938_v19 = vld [vmem:[%s1130_s5 + $0x8] sm:$0xff] (!%p339_p2)   ;;  %v941_v30 = vld [vmem:[%s1132_s7 + $0x10] sm:$0xff] (!%p339_p2)  }
   0xb   : > { %882 = vmatpush3.bf16.msra.mxu1 (!%p339_p2), %v933_v5  ;;  %v831_v20 = vld [vmem:[%s1129_s4] ss:$0 sm:$0xff] (!%p339_p2)  ;;  %v940_v29 = vld [vmem:[%s1132_s7 + $0x8] sm:$0xff] (!%p339_p2)   ;;  %v942_v31 = vld [vmem:[%s1132_s7 + $0x18] sm:$0xff] (!%p339_p2)  }
   0xc   : > { %883 = vmatprep.subr.bf16.mxu1 (!%p339_p2), %v957_v2  ;;  %v939_v27 = vld [vmem:[%s1132_s7] sm:$0xff] (!%p339_p2)   ;;  %v944_v41 = vld [vmem:[%s1134_s9 + $0x8] sm:$0xff] (!%p339_p2)  }
   0xd   : > { %876 = vmatpush3.bf16.msra.mxu0 (!%p339_p2), %v411_v4  ;;  %v943_v32 = vld [vmem:[%s1134_s9] sm:$0xff] (!%p339_p2)  }
   0xe   : > { %893 = vmatprep.subr.bf16.mxu0 (!%p339_p2), %v957_v2  ;;  %v837_v33 = vld [vmem:[%s1131_s6] ss:$0 sm:$0xff] (!%p339_p2) }
   0xf   : > { %s1138_s20 = smov (!%p376_p3, %s820_s20), 1  ;;  %884 = vmatpush3.bf16.msra.mxu1 %v934_v6  ;;  %v841_v42 = vld [vmem:[%s1133_s8] ss:$0 sm:$0xff] }
  0x10   : > { %s825_s28 = sshll.u32 %s1138_s20, 2  ;;  %885 = vmatprep.subr.bf16.mxu1 %v957_v2  ;;  %v847_v50 = vld [vmem:[#allocation2] ss:$0 sm:$0xff]  ;;  %s826_s24 = sshll.u32 %s1138_s20, 3 }
  0x11   : > { %s379_s12 = scalar_lea.vmem %s1125_s0, %s825_s28  ;;  %s383_s27 = scalar_lea.vmem %s1136_s11, %s826_s24 }
  0x12   : > { %v385_v7 = vld [vmem:[%s379_s12] sm:$0xf] }
  0x13   : > { %878 = vmatmul.mubr.msk.bf16.vlgmr.msra.gmra.mrb[0].mxu0 %vm405_vm2, %v385_v7  ;;  %886 = vmatpush3.bf16.msra.mxu1 %v935_v8 }
  0x14   : > { %897 = vmatprep.mubr.msk.bf16.mxu0 %vm958_vm1, %v957_v2  ;;  %887 = vmatprep.subr.bf16.mxu1 %v957_v2 }
  0x15   : > { %894 = vmatpush3.bf16.msra.mxu0 %v937_v10 }
  0x16   : > { %895 = vmatprep.subr.bf16.mxu0 %v957_v2 }
  0x17   : > { %888 = vmatpush3.bf16.msra.mxu1 %v936_v9 }
  0x18   : > { %913 = vmatprep.subr.bf16.mxu1 %v957_v2 }
  0x19   : > { %896 = vmatpush3.bf16.msra.mxu0 %v938_v19 }
  0x1a   : > { %901 = vmatprep.subr.bf16.mxu0 %v957_v2 }
  0xe6   : > { %v447_v12 = vpop.f32.mrb[0].mxu0 }
  0xe7   : > { %v448_v13 = vadd.f32 %v827_v11, %v447_v12  ;;  %v879_v14 = vpop.f32.mrb[1].mxu0 }
  0xe8   : > { %v450_v15 = vpop.f32.mrb[2].mxu0 }
  0xe9   : > { %v453_v16 = vmax.f32 %v448_v13, 0.0  ;;  %v880_v17 = vpop.f32.mrb[3].mxu0 }
  0xeb   : > { %v454_v18 = vpack.c.bf16 %v453_v16, %v453_v16 }
  0xed   : > { %890 = vmatmul.mubr.msk.bf16.vlgmr.msra.gmra.mrb[0].mxu1 %vm494_vm3, %v454_v18 }
  0xee   : > { %917 = vmatprep.mubr.msk.bf16.mxu1 %vm958_vm1, %v957_v2  ;;  %914 = vmatpush3.bf16.msra.mxu1 %v943_v32 }
  0xef   : > { %915 = vmatprep.subr.bf16.mxu1 %v957_v2 }
  0xf2   : > { %916 = vmatpush3.bf16.msra.mxu1 %v944_v41 }
 0x1c0   : > { %v532_v21 = vpop.f32.mrb[0].mxu1 }
 0x1c1   : > { %v533_v22 = vadd.f32 %v831_v20, %v532_v21  ;;  %v891_v23 = vpop.f32.mrb[1].mxu1 }
 0x1c2   : > { %v535_v24 = vpop.f32.mrb[2].mxu1 }
 0x1c3   : > { %v538_v25 = vmax.f32 %v533_v22, 0.0  ;;  %v892_v26 = vpop.f32.mrb[3].mxu1 }
 0x1c5   : > { %v539_v28 = vpack.c.bf16 %v538_v25, %v538_v25 }
 0x1c7   : > { %898 = vmatmul.mubr.msk.bf16.vlgmr.msra.gmra.mrb[4].mxu0 %vm563_vm4, %v539_v28 }
 0x1c8   : > { %902 = vmatpush3.bf16.msra.mxu0 %v939_v27  ;;  %909 = vmatprep.mubr.msk.bf16.mxu0 %vm958_vm1, %v957_v2 }
 0x1c9   : > { %903 = vmatprep.subr.bf16.mxu0 %v957_v2 }
 0x1cc   : > { %904 = vmatpush3.bf16.msra.mxu0 %v940_v29 }
 0x1cd   : > { %905 = vmatprep.subr.bf16.mxu0 %v957_v2 }
 0x1d0   : > { %906 = vmatpush3.bf16.msra.mxu0 %v941_v30 }
 0x1d1   : > { %907 = vmatprep.subr.bf16.mxu0 %v957_v2 }
 0x1d4   : > { %908 = vmatpush3.bf16.msra.mxu0 %v942_v31 }
 0x29a   : > { %v601_v34 = vpop.f32.mrb[4].mxu0 }
 0x29b   : > { %v602_v35 = vadd.f32 %v837_v33, %v601_v34  ;;  %v899_v36 = vpop.f32.mrb[5].mxu0 }
 0x29c   : > { %v604_v37 = vpop.f32.mrb[6].mxu0 }
 0x29d   : > { %v607_v38 = vmax.f32 %v602_v35, 0.0  ;;  %v900_v39 = vpop.f32.mrb[7].mxu0 }
 0x29f   : > { %v608_v40 = vpack.c.bf16 %v607_v38, %v607_v38 }
 0x2a1   : > { %910 = vmatmul.mubr.msk.bf16.vlgmr.msra.gmra.mrb[8].mxu0 %vm494_vm3, %v608_v40 }
 0x374   : > { %v685_v43 = vpop.f32.mrb[8].mxu0 }
 0x375   : > { %v686_v44 = vadd.f32 %v841_v42, %v685_v43  ;;  %v911_v45 = vpop.f32.mrb[9].mxu0 }
 0x376   : > { %v688_v46 = vpop.f32.mrb[10].mxu0 }
 0x377   : > { %v691_v47 = vmax.f32 %v686_v44, 0.0  ;;  %v912_v48 = vpop.f32.mrb[11].mxu0 }
 0x379   : > { %v692_v49 = vpack.c.bf16 %v691_v47, %v691_v47 }
 0x37b   : > { %918 = vmatmul.mubr.msk.bf16.vlgmr.msra.gmra.mrb[4].mxu1 %vm563_vm4, %v692_v49 }
 0x44e   : > { %v753_v51 = vpop.f32.mrb[4].mxu1 }
 0x44f   : > { %v754_v52 = vadd.f32 %v847_v50, %v753_v51  ;;  %v919_v53 = vpop.f32.mrb[5].mxu1 }
 0x450   : > { %v756_v54 = vpop.f32.mrb[6].mxu1 }
 0x451   : > { %v851_v55 = vmul.f32 -1.442695, %v754_v52  ;;  %v920_v56 = vpop.f32.mrb[7].mxu1 }
 0x453   : > { %945 = vpow2.f32 %v851_v55 }
 0x45d   : > { %v946_v57 = vpop.eup %945 }
 0x45e   : > { %v762_v58 = vadd.f32 1.0, %v946_v57 }
 0x460   : > { %947 = vrcp.f32 %v762_v58 }
 0x46a   : > { %v948_v59 = vpop.eup %947 }
 0x46b   : > { %766 = vst.msk [vmem:[%s383_s27] sm:$0xff] %vm765_vm5, %v948_v59 }
 0x46c PF: > { %s23_s19 = sadd.s32 1, %s955_s19  }
 0x46d   : > { %p20_p4 = scmp.ge.s32.totalorder %s23_s19, 4  }
 0x46f   :  { %22 = sbr.rel (!%p20_p4) target bundleno = 3 (0x3), region = 94 }

// kernel: audio_visual_predictor.8
= control target key start
LH: loop header
LB: loop body
LE: loop exit
PB: predicated region body
PF: predicated region fallthrough
CT: control target
= control target key end

     0   :  { %s812_s30 = smov 0   ;;  %s857_s0 = inlined_call_operand.vmem [shape: bf16[16,16], index: 0, kind: input, shape index: {}]   ;;  %s858_s1 = inlined_call_operand.vmem [shape: bf16[16,16], index: 1, kind: input, shape index: {}]   ;;  %s859_s2 = inlined_call_operand.vmem [shape: bf16[16,64], index: 2, kind: input, shape index: {}]   ;;  %s860_s3 = inlined_call_operand.vmem [shape: bf16[16,64], index: 3, kind: input, shape index: {}]   ;;  %s861_s4 = inlined_call_operand.vmem [shape: bf16[16,64], index: 4, kind: input, shape index: {}]   ;;  %s862_s5 = inlined_call_operand.vmem [shape: bf16[16,64], index: 5, kind: input, shape index: {}]   ;;  %s863_s6 = inlined_call_operand.vmem [shape: f32[1,64], index: 6, kind: input, shape index: {}]   ;;  %s864_s7 = inlined_call_operand.vmem [shape: f32[1,64], index: 7, kind: input, shape index: {}]   ;;  %s865_s8 = inlined_call_operand.vmem [shape: f32[16,64], index: 8, kind: output, shape index: {0}]   ;;  %s866_s9 = inlined_call_operand.vmem [shape: f32[16,64], index: 9, kind: output, shape index: {1}]  }
   0x1 LB: > { %s675_s10 = sadd.s32 4294967295, %s758_s30   ;;  %p679_p0 = scmp.ge.s32.totalorder %s758_s30, 1  ;;  %s758_s30 = sphi %s812_s30, %s20_s30  }
   0x2   : > { %p298_p1 = scmp.lt.s32.totalorder %s758_s30, 3 }
   0x4   : > { %p299_p2 = pnand %p679_p0, %p298_p1 }
   0x5   : > { %v748_v0 = vld [vmem:[%s859_s2] sm:$0xff] (!%p299_p2)   ;;  %v760_v1 = vmov (!%p299_p2), 0.0   ;;  %vm761_vm0 = vmmov (!%p299_p2), 0   ;;  %p340_p3 = scmp.lt.s32.totalorder (!%p299_p2), %s675_s10, 1  ;;  %vm368_vm1 = vcmask (!%p299_p2), 130048   ;;  %vm576_vm2 = vcmask (!%p299_p2), 523264  }
   0x6   : > { %302 = sbr.rel (%p299_p2) target bundleno = 244 (0xf4), region = 52  ;;  %704 = vmatprep.subr.bf16.mxu0 (!%p299_p2), %v760_v1  ;;  %710 = vmatprep.subr.bf16.mxu1 (!%p299_p2), %v760_v1  ;;  %v749_v2 = vld [vmem:[%s861_s4] sm:$0xff] (!%p299_p2)  }
   0x7   : > { %705 = vmatpush3.bf16.msra.mxu0 (!%p299_p2), %v748_v0  ;;  %706 = vmatprep.mubr.msk.bf16.mxu0 (!%p299_p2), %vm761_vm0, %v760_v1  ;;  %v750_v3 = vld [vmem:[%s860_s3] sm:$0xff] (!%p299_p2)  }
   0x8   : > { %711 = vmatpush3.bf16.msra.mxu1 (!%p299_p2), %v749_v2  ;;  %712 = vmatprep.mubr.msk.bf16.mxu1 (!%p299_p2), %vm761_vm0, %v760_v1  ;;  %v751_v4 = vld [vmem:[%s862_s5] sm:$0xff] (!%p299_p2)  }
   0x9   : > { %716 = vmatprep.subr.bf16.mxu0 (!%p299_p2), %v760_v1  ;;  %722 = vmatprep.subr.bf16.mxu1 (!%p299_p2), %v760_v1  ;;  %v686_v7 = vld [vmem:[%s863_s6] ss:$0 sm:$0xff] (!%p299_p2) }
   0xa   : > { %v689_v8 = vld [vmem:[%s864_s7] ss:$0 sm:$0xff] (!%p299_p2) }
   0xd   : > { %s868_s10 = smov (!%p340_p3, %s675_s10), 1 }
   0xe   : > { %s680_s15 = sshll.u32 %s868_s10, 2  ;;  %s682_s26 = sshll.u32 %s868_s10, 3 }
   0xf   : > { %s343_s22 = scalar_lea.vmem %s857_s0, %s680_s15  ;;  %s347_s25 = scalar_lea.vmem %s858_s1, %s680_s15 }
  0x10   : > { %v359_v5 = vld [vmem:[%s343_s22] sm:$0xf]  ;;  %s351_s14 = scalar_lea.vmem %s865_s8, %s682_s26  ;;  %s355_s17 = scalar_lea.vmem %s866_s9, %s682_s26 }
  0x11   : > { %707 = vmatmul.mubr.msk.bf16.vlgmr.msra.gmra.mrb[0].mxu0 %vm368_vm1, %v359_v5  ;;  %713 = vmatmul.mubr.msk.bf16.vlgmr.msra.gmra.mrb[0].mxu1 %vm368_vm1, %v359_v5  ;;  %v474_v6 = vld [vmem:[%s347_s25] sm:$0xf] }
  0x12   : > { %717 = vmatpush3.bf16.msra.mxu0 %v750_v3  ;;  %723 = vmatpush3.bf16.msra.mxu1 %v751_v4 }
  0x13   : > { %718 = vmatprep.mubr.msk.bf16.mxu0 %vm761_vm0, %v760_v1  ;;  %724 = vmatprep.mubr.msk.bf16.mxu1 %vm761_vm0, %v760_v1 }
  0x1d   : > { %719 = vmatmul.mubr.msk.bf16.vlgmr.msra.gmra.mrb[0].mxu0 %vm368_vm1, %v474_v6  ;;  %725 = vmatmul.mubr.msk.bf16.vlgmr.msra.gmra.mrb[0].mxu1 %vm368_vm1, %v474_v6 }
  0xf0   : > { %v520_v9 = vpop.f32.mrb[0].mxu0  ;;  %v569_v10 = vpop.f32.mrb[0].mxu1 }
  0xf1   : > { %v728_v11 = vadd.f32 %v686_v7, %v520_v9  ;;  %v729_v12 = vadd.f32 %v689_v8, %v569_v10  ;;  %v720_v13 = vpop.f32.mrb[1].mxu0  ;;  %v726_v14 = vpop.f32.mrb[1].mxu1 }
  0xf2   : > { %v523_v15 = vpop.f32.mrb[2].mxu0  ;;  %v572_v16 = vpop.f32.mrb[2].mxu1 }
  0xf3   : > { %577 = vst.msk [vmem:[%s351_s14] sm:$0xff] %vm576_vm2, %v728_v11  ;;  %578 = vst.msk [vmem:[%s355_s17] sm:$0xff] %vm576_vm2, %v729_v12  ;;  %v721_v17 = vpop.f32.mrb[3].mxu0  ;;  %v727_v18 = vpop.f32.mrb[3].mxu1 }
  0xf4 PF: > { %s20_s30 = sadd.s32 1, %s758_s30  }
  0xf5   : > { %p17_p4 = scmp.ge.s32.totalorder %s20_s30, 4  }
  0xf7   :  { %19 = sbr.rel (!%p17_p4) target bundleno = 1 (0x1), region = 97 }

// kernel: audio_visual_predictor.6
= control target key start
LH: loop header
LB: loop body
LE: loop exit
PB: predicated region body
PF: predicated region fallthrough
CT: control target
= control target key end

     0   :  { %s578_s21 = smov 0   ;;  %s616_s0 = inlined_call_operand.vmem [shape: bf16[16,32], index: 0, kind: input, shape index: {}]   ;;  %s617_s1 = inlined_call_operand.vmem [shape: bf16[32,64], index: 1, kind: input, shape index: {}]   ;;  %s618_s2 = inlined_call_operand.vmem [shape: bf16[32,64], index: 2, kind: input, shape index: {}]   ;;  %s619_s3 = inlined_call_operand.vmem [shape: f32[1,64], index: 3, kind: input, shape index: {}]   ;;  %s620_s4 = inlined_call_operand.vmem [shape: f32[1,64], index: 4, kind: input, shape index: {}]   ;;  %s621_s5 = inlined_call_operand.vmem [shape: f32[16,64], index: 5, kind: output, shape index: {0}]   ;;  %s622_s6 = inlined_call_operand.vmem [shape: f32[16,64], index: 6, kind: output, shape index: {1}]  }
   0x1 LB: > { %s479_s22 = sadd.s32 4294967295, %s539_s21   ;;  %p483_p0 = scmp.ge.s32.totalorder %s539_s21, 1  ;;  %s539_s21 = sphi %s578_s21, %s17_s21  }
   0x2   : > { %p214_p1 = scmp.lt.s32.totalorder %s539_s21, 3 }
   0x4   : > { %p215_p2 = pnand %p483_p0, %p214_p1 }
   0x5   : > { %v529_v0 = vld [vmem:[%s617_s1] sm:$0xff] (!%p215_p2)   ;;  %v541_v1 = vmov (!%p215_p2), 0.0   ;;  %v531_v3 = vld [vmem:[%s617_s1 + $0x8] sm:$0xff] (!%p215_p2)   ;;  %vm542_vm0 = vmmov (!%p215_p2), 0   ;;  %p246_p3 = scmp.lt.s32.totalorder (!%p215_p2), %s479_s22, 1  ;;  %vm278_vm1 = vcmask (!%p215_p2), 261120  }
   0x6   : > { %218 = sbr.rel (%p215_p2) target bundleno = 232 (0xe8), region = 40  ;;  %503 = vmatprep.subr.bf16.mxu0 (!%p215_p2), %v541_v1  ;;  %511 = vmatprep.subr.bf16.mxu1 (!%p215_p2), %v541_v1  ;;  %v530_v2 = vld [vmem:[%s618_s2] sm:$0xff] (!%p215_p2)   ;;  %v532_v4 = vld [vmem:[%s618_s2 + $0x8] sm:$0xff] (!%p215_p2)   ;;  %vm392_vm2 = vcmask (!%p215_p2), 523264  }
   0x7   : > { %504 = vmatpush3.bf16.msra.mxu0 (!%p215_p2), %v529_v0  ;;  %507 = vmatprep.mubr.msk.bf16.mxu0 (!%p215_p2), %vm542_vm0, %v541_v1  ;;  %v490_v6 = vld [vmem:[%s619_s3] ss:$0 sm:$0xff] (!%p215_p2) }
   0x8   : > { %512 = vmatpush3.bf16.msra.mxu1 (!%p215_p2), %v530_v2  ;;  %505 = vmatprep.subr.bf16.mxu0 (!%p215_p2), %v541_v1  ;;  %v494_v7 = vld [vmem:[%s620_s4] ss:$0 sm:$0xff] (!%p215_p2) }
   0x9   : > { %513 = vmatprep.subr.bf16.mxu1 (!%p215_p2), %v541_v1  ;;  %515 = vmatprep.mubr.msk.bf16.mxu1 (!%p215_p2), %vm542_vm0, %v541_v1 }
   0xb   : > { %506 = vmatpush3.bf16.msra.mxu0 (!%p215_p2), %v531_v3 }
   0xc   : > { %514 = vmatpush3.bf16.msra.mxu1 (!%p215_p2), %v532_v4 }
   0xd   : > { %s624_s22 = smov (!%p246_p3, %s479_s22), 1 }
   0xe   : > { %s484_s7 = sshll.u32 %s624_s22, 2  ;;  %s485_s11 = sshll.u32 %s624_s22, 3 }
   0xf   : > { %s249_s10 = scalar_lea.vmem %s616_s0, %s484_s7  ;;  %s253_s18 = scalar_lea.vmem %s621_s5, %s485_s11 }
  0x10   : > { %v261_v5 = vld [vmem:[%s249_s10] sm:$0xf]  ;;  %s257_s23 = scalar_lea.vmem %s622_s6, %s485_s11 }
  0x11   : > { %508 = vmatmul.mubr.msk.bf16.vlgmr.msra.gmra.mrb[0].mxu0 %vm278_vm1, %v261_v5  ;;  %516 = vmatmul.mubr.msk.bf16.vlgmr.msra.gmra.mrb[0].mxu1 %vm278_vm1, %v261_v5 }
  0xe4   : > { %v316_v8 = vpop.f32.mrb[0].mxu0  ;;  %v379_v10 = vpop.f32.mrb[0].mxu1 }
  0xe5   : > { %v328_v9 = vadd.f32 %v490_v6, %v316_v8  ;;  %v509_v11 = vpop.f32.mrb[1].mxu0  ;;  %v391_v12 = vadd.f32 %v494_v7, %v379_v10  ;;  %v517_v13 = vpop.f32.mrb[1].mxu1 }
  0xe6   : > { %v319_v14 = vpop.f32.mrb[2].mxu0  ;;  %v382_v15 = vpop.f32.mrb[2].mxu1 }
  0xe7   : > { %393 = vst.msk [vmem:[%s253_s18] sm:$0xff] %vm392_vm2, %v328_v9  ;;  %v510_v16 = vpop.f32.mrb[3].mxu0  ;;  %394 = vst.msk [vmem:[%s257_s23] sm:$0xff] %vm392_vm2, %v391_v12  ;;  %v518_v17 = vpop.f32.mrb[3].mxu1 }
  0xe8 PF: > { %s17_s21 = sadd.s32 1, %s539_s21  }
  0xe9   : > { %p14_p4 = scmp.ge.s32.totalorder %s17_s21, 4  }
  0xeb   :  { %16 = sbr.rel (!%p14_p4) target bundleno = 1 (0x1), region = 82 }

// kernel: audio_visual_predictor.10
= control target key start
LH: loop header
LB: loop body
LE: loop exit
PB: predicated region body
PF: predicated region fallthrough
CT: control target
= control target key end

     0   :  { %s653_s26 = smov 0   ;;  %s692_s0 = inlined_call_operand.vmem [shape: bf16[16,16], index: 0, kind: input, shape index: {}]   ;;  %s693_s1 = inlined_call_operand.vmem [shape: bf16[16,16], index: 1, kind: input, shape index: {}]   ;;  %s694_s2 = inlined_call_operand.vmem [shape: bf16[16,16], index: 2, kind: input, shape index: {}]   ;;  %s695_s3 = inlined_call_operand.vmem [shape: bf16[16,16], index: 3, kind: input, shape index: {}]   ;;  %s696_s4 = inlined_call_operand.vmem [shape: f32[1,16], index: 4, kind: input, shape index: {}]   ;;  %s697_s5 = inlined_call_operand.vmem [shape: bf16[16,1], index: 5, kind: input, shape index: {}]   ;;  %s698_s6 = inlined_call_operand.<no memory space> [shape: f32[1,1], index: 6, kind: input, shape index: {}]   ;;  %s699_s7 = inlined_call_operand.vmem [shape: f32[16,1], index: 7, kind: output, shape index: {}]  }
   0x1   :  { %v12_v0 = vstv %s698_s6 }
   0x2   :  { %13 = vst [vmem:[#allocation2] sm:$0x1] %v12_v0 }
   0x3 LB: > { %s540_s27 = sadd.s32 4294967295, %s606_s26   ;;  %p544_p0 = scmp.ge.s32.totalorder %s606_s26, 1  ;;  %s606_s26 = sphi %s653_s26, %s19_s26  }
   0x4   : > { %p247_p1 = scmp.lt.s32.totalorder %s606_s26, 3 }
   0x6   : > { %p248_p2 = pnand %p544_p0, %p247_p1 }
   0x7   : > { %v593_v1 = vld [vmem:[%s695_s3] sm:$0xff] (!%p248_p2)   ;;  %v608_v2 = vmov (!%p248_p2), 0.0   ;;  %vm609_vm0 = vmmov (!%p248_p2), 0   ;;  %p281_p3 = scmp.lt.s32.totalorder (!%p248_p2), %s540_s27, 1  ;;  %vm306_vm1 = vcmask (!%p248_p2), 130048   ;;  %vm473_vm2 = vcmask (!%p248_p2), 7168  }
   0x8   : > { %251 = sbr.rel (%p248_p2) target bundleno = 481 (0x1e1), region = 48  ;;  %565 = vmatprep.subr.bf16.mxu0 (!%p248_p2), %v608_v2  ;;  %571 = vmatprep.subr.bf16.mxu1 (!%p248_p2), %v608_v2  ;;  %v594_v3 = vld [vmem:[%s694_s2] sm:$0xff] (!%p248_p2)  }
   0x9   : > { %566 = vmatpush3.bf16.msra.mxu0 (!%p248_p2), %v593_v1  ;;  %567 = vmatprep.mubr.msk.bf16.mxu0 (!%p248_p2), %vm609_vm0, %v608_v2  ;;  %v595_v6 = vld [vmem:[%s697_s5] sm:$0xff] (!%p248_p2)  }
   0xa   : > { %572 = vmatpush3.bf16.msra.mxu1 (!%p248_p2), %v594_v3  ;;  %573 = vmatprep.mubr.msk.bf16.mxu1 (!%p248_p2), %vm609_vm0, %v608_v2  ;;  %v552_v9 = vld [vmem:[%s696_s4] ss:$0 sm:$0xff] (!%p248_p2) }
   0xb   : > { %577 = vmatprep.subr.bf16.mxu0 (!%p248_p2), %v608_v2  ;;  %v553_v20 = vld [vmem:[#allocation2] ss:$0 sm:$0xff] (!%p248_p2) }
   0xf   : > { %s701_s27 = smov (!%p281_p3, %s540_s27), 1 }
  0x10   : > { %s545_s8 = sshll.u32 %s701_s27, 2  ;;  %s547_s19 = sshll.u32 %s701_s27, 3 }
  0x11   : > { %s288_s11 = scalar_lea.vmem %s693_s1, %s545_s8  ;;  %s284_s14 = scalar_lea.vmem %s692_s0, %s545_s8 }
  0x12   : > { %v297_v4 = vld [vmem:[%s288_s11] sm:$0xf]  ;;  %s292_s22 = scalar_lea.vmem %s699_s7, %s547_s19 }
  0x13   : > { %568 = vmatmul.mubr.msk.bf16.vlgmr.msra.gmra.mrb[0].mxu0 %vm306_vm1, %v297_v4  ;;  %v294_v5 = vld [vmem:[%s284_s14] sm:$0xf] }
  0x14   : > { %574 = vmatmul.mubr.msk.bf16.vlgmr.msra.gmra.mrb[0].mxu1 %vm306_vm1, %v294_v5  ;;  %579 = vmatprep.mubr.msk.bf16.mxu0 %vm609_vm0, %v608_v2 }
  0x15   : > { %578 = vmatpush3.bf16.msra.mxu0 %v595_v6 }
  0xe6   : > { %v344_v7 = vpop.f32.mrb[0].mxu0 }
  0xe7   : > { %v393_v8 = vpop.f32.mrb[0].mxu1  ;;  %v569_v10 = vpop.f32.mrb[1].mxu0 }
  0xe8   : > { %v394_v11 = vadd.f32 %v393_v8, %v344_v7  ;;  %v575_v12 = vpop.f32.mrb[1].mxu1  ;;  %v347_v13 = vpop.f32.mrb[2].mxu0 }
  0xe9   : > { %v396_v14 = vpop.f32.mrb[2].mxu1  ;;  %v570_v15 = vpop.f32.mrb[3].mxu0 }
  0xea   : > { %v406_v16 = vadd.f32 %v552_v9, %v394_v11  ;;  %v576_v17 = vpop.f32.mrb[3].mxu1 }
  0xec   : > { %v407_v18 = vmax.f32 %v406_v16, 0.0 }
  0xee   : > { %v408_v19 = vpack.c.bf16 %v407_v18, %v407_v18 }
  0xf0   : > { %580 = vmatmul.mubr.msk.bf16.vlgmr.msra.gmra.mrb[4].mxu0 %vm306_vm1, %v408_v19 }
 0x1c3   : > { %v461_v21 = vpop.f32.mrb[4].mxu0 }
 0x1c4   : > { %v462_v22 = vadd.f32 %v553_v20, %v461_v21  ;;  %v581_v23 = vpop.f32.mrb[5].mxu0 }
 0x1c5   : > { %v464_v24 = vpop.f32.mrb[6].mxu0 }
 0x1c6   : > { %v556_v25 = vmul.f32 -1.442695, %v462_v22  ;;  %v582_v26 = vpop.f32.mrb[7].mxu0 }
 0x1c8   : > { %596 = vpow2.f32 %v556_v25 }
 0x1d2   : > { %v597_v27 = vpop.eup %596 }
 0x1d3   : > { %v470_v28 = vadd.f32 1.0, %v597_v27 }
 0x1d5   : > { %598 = vrcp.f32 %v470_v28 }
 0x1df   : > { %v599_v29 = vpop.eup %598 }
 0x1e0   : > { %474 = vst.msk [vmem:[%s292_s22] sm:$0xff] %vm473_vm2, %v599_v29 }
 0x1e1 PF: > { %s19_s26 = sadd.s32 1, %s606_s26  }
 0x1e2   : > { %p16_p4 = scmp.ge.s32.totalorder %s19_s26, 4  }
 0x1e4   :  { %18 = sbr.rel (!%p16_p4) target bundleno = 3 (0x3), region = 81 }

// kernel: audio_visual_predictor.7
= control target key start
LH: loop header
LB: loop body
LE: loop exit
PB: predicated region body
PF: predicated region fallthrough
CT: control target
= control target key end

     0   :  { %vm86_vm0 = vcmask 123904   ;;  %v2354_v0 = vmov 0.0   ;;  %vm2355_vm1 = vmmov 0   ;;  %vm108_vm2 = vcmask 130048   ;;  %s2356_s28 = smov 16   ;;  %s2358_s10 = smov 96   ;;  %s3106_s4 = inlined_call_operand.vmem [shape: bf16[16,64], index: 4, kind: input, shape index: {}]   ;;  %s3107_s5 = inlined_call_operand.vmem [shape: bf16[16,64], index: 5, kind: input, shape index: {}]   ;;  %s3108_s2 = inlined_call_operand.vmem [shape: f32[8,2,64], index: 2, kind: input, shape index: {}]   ;;  %s3109_s3 = inlined_call_operand.vmem [shape: f32[8,2,64], index: 3, kind: input, shape index: {}]   ;;  %s3110_s0 = inlined_call_operand.vmem [shape: f32[8,2,1], index: 0, kind: input, shape index: {}, may-alias: {0,1}]   ;;  %s3111_s1 = inlined_call_operand.vmem [shape: f32[8,2,1], index: 1, kind: input, shape index: {}, may-alias: {0,1}]   ;;  %s3112_s6 = inlined_call_operand.vmem [shape: bf16[8,2,16], index: 6, kind: output, shape index: {0}]   ;;  %s3113_s7 = inlined_call_operand.vmem [shape: bf16[8,2,16], index: 7, kind: output, shape index: {1}]  }
   0x1   :  { %2114 = vmatprep.subr.bf16.mxu0 %v2354_v0  ;;  %v2408_v1 = vld [vmem:[%s3106_s4] sm:$0xff]   ;;  %2120 = vmatprep.subr.bf16.mxu1 %v2354_v0  ;;  %87 = vst.msk [vmem:[#allocation2] sm:$0x3] %vm86_vm0, %v2354_v0  ;;  %88 = vst.msk [vmem:[#allocation3] sm:$0x3] %vm86_vm0, %v2354_v0  ;;  %v2357_v21 = vmov 0  }
   0x2   :  { %89 = vst.msk [vmem:[#allocation4] sm:$0x3] %vm86_vm0, %v2354_v0  ;;  %90 = vst.msk [vmem:[#allocation5] sm:$0x3] %vm86_vm0, %v2354_v0  ;;  %v2422_v2 = vld [vmem:[%s3107_s5] sm:$0xff]   ;;  %2116 = vmatprep.mubr.msk.bf16.mxu0 %vm2355_vm1, %v2354_v0  ;;  %2122 = vmatprep.mubr.msk.bf16.mxu1 %vm2355_vm1, %v2354_v0  ;;  %s2359_s15 = smov 32  }
   0x3   :  { %2115 = vmatpush3.bf16.msra.mxu0 %v2408_v1  ;;  %2121 = vmatpush3.bf16.msra.mxu1 %v2422_v2  ;;  %v99_v9 = vld [vmem:[%s3108_s2] sm:$0x3]  ;;  %v2009_v10 = vld [vmem:[%s3109_s3 + $0xe] sm:$0x3]  ;;  %s2360_s16 = smov 48   ;;  %s2361_s17 = smov 80  }
   0x4   :  { %2126 = vmatprep.subr.bf16.mxu0 %v2354_v0  ;;  %2132 = vmatprep.subr.bf16.mxu1 %v2354_v0  ;;  %v100_v32 = vld [vmem:[%s3110_s0] sm:$0x3]  ;;  %v2010_v37 = vld [vmem:[%s3111_s1 + $0xe] sm:$0x3]  ;;  %vm225_vm3 = vcmask 122880  }
   0x5   :  { %2220 = vset.pattern.permute.xlu0 %v2357_v21  ;;  %2221 = vset.pattern.permute.xlu1 %v2357_v21  ;;  %v187_v34 = vsub.f32 1.0, %v100_v32  ;;  %v316_v39 = vsub.f32 1.0, %v2010_v37 }
   0x8   :  { %v2432_v3 = vld [vmem:[#allocation2] sm:$0x3]  ;;  %v2436_v5 = vld [vmem:[#allocation3] sm:$0x3] }
   0x9   :  { %v2434_v4 = vld [vmem:[#allocation4] sm:$0x3]  ;;  %v101_v6 = vpack.c.bf16 %v2432_v3, %v2432_v3  ;;  %161 = vrot.lane.b32.xlu1 %v2436_v5, %s2356_s28  ;;  %v2444_v8 = vld [vmem:[#allocation5] sm:$0x3] }
   0xa   :  { %v231_v7 = vpack.c.bf16 %v2434_v4, %v2434_v4 }
   0xb   :  { %2117 = vmatmul.mubr.msk.bf16.vlgmr.msra.gmra.mrb[0].mxu0 %vm108_vm2, %v101_v6 }
   0xc   :  { %2123 = vmatmul.mubr.msk.bf16.vlgmr.msra.gmra.mrb[0].mxu1 %vm108_vm2, %v231_v7  ;;  %2127 = vmatpush3.bf16.msra.mxu0 %v2408_v1 }
   0xd   :  { %2133 = vmatpush3.bf16.msra.mxu1 %v2422_v2  ;;  %290 = vrot.lane.b32.xlu1 %v2444_v8, %s2356_s28 }
   0xe   :  { %2128 = vmatprep.mubr.msk.bf16.mxu0 %vm2355_vm1, %v2354_v0  ;;  %2134 = vmatprep.mubr.msk.bf16.mxu1 %vm2355_vm1, %v2354_v0 }
   0xf   :  { %2138 = vmatprep.subr.bf16.mxu0 %v2354_v0  ;;  %2144 = vmatprep.subr.bf16.mxu1 %v2354_v0 }
  0x7b   :  { %v162_v40 = vpop.permute.xlu1 %161 }
  0x7f   :  { %v291_v42 = vpop.permute.xlu1 %290 }
  0xde   :  { %v146_v11 = vpop.f32.mrb[0].mxu0 }
  0xdf   :  { %v275_v12 = vpop.f32.mrb[0].mxu1  ;;  %v152_v13 = vadd.f32 %v146_v11, %v99_v9  ;;  %v2118_v14 = vpop.f32.mrb[1].mxu0  ;;  %v2015_v11 = vld [vmem:[%s3108_s2 + $0x2] sm:$0x3] }
  0xe0   :  { %v281_v15 = vadd.f32 %v2009_v10, %v275_v12  ;;  %v2124_v16 = vpop.f32.mrb[1].mxu1  ;;  %v149_v17 = vpop.f32.mrb[2].mxu0 }
  0xe1   :  { %v278_v18 = vpop.f32.mrb[2].mxu1  ;;  %2224 = vtanh.f32 %v152_v13  ;;  %v2119_v19 = vpop.f32.mrb[3].mxu0  ;;  %v2008_v24 = vmul.f32 -1.442695, %v152_v13  ;;  %v2020_v16 = vld [vmem:[%s3109_s3 + $0xc] sm:$0x3] }
  0xe2   :  { %v2125_v20 = vpop.f32.mrb[3].mxu1  ;;  %2226 = vtanh.f32 %v281_v15  ;;  %v2013_v25 = vmul.f32 -1.442695, %v281_v15 }
  0xe3   :  { %2228 = vpow2.f32 %v2008_v24 }
  0xe4   :  { %2230 = vpow2.f32 %v2013_v25 }
  0xeb   :  { %v2225_v22 = vpop.eup %2224 }
  0xec   :  { %166 = vrot.lane.b32.xlu0 %v2225_v22, %s2358_s10  ;;  %v2227_v23 = vpop.eup %2226 }
  0xed   :  { %v2229_v26 = vpop.eup %2228 }
  0xee   :  { %v156_v27 = vadd.f32 1.0, %v2229_v26  ;;  %v2231_v28 = vpop.eup %2230 }
  0xef   :  { %v285_v29 = vadd.f32 1.0, %v2231_v28 }
  0xf0   :  { %295 = vrot.lane.b32.xlu0 %v2227_v23, %s2358_s10  ;;  %2232 = vrcp.f32 %v156_v27 }
  0xf1   :  { %2234 = vrcp.f32 %v285_v29 }
  0xfa   :  { %v2233_v30 = vpop.eup %2232 }
  0xfb   :  { %v2235_v35 = vpop.eup %2234  ;;  %v164_v41 = vmul.f32 %v2233_v30, %v162_v40 }
  0xfc   :  { %v293_v45 = vmul.f32 %v2235_v35, %v291_v42 }
 0x15e   :  { %v167_v31 = vpop.permute.xlu0 %166 }
 0x15f   :  { %v169_v33 = vmul.f32 %v2233_v30, %v167_v31 }
 0x161   :  { %171 = vrot.lane.b32.xlu0 %v169_v33, %s2356_s28 }
 0x162   :  { %v296_v36 = vpop.permute.xlu0 %295 }
 0x163   :  { %v298_v38 = vmul.f32 %v2235_v35, %v296_v36 }
 0x165   :  { %300 = vrot.lane.b32.xlu1 %v298_v38, %s2356_s28  ;;  %190 = vperm.xlu0 %2220, %v187_v34  }
 0x169   :  { %319 = vperm.xlu1 %2221, %v316_v39   ;;  %312 = vperm.xlu0 %2220, %v2010_v37   ;;  %v2021_v39 = vld [vmem:[%s3111_s1 + $0xc] sm:$0x3] }
 0x16a   :  { %v552_v40 = vsub.f32 1.0, %v2021_v39 }
 0x16d   :  { %183 = vperm.xlu1 %2221, %v100_v32  }
 0x1d3   :  { %v172_v43 = vpop.permute.xlu0 %171 }
 0x1d4   :  { %v2474_v44 = vadd.f32 %v172_v43, %v164_v41 }
 0x1d6   :  { %2236 = vtanh.f32 %v2474_v44 }
 0x1d7   :  { %v301_v46 = vpop.permute.xlu1 %300 }
 0x1d8   :  { %v2477_v47 = vadd.f32 %v301_v46, %v293_v45 }
 0x1da   :  { %2238 = vtanh.f32 %v2477_v47 }
 0x1e0   :  { %v2237_v48 = vpop.eup %2236 }
 0x1e1   :  { %177 = vrot.lane.b32.xlu1 %v2237_v48, %s2359_s15 }
 0x1e4   :  { %v2239_v49 = vpop.eup %2238  ;;  %v191_v50 = vpop.permute.xlu0 %190 }
 0x1e5   :  { %v193_v51 = vmul.f32 %v191_v50, %v2432_v3  ;;  %306 = vrot.lane.b32.xlu0 %v2239_v49, %s2359_s15  ;;  %v200_v24 = vmul.f32 %v191_v50, %v2436_v5 }
 0x1e7   :  { %195 = vrot.lane.b32.xlu1 %v193_v51, %s2360_s16 }
 0x1e8   :  { %v320_v52 = vpop.permute.xlu1 %319  ;;  %v2486_v55 = vpop.permute.xlu0 %312 }
 0x1e9   :  { %v322_v53 = vmul.f32 %v320_v52, %v2434_v4  ;;  %v329_v26 = vmul.f32 %v320_v52, %v2444_v8  ;;  %v2016_v8 = vld [vmem:[%s3110_s0 + $0x2] sm:$0x3]  ;;  %v328_v46 = vmul.f32 %v2486_v55, %v2477_v47 }
 0x1ea   :  { %v438_v38 = vsub.f32 1.0, %v2016_v8 }
 0x1eb   :  { %324 = vrot.lane.b32.xlu0 %v322_v53, %s2360_s16 }
 0x1ec   :  { %v2484_v54 = vpop.permute.xlu1 %183 }
 0x1ed   :  { %v199_v42 = vmul.f32 %v2484_v54, %v2474_v44 }
 0x253   :  { %v178_v56 = vpop.permute.xlu1 %177 }
 0x254   :  { %v180_v57 = vmul.f32 %v2233_v30, %v178_v56 }
 0x256   :  { %v2489_v60 = vmul.f32 %v2484_v54, %v180_v57 }
 0x257   :  { %v307_v58 = vpop.permute.xlu0 %306 }
 0x258   :  { %v309_v59 = vmul.f32 %v2235_v35, %v307_v58 }
 0x259   :  { %v196_v61 = vpop.permute.xlu1 %195 }
 0x25a   :  { %v2492_v62 = vadd.f32 %v196_v61, %v2489_v60  ;;  %v2497_v3 = vmul.f32 %v2486_v55, %v309_v59 }
 0x25c   :  { %v360_v63 = vpack.c.bf16 %v2492_v62, %v2492_v62 }
 0x25d   :  { %v325_v4 = vpop.permute.xlu0 %324 }
 0x25e   :  { %v2500_v6 = vadd.f32 %v325_v4, %v2497_v3  ;;  %362 = vrot.lane.b32.xlu1 %v360_v63, %s2361_s17 }
 0x260   :  { %v474_v7 = vpack.c.bf16 %v2500_v6, %v2500_v6 }
 0x262   :  { %476 = vrot.lane.b32.xlu0 %v474_v7, %s2361_s17 }
 0x2d0   :  { %v363_v9 = vpop.permute.xlu1 %362 }
 0x2d1   :  { %2129 = vmatmul.mubr.msk.bf16.vlgmr.msra.gmra.mrb[4].mxu0 %vm108_vm2, %v363_v9 }
 0x2d2   :  { %2139 = vmatpush3.bf16.msra.mxu0 %v2408_v1  ;;  %2140 = vmatprep.mubr.msk.bf16.mxu0 %vm2355_vm1, %v2354_v0 }
 0x2d3   :  { %2150 = vmatprep.subr.bf16.mxu0 %v2354_v0 }
 0x2d4   :  { %v477_v10 = vpop.permute.xlu0 %476 }
 0x2d5   :  { %2135 = vmatmul.mubr.msk.bf16.vlgmr.msra.gmra.mrb[4].mxu1 %vm108_vm2, %v477_v10 }
 0x2d6   :  { %2145 = vmatpush3.bf16.msra.mxu1 %v2422_v2  ;;  %2146 = vmatprep.mubr.msk.bf16.mxu1 %vm2355_vm1, %v2354_v0 }
 0x2d7   :  { %2156 = vmatprep.subr.bf16.mxu1 %v2354_v0 }
 0x3a4   :  { %v401_v12 = vpop.f32.mrb[4].mxu0 }
 0x3a5   :  { %v407_v13 = vadd.f32 %v2015_v11, %v401_v12  ;;  %v2130_v14 = vpop.f32.mrb[5].mxu0 }
 0x3a6   :  { %v404_v15 = vpop.f32.mrb[6].mxu0 }
 0x3a7   :  { %2240 = vtanh.f32 %v407_v13  ;;  %v2131_v17 = vpop.f32.mrb[7].mxu0  ;;  %v2018_v27 = vmul.f32 -1.442695, %v407_v13 }
 0x3a8   :  { %v515_v18 = vpop.f32.mrb[4].mxu1 }
 0x3a9   :  { %v521_v19 = vadd.f32 %v2020_v16, %v515_v18  ;;  %v2136_v20 = vpop.f32.mrb[5].mxu1 }
 0x3aa   :  { %v518_v21 = vpop.f32.mrb[6].mxu1 }
 0x3ab   :  { %2242 = vtanh.f32 %v521_v19  ;;  %v2137_v22 = vpop.f32.mrb[7].mxu1  ;;  %v2023_v28 = vmul.f32 -1.442695, %v521_v19  ;;  %v2025_v19 = vld [vmem:[%s3108_s2 + $0x4] sm:$0x3] }
 0x3ac   :  { %2244 = vpow2.f32 %v2018_v27 }
 0x3ad   :  { %2246 = vpow2.f32 %v2023_v28 }
 0x3b1   :  { %v2241_v23 = vpop.eup %2240 }
 0x3b2   :  { %417 = vrot.lane.b32.xlu1 %v2241_v23, %s2358_s10 }
 0x3b5   :  { %v2243_v25 = vpop.eup %2242 }
 0x3b6   :  { %202 = vrot.lane.b32.xlu1 %v200_v24, %s2356_s28  ;;  %531 = vrot.lane.b32.xlu0 %v2243_v25, %s2358_s10  ;;  %v2245_v29 = vpop.eup %2244  ;;  %v2030_v24 = vld [vmem:[%s3109_s3 + $0xa] sm:$0x3] }
 0x3b7   :  { %v411_v30 = vadd.f32 1.0, %v2245_v29  ;;  %v2247_v31 = vpop.eup %2246 }
 0x3b8   :  { %v525_v32 = vadd.f32 1.0, %v2247_v31 }
 0x3b9   :  { %2248 = vrcp.f32 %v411_v30 }
 0x3ba   :  { %331 = vrot.lane.b32.xlu0 %v329_v26, %s2356_s28  ;;  %2250 = vrcp.f32 %v525_v32 }
 0x3c3   :  { %v2249_v5 = vpop.eup %2248 }
 0x3c4   :  { %v2251_v35 = vpop.eup %2250 }
 0x424   :  { %v418_v33 = vpop.permute.xlu1 %417 }
 0x425   :  { %v420_v34 = vmul.f32 %v2249_v5, %v418_v33 }
 0x427   :  { %422 = vrot.lane.b32.xlu1 %v420_v34, %s2356_s28 }
 0x428   :  { %v532_v36 = vpop.permute.xlu0 %531  ;;  %v203_v41 = vpop.permute.xlu1 %202 }
 0x429   :  { %v534_v37 = vmul.f32 %v2251_v35, %v532_v36  ;;  %v205_v43 = vadd.f32 %v203_v41, %v199_v42  ;;  %v2026_v42 = vld [vmem:[%s3110_s0 + $0x4] sm:$0x3] }
 0x42b   :  { %434 = vperm.xlu1 %2221, %v2016_v8   ;;  %536 = vrot.lane.b32.xlu0 %v534_v37, %s2356_s28  ;;  %v415_v49 = vmul.f32 %v2249_v5, %v205_v43 }
 0x42c   :  { %v332_v45 = vpop.permute.xlu0 %331 }
 0x42d   :  { %v2540_v48 = vadd.f32 %v332_v45, %v328_v46  ;;  %v666_v45 = vsub.f32 1.0, %v2026_v42  ;;  %v2031_v46 = vld [vmem:[%s3111_s1 + $0xa] sm:$0x3] }
 0x42f   :  { %548 = vperm.xlu1 %2221, %v2021_v39   ;;  %441 = vperm.xlu0 %2220, %v438_v38   ;;  %v529_v52 = vmul.f32 %v2251_v35, %v2540_v48 }
 0x433   :  { %555 = vperm.xlu0 %2220, %v552_v40  }
 0x499   :  { %v423_v50 = vpop.permute.xlu1 %422 }
 0x49a   :  { %v425_v51 = vadd.f32 %v423_v50, %v415_v49  ;;  %v780_v49 = vsub.f32 1.0, %v2031_v46 }
 0x49c   :  { %2252 = vtanh.f32 %v425_v51 }
 0x49d   :  { %v537_v53 = vpop.permute.xlu0 %536 }
 0x49e   :  { %v2543_v56 = vadd.f32 %v537_v53, %v529_v52 }
 0x4a0   :  { %2254 = vtanh.f32 %v2543_v56 }
 0x4a6   :  { %v2253_v57 = vpop.eup %2252 }
 0x4a7   :  { %428 = vrot.lane.b32.xlu1 %v2253_v57, %s2359_s15 }
 0x4aa   :  { %v2255_v44 = vpop.eup %2254  ;;  %v435_v47 = vpop.permute.xlu1 %434 }
 0x4ab   :  { %542 = vrot.lane.b32.xlu0 %v2255_v44, %s2359_s15  ;;  %v446_v55 = vmul.f32 %v435_v47, %v425_v51 }
 0x4ae   :  { %v442_v54 = vpop.permute.xlu0 %441  ;;  %v2550_v61 = vpop.permute.xlu1 %548 }
 0x4af   :  { %v447_v58 = vmul.f32 %v442_v54, %v205_v43  ;;  %v444_v9 = vmul.f32 %v442_v54, %v2492_v62  ;;  %v560_v51 = vmul.f32 %v2550_v61, %v2543_v56 }
 0x4b1   :  { %v2548_v59 = vadd.f32 %v447_v58, %v446_v55 }
 0x4b2   :  { %v2552_v63 = vpop.permute.xlu0 %555 }
 0x4b3   :  { %v558_v14 = vmul.f32 %v2552_v63, %v2500_v6  ;;  %v561_v50 = vmul.f32 %v2552_v63, %v2540_v48 }
 0x4b5   :  { %v2605_v57 = vadd.f32 %v561_v50, %v560_v51  ;;  %v2036_v50 = vld [vmem:[%s3110_s0 + $0x6] sm:$0x3] }
 0x519   :  { %v429_v4 = vpop.permute.xlu1 %428 }
 0x51a   :  { %v431_v7 = vmul.f32 %v2249_v5, %v429_v4 }
 0x51c   :  { %v2555_v10 = vmul.f32 %v435_v47, %v431_v7 }
 0x51d   :  { %v543_v11 = vpop.permute.xlu0 %542 }
 0x51e   :  { %v2558_v12 = vadd.f32 %v444_v9, %v2555_v10  ;;  %v545_v13 = vmul.f32 %v2251_v35, %v543_v11 }
 0x520   :  { %v2563_v15 = vmul.f32 %v2550_v61, %v545_v13  ;;  %v588_v16 = vpack.c.bf16 %v2558_v12, %v2558_v12 }
 0x522   :  { %v2568_v17 = vadd.f32 %v558_v14, %v2563_v15  ;;  %590 = vrot.lane.b32.xlu1 %v588_v16, %s2361_s17 }
 0x524   :  { %v702_v62 = vpack.c.bf16 %v2568_v17, %v2568_v17 }
 0x526   :  { %704 = vrot.lane.b32.xlu0 %v702_v62, %s2361_s17 }
 0x594   :  { %v591_v18 = vpop.permute.xlu1 %590 }
 0x595   :  { %2141 = vmatmul.mubr.msk.bf16.vlgmr.msra.gmra.mrb[8].mxu0 %vm108_vm2, %v591_v18 }
 0x596   :  { %2151 = vmatpush3.bf16.msra.mxu0 %v2408_v1  ;;  %2152 = vmatprep.mubr.msk.bf16.mxu0 %vm2355_vm1, %v2354_v0 }
 0x597   :  { %2162 = vmatprep.subr.bf16.mxu0 %v2354_v0 }
 0x598   :  { %v705_v6 = vpop.permute.xlu0 %704 }
 0x599   :  { %2147 = vmatmul.mubr.msk.bf16.vlgmr.msra.gmra.mrb[8].mxu1 %vm108_vm2, %v705_v6 }
 0x59a   :  { %2157 = vmatpush3.bf16.msra.mxu1 %v2422_v2  ;;  %2158 = vmatprep.mubr.msk.bf16.mxu1 %vm2355_vm1, %v2354_v0 }
 0x59b   :  { %2168 = vmatprep.subr.bf16.mxu1 %v2354_v0 }
 0x668   :  { %v629_v20 = vpop.f32.mrb[8].mxu0 }
 0x669   :  { %v635_v21 = vadd.f32 %v2025_v19, %v629_v20  ;;  %v2142_v22 = vpop.f32.mrb[9].mxu0 }
 0x66a   :  { %v632_v23 = vpop.f32.mrb[10].mxu0 }
 0x66b   :  { %2256 = vtanh.f32 %v635_v21  ;;  %v2143_v25 = vpop.f32.mrb[11].mxu0  ;;  %v2028_v5 = vmul.f32 -1.442695, %v635_v21 }
 0x66c   :  { %v743_v26 = vpop.f32.mrb[8].mxu1 }
 0x66d   :  { %v749_v27 = vadd.f32 %v2030_v24, %v743_v26  ;;  %v2148_v28 = vpop.f32.mrb[9].mxu1  ;;  %v2035_v24 = vld [vmem:[%s3108_s2 + $0x6] sm:$0x3] }
 0x66e   :  { %v746_v29 = vpop.f32.mrb[10].mxu1 }
 0x66f   :  { %2258 = vtanh.f32 %v749_v27  ;;  %v2149_v30 = vpop.f32.mrb[11].mxu1  ;;  %v2033_v33 = vmul.f32 -1.442695, %v749_v27  ;;  %v2040_v29 = vld [vmem:[%s3109_s3 + $0x8] sm:$0x3] }
 0x670   :  { %2260 = vpow2.f32 %v2028_v5 }
 0x671   :  { %2262 = vpow2.f32 %v2033_v33 }
 0x675   :  { %v2257_v31 = vpop.eup %2256 }
 0x676   :  { %645 = vrot.lane.b32.xlu1 %v2257_v31, %s2358_s10 }
 0x679   :  { %v2259_v32 = vpop.eup %2258 }
 0x67a   :  { %759 = vrot.lane.b32.xlu0 %v2259_v32, %s2358_s10  ;;  %v2261_v34 = vpop.eup %2260 }
 0x67b   :  { %v639_v35 = vadd.f32 1.0, %v2261_v34  ;;  %v2263_v36 = vpop.eup %2262 }
 0x67c   :  { %v753_v8 = vadd.f32 1.0, %v2263_v36 }
 0x67d   :  { %2264 = vrcp.f32 %v639_v35 }
 0x67e   :  { %2266 = vrcp.f32 %v753_v8 }
 0x687   :  { %v2265_v37 = vpop.eup %2264 }
 0x688   :  { %v2267_v40 = vpop.eup %2266  ;;  %v643_v52 = vmul.f32 %v2265_v37, %v2548_v59 }
 0x689   :  { %v757_v47 = vmul.f32 %v2267_v40, %v2605_v57 }
 0x6e8   :  { %v646_v38 = vpop.permute.xlu1 %645 }
 0x6e9   :  { %v648_v39 = vmul.f32 %v2265_v37, %v646_v38 }
 0x6eb   :  { %650 = vrot.lane.b32.xlu1 %v648_v39, %s2356_s28 }
 0x6ec   :  { %v760_v41 = vpop.permute.xlu0 %759 }
 0x6ed   :  { %v762_v43 = vmul.f32 %v2267_v40, %v760_v41 }
 0x6ef   :  { %662 = vperm.xlu1 %2221, %v2026_v42   ;;  %764 = vrot.lane.b32.xlu0 %v762_v43, %s2356_s28 }
 0x6f3   :  { %776 = vperm.xlu1 %2221, %v2031_v46   ;;  %669 = vperm.xlu0 %2220, %v666_v45  }
 0x6f7   :  { %783 = vperm.xlu0 %2220, %v780_v49  }
 0x75d   :  { %v651_v53 = vpop.permute.xlu1 %650 }
 0x75e   :  { %v653_v44 = vadd.f32 %v651_v53, %v643_v52  ;;  %v894_v52 = vsub.f32 1.0, %v2036_v50  ;;  %v2041_v53 = vld [vmem:[%s3111_s1 + $0x8] sm:$0x3] }
 0x760   :  { %2268 = vtanh.f32 %v653_v44 }
 0x761   :  { %v765_v54 = vpop.permute.xlu0 %764 }
 0x762   :  { %v2608_v55 = vadd.f32 %v765_v54, %v757_v47 }
 0x764   :  { %2270 = vtanh.f32 %v2608_v55 }
 0x76a   :  { %v2269_v58 = vpop.eup %2268 }
 0x76b   :  { %656 = vrot.lane.b32.xlu1 %v2269_v58, %s2359_s15 }
 0x76e   :  { %v2271_v48 = vpop.eup %2270  ;;  %v663_v56 = vpop.permute.xlu1 %662 }
 0x76f   :  { %770 = vrot.lane.b32.xlu0 %v2271_v48, %s2359_s15  ;;  %v674_v63 = vmul.f32 %v663_v56, %v653_v44  ;;  %v1008_v44 = vsub.f32 1.0, %v2041_v53 }
 0x772   :  { %v670_v61 = vpop.permute.xlu0 %669  ;;  %v2616_v9 = vpop.permute.xlu1 %776 }
 0x773   :  { %v675_v4 = vmul.f32 %v670_v61, %v2548_v59  ;;  %v672_v16 = vmul.f32 %v670_v61, %v2558_v12  ;;  %v788_v54 = vmul.f32 %v2616_v9, %v2608_v55 }
 0x775   :  { %v2614_v7 = vadd.f32 %v675_v4, %v674_v63 }
 0x776   :  { %v2618_v11 = vpop.permute.xlu0 %783 }
 0x777   :  { %v786_v59 = vmul.f32 %v2618_v11, %v2568_v17  ;;  %v789_v47 = vmul.f32 %v2618_v11, %v2605_v57 }
 0x7dd   :  { %v657_v13 = vpop.permute.xlu1 %656 }
 0x7de   :  { %v659_v14 = vmul.f32 %v2265_v37, %v657_v13 }
 0x7e0   :  { %v2621_v62 = vmul.f32 %v663_v56, %v659_v14  ;;  %v2671_v56 = vadd.f32 %v789_v47, %v788_v54 }
 0x7e1   :  { %v771_v18 = vpop.permute.xlu0 %770 }
 0x7e2   :  { %v2624_v6 = vadd.f32 %v672_v16, %v2621_v62  ;;  %v773_v19 = vmul.f32 %v2267_v40, %v771_v18 }
 0x7e4   :  { %v2629_v20 = vmul.f32 %v2616_v9, %v773_v19  ;;  %v816_v21 = vpack.c.bf16 %v2624_v6, %v2624_v6 }
 0x7e6   :  { %v2634_v22 = vadd.f32 %v786_v59, %v2629_v20  ;;  %818 = vrot.lane.b32.xlu1 %v816_v21, %s2361_s17 }
 0x7e8   :  { %v930_v12 = vpack.c.bf16 %v2634_v22, %v2634_v22 }
 0x7ea   :  { %932 = vrot.lane.b32.xlu0 %v930_v12, %s2361_s17 }
 0x858   :  { %v819_v23 = vpop.permute.xlu1 %818 }
 0x859   :  { %2153 = vmatmul.mubr.msk.bf16.vlgmr.msra.gmra.mrb[12].mxu0 %vm108_vm2, %v819_v23 }
 0x85a   :  { %2163 = vmatpush3.bf16.msra.mxu0 %v2408_v1  ;;  %2164 = vmatprep.mubr.msk.bf16.mxu0 %vm2355_vm1, %v2354_v0 }
 0x85b   :  { %2174 = vmatprep.subr.bf16.mxu0 %v2354_v0 }
 0x85c   :  { %v933_v17 = vpop.permute.xlu0 %932 }
 0x85d   :  { %2159 = vmatmul.mubr.msk.bf16.vlgmr.msra.gmra.mrb[12].mxu1 %vm108_vm2, %v933_v17 }
 0x85e   :  { %2169 = vmatpush3.bf16.msra.mxu1 %v2422_v2  ;;  %2170 = vmatprep.mubr.msk.bf16.mxu1 %vm2355_vm1, %v2354_v0 }
 0x85f   :  { %2180 = vmatprep.subr.bf16.mxu1 %v2354_v0 }
 0x92c   :  { %v857_v25 = vpop.f32.mrb[12].mxu0 }
 0x92d   :  { %v863_v26 = vadd.f32 %v2035_v24, %v857_v25  ;;  %v2154_v27 = vpop.f32.mrb[13].mxu0 }
 0x92e   :  { %v860_v28 = vpop.f32.mrb[14].mxu0 }
 0x92f   :  { %2272 = vtanh.f32 %v863_v26  ;;  %v2155_v30 = vpop.f32.mrb[15].mxu0  ;;  %v2038_v8 = vmul.f32 -1.442695, %v863_v26 }
 0x930   :  { %v971_v31 = vpop.f32.mrb[12].mxu1 }
 0x931   :  { %v977_v32 = vadd.f32 %v2040_v29, %v971_v31  ;;  %v2160_v5 = vpop.f32.mrb[13].mxu1  ;;  %v2045_v31 = vld [vmem:[%s3108_s2 + $0x8] sm:$0x3] }
 0x932   :  { %v974_v33 = vpop.f32.mrb[14].mxu1 }
 0x933   :  { %2274 = vtanh.f32 %v977_v32  ;;  %v2161_v34 = vpop.f32.mrb[15].mxu1  ;;  %v2043_v37 = vmul.f32 -1.442695, %v977_v32 }
 0x934   :  { %2276 = vpow2.f32 %v2038_v8 }
 0x935   :  { %2278 = vpow2.f32 %v2043_v37 }
 0x939   :  { %v2273_v35 = vpop.eup %2272 }
 0x93a   :  { %873 = vrot.lane.b32.xlu1 %v2273_v35, %s2358_s10  ;;  %v2050_v35 = vld [vmem:[%s3109_s3 + $0x6] sm:$0x3] }
 0x93d   :  { %v2275_v36 = vpop.eup %2274 }
 0x93e   :  { %987 = vrot.lane.b32.xlu0 %v2275_v36, %s2358_s10  ;;  %v2277_v38 = vpop.eup %2276 }
 0x93f   :  { %v867_v39 = vadd.f32 1.0, %v2277_v38  ;;  %v2279_v40 = vpop.eup %2278 }
 0x940   :  { %v981_v41 = vadd.f32 1.0, %v2279_v40 }
 0x941   :  { %2280 = vrcp.f32 %v867_v39 }
 0x942   :  { %2282 = vrcp.f32 %v981_v41 }
 0x94b   :  { %v2281_v42 = vpop.eup %2280 }
 0x94c   :  { %v2283_v46 = vpop.eup %2282  ;;  %v871_v58 = vmul.f32 %v2281_v42, %v2614_v7 }
 0x94d   :  { %v985_v63 = vmul.f32 %v2283_v46, %v2671_v56 }
 0x9ac   :  { %v874_v43 = vpop.permute.xlu1 %873 }
 0x9ad   :  { %v876_v45 = vmul.f32 %v2281_v42, %v874_v43 }
 0x9af   :  { %878 = vrot.lane.b32.xlu1 %v876_v45, %s2356_s28 }
 0x9b0   :  { %v988_v49 = vpop.permute.xlu0 %987 }
 0x9b1   :  { %v990_v51 = vmul.f32 %v2283_v46, %v988_v49 }
 0x9b3   :  { %890 = vperm.xlu1 %2221, %v2036_v50   ;;  %992 = vrot.lane.b32.xlu0 %v990_v51, %s2356_s28 }
 0x9b7   :  { %1004 = vperm.xlu1 %2221, %v2041_v53   ;;  %897 = vperm.xlu0 %2220, %v894_v52  }
 0x9bb   :  { %1011 = vperm.xlu0 %2220, %v1008_v44  }
 0xa21   :  { %v879_v48 = vpop.permute.xlu1 %878 }
 0xa22   :  { %v881_v61 = vadd.f32 %v879_v48, %v871_v58  ;;  %v2046_v58 = vld [vmem:[%s3110_s0 + $0x8] sm:$0x3] }
 0xa24   :  { %2284 = vtanh.f32 %v881_v61 }
 0xa25   :  { %v993_v4 = vpop.permute.xlu0 %992 }
 0xa26   :  { %v2674_v13 = vadd.f32 %v993_v4, %v985_v63  ;;  %v2051_v63 = vld [vmem:[%s3111_s1 + $0x6] sm:$0x3] }
 0xa27   :  { %v1236_v4 = vsub.f32 1.0, %v2051_v63 }
 0xa28   :  { %2286 = vtanh.f32 %v2674_v13 }
 0xa2e   :  { %v2285_v14 = vpop.eup %2284 }
 0xa2f   :  { %884 = vrot.lane.b32.xlu1 %v2285_v14, %s2359_s15 }
 0xa32   :  { %v2287_v57 = vpop.eup %2286  ;;  %v891_v55 = vpop.permute.xlu1 %890 }
 0xa33   :  { %998 = vrot.lane.b32.xlu0 %v2287_v57, %s2359_s15  ;;  %v902_v11 = vmul.f32 %v891_v55, %v881_v61  ;;  %v1122_v61 = vsub.f32 1.0, %v2046_v58 }
 0xa36   :  { %v898_v9 = vpop.permute.xlu0 %897  ;;  %v2682_v19 = vpop.permute.xlu1 %1004 }
 0xa37   :  { %v903_v16 = vmul.f32 %v898_v9, %v2614_v7  ;;  %v900_v23 = vmul.f32 %v898_v9, %v2624_v6  ;;  %v1016_v57 = vmul.f32 %v2682_v19, %v2674_v13 }
 0xa39   :  { %v2680_v18 = vadd.f32 %v903_v16, %v902_v11 }
 0xa3a   :  { %v2684_v59 = vpop.permute.xlu0 %1011 }
 0xa3b   :  { %v1014_v7 = vmul.f32 %v2684_v59, %v2634_v22  ;;  %v1017_v14 = vmul.f32 %v2684_v59, %v2671_v56 }
 0xa3d   :  { %v2737_v11 = vadd.f32 %v1017_v14, %v1016_v57 }
 0xaa1   :  { %v885_v21 = vpop.permute.xlu1 %884 }
 0xaa2   :  { %v887_v12 = vmul.f32 %v2281_v42, %v885_v21 }
 0xaa4   :  { %v2687_v17 = vmul.f32 %v891_v55, %v887_v12 }
 0xaa5   :  { %v999_v24 = vpop.permute.xlu0 %998 }
 0xaa6   :  { %v2690_v25 = vadd.f32 %v900_v23, %v2687_v17  ;;  %v1001_v26 = vmul.f32 %v2283_v46, %v999_v24 }
 0xaa8   :  { %v2695_v27 = vmul.f32 %v2682_v19, %v1001_v26  ;;  %v1044_v28 = vpack.c.bf16 %v2690_v25, %v2690_v25 }
 0xaaa   :  { %v2700_v29 = vadd.f32 %v1014_v7, %v2695_v27  ;;  %1046 = vrot.lane.b32.xlu1 %v1044_v28, %s2361_s17 }
 0xaac   :  { %v1158_v6 = vpack.c.bf16 %v2700_v29, %v2700_v29 }
 0xaae   :  { %1160 = vrot.lane.b32.xlu0 %v1158_v6, %s2361_s17 }
 0xb1c   :  { %v1047_v30 = vpop.permute.xlu1 %1046 }
 0xb1d   :  { %2165 = vmatmul.mubr.msk.bf16.vlgmr.msra.gmra.mrb[16].mxu0 %vm108_vm2, %v1047_v30 }
 0xb1e   :  { %2175 = vmatpush3.bf16.msra.mxu0 %v2408_v1  ;;  %2176 = vmatprep.mubr.msk.bf16.mxu0 %vm2355_vm1, %v2354_v0 }
 0xb1f   :  { %2186 = vmatprep.subr.bf16.mxu0 %v2354_v0 }
 0xb20   :  { %v1161_v22 = vpop.permute.xlu0 %1160 }
 0xb21   :  { %2171 = vmatmul.mubr.msk.bf16.vlgmr.msra.gmra.mrb[16].mxu1 %vm108_vm2, %v1161_v22 }
 0xb22   :  { %2181 = vmatpush3.bf16.msra.mxu1 %v2422_v2  ;;  %2182 = vmatprep.mubr.msk.bf16.mxu1 %vm2355_vm1, %v2354_v0 }
 0xb23   :  { %2192 = vmatprep.subr.bf16.mxu1 %v2354_v0 }
 0xbf0   :  { %v1085_v32 = vpop.f32.mrb[16].mxu0 }
 0xbf1   :  { %v1091_v5 = vadd.f32 %v2045_v31, %v1085_v32  ;;  %v2166_v33 = vpop.f32.mrb[17].mxu0 }
 0xbf2   :  { %v1088_v34 = vpop.f32.mrb[18].mxu0 }
 0xbf3   :  { %2288 = vtanh.f32 %v1091_v5  ;;  %v2167_v36 = vpop.f32.mrb[19].mxu0  ;;  %v2048_v43 = vmul.f32 -1.442695, %v1091_v5 }
 0xbf4   :  { %v1199_v8 = vpop.f32.mrb[16].mxu1 }
 0xbf5   :  { %v1205_v37 = vadd.f32 %v2050_v35, %v1199_v8  ;;  %v2172_v38 = vpop.f32.mrb[17].mxu1 }
 0xbf6   :  { %v1202_v39 = vpop.f32.mrb[18].mxu1  ;;  %v2055_v38 = vld [vmem:[%s3108_s2 + $0xa] sm:$0x3] }
 0xbf7   :  { %2290 = vtanh.f32 %v1205_v37  ;;  %v2173_v40 = vpop.f32.mrb[19].mxu1  ;;  %v2053_v45 = vmul.f32 -1.442695, %v1205_v37 }
 0xbf8   :  { %2292 = vpow2.f32 %v2048_v43 }
 0xbf9   :  { %2294 = vpow2.f32 %v2053_v45 }
 0xbfd   :  { %v2289_v41 = vpop.eup %2288 }
 0xbfe   :  { %1101 = vrot.lane.b32.xlu1 %v2289_v41, %s2358_s10 }
 0xc01   :  { %v2291_v42 = vpop.eup %2290 }
 0xc02   :  { %1215 = vrot.lane.b32.xlu0 %v2291_v42, %s2358_s10  ;;  %v2293_v46 = vpop.eup %2292  ;;  %v2060_v42 = vld [vmem:[%s3109_s3 + $0x4] sm:$0x3] }
 0xc03   :  { %v1095_v49 = vadd.f32 1.0, %v2293_v46  ;;  %v2295_v50 = vpop.eup %2294 }
 0xc04   :  { %v1209_v51 = vadd.f32 1.0, %v2295_v50 }
 0xc05   :  { %2296 = vrcp.f32 %v1095_v49 }
 0xc06   :  { %2298 = vrcp.f32 %v1209_v51 }
 0xc0f   :  { %v2297_v52 = vpop.eup %2296 }
 0xc10   :  { %v2299_v47 = vpop.eup %2298  ;;  %v1099_v55 = vmul.f32 %v2297_v52, %v2680_v18 }
 0xc11   :  { %v1213_v21 = vmul.f32 %v2299_v47, %v2737_v11 }
 0xc70   :  { %v1102_v53 = vpop.permute.xlu1 %1101 }
 0xc71   :  { %v1104_v44 = vmul.f32 %v2297_v52, %v1102_v53 }
 0xc73   :  { %1106 = vrot.lane.b32.xlu1 %v1104_v44, %s2356_s28 }
 0xc74   :  { %v1216_v54 = vpop.permute.xlu0 %1215 }
 0xc75   :  { %v1218_v48 = vmul.f32 %v2299_v47, %v1216_v54 }
 0xc77   :  { %1118 = vperm.xlu1 %2221, %v2046_v58   ;;  %1220 = vrot.lane.b32.xlu0 %v1218_v48, %s2356_s28 }
 0xc7b   :  { %1232 = vperm.xlu1 %2221, %v2051_v63   ;;  %1125 = vperm.xlu0 %2220, %v1122_v61  }
 0xc7f   :  { %1239 = vperm.xlu0 %2220, %v1236_v4  }
 0xce5   :  { %v1107_v9 = vpop.permute.xlu1 %1106 }
 0xce6   :  { %v1109_v16 = vadd.f32 %v1107_v9, %v1099_v55  ;;  %v2056_v55 = vld [vmem:[%s3110_s0 + $0xa] sm:$0x3] }
 0xce8   :  { %2300 = vtanh.f32 %v1109_v16 }
 0xce9   :  { %v1221_v12 = vpop.permute.xlu0 %1220 }
 0xcea   :  { %v2740_v23 = vadd.f32 %v1221_v12, %v1213_v21  ;;  %v2061_v21 = vld [vmem:[%s3111_s1 + $0x4] sm:$0x3] }
 0xceb   :  { %v1464_v12 = vsub.f32 1.0, %v2061_v21 }
 0xcec   :  { %2302 = vtanh.f32 %v2740_v23 }
 0xcf2   :  { %v2301_v24 = vpop.eup %2300 }
 0xcf3   :  { %1112 = vrot.lane.b32.xlu1 %v2301_v24, %s2359_s15 }
 0xcf6   :  { %v2303_v56 = vpop.eup %2302  ;;  %v1119_v13 = vpop.permute.xlu1 %1118 }
 0xcf7   :  { %1226 = vrot.lane.b32.xlu0 %v2303_v56, %s2359_s15  ;;  %v1130_v59 = vmul.f32 %v1119_v13, %v1109_v16  ;;  %v1350_v16 = vsub.f32 1.0, %v2056_v55 }
 0xcfa   :  { %v1126_v19 = vpop.permute.xlu0 %1125  ;;  %v2748_v28 = vpop.permute.xlu1 %1232 }
 0xcfb   :  { %v1131_v26 = vmul.f32 %v1126_v19, %v2680_v18  ;;  %v1128_v31 = vmul.f32 %v1126_v19, %v2690_v25  ;;  %v1244_v56 = vmul.f32 %v2748_v28, %v2740_v23 }
 0xcfd   :  { %v2746_v7 = vadd.f32 %v1131_v26, %v1130_v59 }
 0xcfe   :  { %v2750_v6 = vpop.permute.xlu0 %1239 }
 0xcff   :  { %v1242_v18 = vmul.f32 %v2750_v6, %v2700_v29  ;;  %v1245_v24 = vmul.f32 %v2750_v6, %v2737_v11 }
 0xd01   :  { %v2803_v59 = vadd.f32 %v1245_v24, %v1244_v56 }
 0xd65   :  { %v1113_v30 = vpop.permute.xlu1 %1112 }
 0xd66   :  { %v1115_v22 = vmul.f32 %v2297_v52, %v1113_v30 }
 0xd68   :  { %v2753_v32 = vmul.f32 %v1119_v13, %v1115_v22 }
 0xd69   :  { %v1227_v5 = vpop.permute.xlu0 %1226 }
 0xd6a   :  { %v2756_v33 = vadd.f32 %v1128_v31, %v2753_v32  ;;  %v1229_v34 = vmul.f32 %v2299_v47, %v1227_v5 }
 0xd6c   :  { %v2761_v35 = vmul.f32 %v2748_v28, %v1229_v34  ;;  %v1272_v36 = vpack.c.bf16 %v2756_v33, %v2756_v33 }
 0xd6e   :  { %v2766_v8 = vadd.f32 %v1242_v18, %v2761_v35  ;;  %1274 = vrot.lane.b32.xlu1 %v1272_v36, %s2361_s17 }
 0xd70   :  { %v1386_v25 = vpack.c.bf16 %v2766_v8, %v2766_v8 }
 0xd72   :  { %1388 = vrot.lane.b32.xlu0 %v1386_v25, %s2361_s17 }
 0xde0   :  { %v1275_v37 = vpop.permute.xlu1 %1274 }
 0xde1   :  { %2177 = vmatmul.mubr.msk.bf16.vlgmr.msra.gmra.mrb[20].mxu0 %vm108_vm2, %v1275_v37 }
 0xde2   :  { %2187 = vmatpush3.bf16.msra.mxu0 %v2408_v1  ;;  %2188 = vmatprep.mubr.msk.bf16.mxu0 %vm2355_vm1, %v2354_v0 }
 0xde3   :  { %2198 = vmatprep.subr.bf16.mxu0 %v2354_v0 }
 0xde4   :  { %v1389_v29 = vpop.permute.xlu0 %1388 }
 0xde5   :  { %2183 = vmatmul.mubr.msk.bf16.vlgmr.msra.gmra.mrb[20].mxu1 %vm108_vm2, %v1389_v29 }
 0xde6   :  { %2193 = vmatpush3.bf16.msra.mxu1 %v2422_v2  ;;  %2194 = vmatprep.mubr.msk.bf16.mxu1 %vm2355_vm1, %v2354_v0 }
 0xde7   :  { %2204 = vmatprep.subr.bf16.mxu1 %v2354_v0 }
 0xeb4   :  { %v1313_v1 = vpop.f32.mrb[20].mxu0 }
 0xeb5   :  { %v1319_v39 = vadd.f32 %v2055_v38, %v1313_v1  ;;  %v2178_v40 = vpop.f32.mrb[21].mxu0 }
 0xeb6   :  { %v1316_v41 = vpop.f32.mrb[22].mxu0 }
 0xeb7   :  { %2304 = vtanh.f32 %v1319_v39  ;;  %v2179_v43 = vpop.f32.mrb[23].mxu0  ;;  %v2058_v53 = vmul.f32 -1.442695, %v1319_v39 }
 0xeb8   :  { %v1427_v2 = vpop.f32.mrb[20].mxu1 }
 0xeb9   :  { %v1433_v45 = vadd.f32 %v2060_v42, %v1427_v2  ;;  %v2184_v46 = vpop.f32.mrb[21].mxu1 }
 0xeba   :  { %v1430_v49 = vpop.f32.mrb[22].mxu1 }
 0xebb   :  { %2306 = vtanh.f32 %v1433_v45  ;;  %v2185_v50 = vpop.f32.mrb[23].mxu1  ;;  %v2063_v44 = vmul.f32 -1.442695, %v1433_v45  ;;  %v2353_v49 = vld [vmem:[%s3107_s5] sm:$0xff]  }
 0xebc   :  { %2308 = vpow2.f32 %v2058_v53  ;;  %v2065_v50 = vld [vmem:[%s3108_s2 + $0xc] sm:$0x3] }
 0xebd   :  { %2310 = vpow2.f32 %v2063_v44 }
 0xec1   :  { %v2305_v51 = vpop.eup %2304 }
 0xec2   :  { %1329 = vrot.lane.b32.xlu1 %v2305_v51, %s2358_s10 }
 0xec5   :  { %v2307_v52 = vpop.eup %2306 }
 0xec6   :  { %1443 = vrot.lane.b32.xlu0 %v2307_v52, %s2358_s10  ;;  %v2309_v47 = vpop.eup %2308 }
 0xec7   :  { %v1323_v54 = vadd.f32 1.0, %v2309_v47  ;;  %v2311_v58 = vpop.eup %2310  ;;  %v2070_v47 = vld [vmem:[%s3109_s3 + $0x2] sm:$0x3] }
 0xec8   :  { %v1437_v48 = vadd.f32 1.0, %v2311_v58 }
 0xec9   :  { %2312 = vrcp.f32 %v1323_v54 }
 0xeca   :  { %2314 = vrcp.f32 %v1437_v48 }
 0xed3   :  { %v2313_v61 = vpop.eup %2312 }
 0xed4   :  { %v2315_v14 = vpop.eup %2314  ;;  %v1327_v13 = vmul.f32 %v2313_v61, %v2746_v7 }
 0xed5   :  { %v1441_v30 = vmul.f32 %v2315_v14, %v2803_v59 }
 0xf34   :  { %v1330_v63 = vpop.permute.xlu1 %1329 }
 0xf35   :  { %v1332_v4 = vmul.f32 %v2313_v61, %v1330_v63 }
 0xf37   :  { %1334 = vrot.lane.b32.xlu1 %v1332_v4, %s2356_s28 }
 0xf38   :  { %v1444_v57 = vpop.permute.xlu0 %1443 }
 0xf39   :  { %v1446_v9 = vmul.f32 %v2315_v14, %v1444_v57 }
 0xf3b   :  { %1346 = vperm.xlu1 %2221, %v2056_v55   ;;  %1448 = vrot.lane.b32.xlu0 %v1446_v9, %s2356_s28 }
 0xf3f   :  { %1460 = vperm.xlu1 %2221, %v2061_v21   ;;  %1353 = vperm.xlu0 %2220, %v1350_v16  }
 0xf43   :  { %1467 = vperm.xlu0 %2220, %v1464_v12  }
 0xfa9   :  { %v1335_v19 = vpop.permute.xlu1 %1334 }
 0xfaa   :  { %v1337_v26 = vadd.f32 %v1335_v19, %v1327_v13 }
 0xfac   :  { %2316 = vtanh.f32 %v1337_v26 }
 0xfad   :  { %v1449_v22 = vpop.permute.xlu0 %1448 }
 0xfae   :  { %v2806_v31 = vadd.f32 %v1449_v22, %v1441_v30  ;;  %v2066_v30 = vld [vmem:[%s3110_s0 + $0xc] sm:$0x3] }
 0xfb0   :  { %2318 = vtanh.f32 %v2806_v31 }
 0xfb6   :  { %v2317_v5 = vpop.eup %2316 }
 0xfb7   :  { %1340 = vrot.lane.b32.xlu1 %v2317_v5, %s2359_s15  ;;  %v1578_v5 = vsub.f32 1.0, %v2066_v30 }
 0xfba   :  { %v2319_v11 = vpop.eup %2318  ;;  %v1347_v23 = vpop.permute.xlu1 %1346 }
 0xfbb   :  { %1454 = vrot.lane.b32.xlu0 %v2319_v11, %s2359_s15  ;;  %v1358_v6 = vmul.f32 %v1347_v23, %v1337_v26  ;;  %v2071_v11 = vld [vmem:[%s3111_s1 + $0x2] sm:$0x3] }
 0xfbe   :  { %v1354_v28 = vpop.permute.xlu0 %1353  ;;  %v2814_v36 = vpop.permute.xlu1 %1460 }
 0xfbf   :  { %v1359_v34 = vmul.f32 %v1354_v28, %v2746_v7  ;;  %v1356_v38 = vmul.f32 %v1354_v28, %v2756_v33 }
 0xfc1   :  { %v2812_v18 = vadd.f32 %v1359_v34, %v1358_v6  ;;  %v1472_v6 = vmul.f32 %v2814_v36, %v2806_v31 }
 0xfc2   :  { %v2816_v25 = vpop.permute.xlu0 %1467 }
 0xfc3   :  { %v1470_v7 = vmul.f32 %v2816_v25, %v2766_v8  ;;  %v2352_v8 = vld [vmem:[%s3106_s4] sm:$0xff]   ;;  %v1473_v28 = vmul.f32 %v2816_v25, %v2803_v59 }
0x1029   :  { %v1341_v37 = vpop.permute.xlu1 %1340 }
0x102a   :  { %v1343_v29 = vmul.f32 %v2313_v61, %v1341_v37 }
0x102c   :  { %v2819_v1 = vmul.f32 %v1347_v23, %v1343_v29  ;;  %v1692_v23 = vsub.f32 1.0, %v2071_v11  ;;  %v2871_v29 = vadd.f32 %v1473_v28, %v1472_v6 }
0x102d   :  { %v1455_v39 = vpop.permute.xlu0 %1454 }
0x102e   :  { %v2822_v40 = vadd.f32 %v1356_v38, %v2819_v1  ;;  %v1457_v41 = vmul.f32 %v2315_v14, %v1455_v39 }
0x1030   :  { %v2827_v42 = vmul.f32 %v2814_v36, %v1457_v41  ;;  %v1500_v43 = vpack.c.bf16 %v2822_v40, %v2822_v40 }
0x1032   :  { %v2832_v2 = vadd.f32 %v1470_v7, %v2827_v42  ;;  %1502 = vrot.lane.b32.xlu1 %v1500_v43, %s2361_s17 }
0x1034   :  { %v1614_v33 = vpack.c.bf16 %v2832_v2, %v2832_v2 }
0x1036   :  { %1616 = vrot.lane.b32.xlu0 %v1614_v33, %s2361_s17 }
0x10a4   :  { %v1503_v45 = vpop.permute.xlu1 %1502 }
0x10a5   :  { %2189 = vmatmul.mubr.msk.bf16.vlgmr.msra.gmra.mrb[24].mxu0 %vm108_vm2, %v1503_v45 }
0x10a6   :  { %2199 = vmatpush3.bf16.msra.mxu0 %v2352_v8  ;;  %2200 = vmatprep.mubr.msk.bf16.mxu0 %vm2355_vm1, %v2354_v0 }
0x10a8   :  { %v1617_v46 = vpop.permute.xlu0 %1616 }
0x10a9   :  { %2195 = vmatmul.mubr.msk.bf16.vlgmr.msra.gmra.mrb[24].mxu1 %vm108_vm2, %v1617_v46 }
0x10aa   :  { %2205 = vmatpush3.bf16.msra.mxu1 %v2353_v49  ;;  %2206 = vmatprep.mubr.msk.bf16.mxu1 %vm2355_vm1, %v2354_v0 }
0x1178   :  { %v1541_v51 = vpop.f32.mrb[24].mxu0 }
0x1179   :  { %v1547_v52 = vadd.f32 %v2065_v50, %v1541_v51  ;;  %v2190_v53 = vpop.f32.mrb[25].mxu0 }
0x117a   :  { %v1544_v44 = vpop.f32.mrb[26].mxu0 }
0x117b   :  { %2320 = vtanh.f32 %v1547_v52  ;;  %v2191_v54 = vpop.f32.mrb[27].mxu0  ;;  %v2068_v57 = vmul.f32 -1.442695, %v1547_v52 }
0x117c   :  { %v1655_v58 = vpop.f32.mrb[24].mxu1 }
0x117d   :  { %v1661_v48 = vadd.f32 %v2070_v47, %v1655_v58  ;;  %v2196_v61 = vpop.f32.mrb[25].mxu1 }
0x117e   :  { %v1658_v63 = vpop.f32.mrb[26].mxu1 }
0x117f   :  { %2322 = vtanh.f32 %v1661_v48  ;;  %v2197_v0 = vpop.f32.mrb[27].mxu1  ;;  %v2073_v55 = vmul.f32 -1.442695, %v1661_v48  ;;  %v2075_v63 = vld [vmem:[%s3108_s2 + $0xe] sm:$0x3] }
0x1180   :  { %2324 = vpow2.f32 %v2068_v57 }
0x1181   :  { %2326 = vpow2.f32 %v2073_v55  ;;  %v1838_v55 = vld [vmem:[%s3109_s3] sm:$0x3] }
0x1185   :  { %v2321_v4 = vpop.eup %2320 }
0x1186   :  { %1557 = vrot.lane.b32.xlu1 %v2321_v4, %s2358_s10 }
0x1189   :  { %v2323_v14 = vpop.eup %2322 }
0x118a   :  { %1671 = vrot.lane.b32.xlu0 %v2323_v14, %s2358_s10  ;;  %v2325_v9 = vpop.eup %2324 }
0x118b   :  { %v1551_v16 = vadd.f32 1.0, %v2325_v9  ;;  %v2327_v21 = vpop.eup %2326 }
0x118c   :  { %v1665_v12 = vadd.f32 1.0, %v2327_v21 }
0x118d   :  { %2328 = vrcp.f32 %v1551_v16 }
0x118e   :  { %2330 = vrcp.f32 %v1665_v12 }
0x1197   :  { %v2329_v24 = vpop.eup %2328 }
0x1198   :  { %v2331_v19 = vpop.eup %2330  ;;  %v1555_v34 = vmul.f32 %v2329_v24, %v2812_v18 }
0x1199   :  { %v1669_v39 = vmul.f32 %v2331_v19, %v2871_v29 }
0x11f8   :  { %v1558_v56 = vpop.permute.xlu1 %1557 }
0x11f9   :  { %v1560_v13 = vmul.f32 %v2329_v24, %v1558_v56 }
0x11fb   :  { %1562 = vrot.lane.b32.xlu1 %v1560_v13, %s2356_s28 }
0x11fc   :  { %v1672_v26 = vpop.permute.xlu0 %1671 }
0x11fd   :  { %v1674_v22 = vmul.f32 %v2331_v19, %v1672_v26 }
0x11ff   :  { %1574 = vperm.xlu1 %2221, %v2066_v30   ;;  %1676 = vrot.lane.b32.xlu0 %v1674_v22, %s2356_s28 }
0x1203   :  { %1688 = vperm.xlu1 %2221, %v2071_v11   ;;  %1581 = vperm.xlu0 %2220, %v1578_v5  }
0x1207   :  { %1695 = vperm.xlu0 %2220, %v1692_v23  }
0x126d   :  { %v1563_v37 = vpop.permute.xlu1 %1562 }
0x126e   :  { %v1565_v38 = vadd.f32 %v1563_v37, %v1555_v34 }
0x1270   :  { %2332 = vtanh.f32 %v1565_v38 }
0x1271   :  { %v1677_v41 = vpop.permute.xlu0 %1676 }
0x1272   :  { %v2874_v7 = vadd.f32 %v1677_v41, %v1669_v39  ;;  %v2076_v39 = vld [vmem:[%s3110_s0 + $0xe] sm:$0x3]  ;;  %s2363_s0 = smov 112  }
0x1274   :  { %2334 = vtanh.f32 %v2874_v7 }
0x127a   :  { %v2333_v43 = vpop.eup %2332 }
0x127b   :  { %1568 = vrot.lane.b32.xlu1 %v2333_v43, %s2359_s15  ;;  %v1806_v43 = vsub.f32 1.0, %v2076_v39 }
0x127e   :  { %v2335_v59 = vpop.eup %2334  ;;  %v1575_v31 = vpop.permute.xlu1 %1574 }
0x127f   :  { %1682 = vrot.lane.b32.xlu0 %v2335_v59, %s2359_s15  ;;  %v1586_v25 = vmul.f32 %v1575_v31, %v1565_v38  ;;  %v1839_v59 = vld [vmem:[%s3111_s1] sm:$0x3] }
0x1282   :  { %v1582_v36 = vpop.permute.xlu0 %1581  ;;  %v2882_v8 = vpop.permute.xlu1 %1688 }
0x1283   :  { %v1587_v33 = vmul.f32 %v1582_v36, %v2812_v18  ;;  %v1584_v51 = vmul.f32 %v1582_v36, %v2822_v40 }
0x1285   :  { %v2880_v45 = vadd.f32 %v1587_v33, %v1586_v25  ;;  %v1700_v25 = vmul.f32 %v2882_v8, %v2874_v7 }
0x1286   :  { %v2884_v46 = vpop.permute.xlu0 %1695 }
0x1287   :  { %v1698_v18 = vmul.f32 %v2884_v46, %v2832_v2  ;;  %v1701_v36 = vmul.f32 %v2884_v46, %v2871_v29 }
0x12ed   :  { %v1569_v49 = vpop.permute.xlu1 %1568 }
0x12ee   :  { %v1571_v50 = vmul.f32 %v2329_v24, %v1569_v49  ;;  %v2362_v49 = vmov 1966171168  }
0x12f0   :  { %v2887_v52 = vmul.f32 %v1575_v31, %v1571_v50  ;;  %v1918_v31 = vsub.f32 1.0, %v1839_v59  ;;  %v209_v50 = vunpack.c.l.s4 %v2362_v49 }
0x12f1   :  { %v1683_v53 = vpop.permute.xlu0 %1682 }
0x12f2   :  { %v2890_v44 = vadd.f32 %v1584_v51, %v2887_v52  ;;  %v1685_v47 = vmul.f32 %v2331_v19, %v1683_v53  ;;  %v211_v51 = vlaneseq  ;;  %v210_v29 = vunpack.c.0.s8 %v209_v50 }
0x12f4   :  { %v2895_v54 = vmul.f32 %v2882_v8, %v1685_v47  ;;  %v1728_v58 = vpack.c.bf16 %v2890_v44, %v2890_v44  ;;  %v2936_v47 = vadd.f32 %v1701_v36, %v1700_v25  ;;  %v212_v46 = vshrl.u32 %v211_v51, 7 }
0x12f5   :  { %v206_v8 = vpack.c.bf16 %v2489_v60, %v2489_v60 }
0x12f6   :  { %v2900_v48 = vadd.f32 %v1698_v18, %v2895_v54  ;;  %1730 = vrot.lane.b32.xlu1 %v1728_v58, %s2361_s17 }
0x12f8   :  { %v1840_v40 = vpack.c.bf16 %v2900_v48, %v2900_v48 }
0x12fa   :  { %1842 = vrot.lane.b32.xlu0 %v1840_v40, %s2361_s17 }
0x1368   :  { %v1731_v61 = vpop.permute.xlu1 %1730 }
0x1369   :  { %2201 = vmatmul.mubr.msk.bf16.vlgmr.msra.gmra.mrb[28].mxu0 %vm108_vm2, %v1731_v61  ;;  %v2948_v61 = vsub.s32 %v210_v29, %v212_v46 }
0x136c   :  { %v1843_v2 = vpop.permute.xlu0 %1842 }
0x136d   :  { %2207 = vmatmul.mubr.msk.bf16.vlgmr.msra.gmra.mrb[28].mxu1 %vm108_vm2, %v1843_v2  ;;  %v335_v2 = vpack.c.bf16 %v2497_v3, %v2497_v3 }
0x143c   :  { %v1769_v0 = vpop.f32.mrb[28].mxu0 }
0x143d   :  { %v1775_v4 = vadd.f32 %v2075_v63, %v1769_v0  ;;  %v2202_v14 = vpop.f32.mrb[29].mxu0  ;;  %v214_v63 = vrot.slane %v206_v8, %v2948_v61  ;;  %v449_v0 = vpack.c.bf16 %v2555_v10, %v2555_v10 }
0x143e   :  { %v1772_v57 = vpop.f32.mrb[30].mxu0  ;;  %v343_v14 = vrot.slane %v335_v2, %v2948_v61 }
0x143f   :  { %2336 = vtanh.f32 %v1775_v4  ;;  %v2203_v9 = vpop.f32.mrb[31].mxu0  ;;  %v2078_v26 = vmul.f32 -1.442695, %v1775_v4  ;;  %v563_v57 = vpack.c.bf16 %v2563_v15, %v2563_v15  ;;  %v457_v60 = vrot.slane %v449_v0, %v2948_v61 }
0x1440   :  { %v1881_v16 = vpop.f32.mrb[28].mxu1  ;;  %v221_v3 = vrot.slane %v214_v63, %v2948_v61  ;;  %v791_v15 = vpack.c.bf16 %v2629_v20, %v2629_v20  ;;  %v1133_v20 = vpack.c.bf16 %v2753_v32, %v2753_v32 }
0x1441   :  { %v1887_v21 = vadd.f32 %v1881_v16, %v1838_v55  ;;  %v2208_v12 = vpop.f32.mrb[29].mxu1  ;;  %v677_v55 = vpack.c.bf16 %v2621_v62, %v2621_v62  ;;  %v571_v10 = vrot.slane %v563_v57, %v2948_v61  ;;  %v350_v16 = vrot.slane %v343_v14, %v2948_v61 }
0x1442   :  { %v1884_v24 = vpop.f32.mrb[30].mxu1  ;;  %v905_v12 = vpack.c.bf16 %v2687_v17, %v2687_v17  ;;  %v464_v62 = vrot.slane %v457_v60, %v2948_v61 }
0x1443   :  { %2338 = vtanh.f32 %v1887_v21  ;;  %v2209_v56 = vpop.f32.mrb[31].mxu1  ;;  %v2081_v30 = vmul.f32 -1.442695, %v1887_v21  ;;  %v685_v21 = vrot.slane %v677_v55, %v2948_v61  ;;  %v1019_v24 = vpack.c.bf16 %v2695_v27, %v2695_v27 }
0x1444   :  { %2340 = vpow2.f32 %v2078_v26  ;;  %v578_v56 = vrot.slane %v571_v10, %v2948_v61  ;;  %v1247_v27 = vpack.c.bf16 %v2761_v35, %v2761_v35  ;;  %v1475_v35 = vpack.c.bf16 %v2827_v42, %v2827_v42 }
0x1445   :  { %2342 = vpow2.f32 %v2081_v30  ;;  %v692_v17 = vrot.slane %v685_v21, %v2948_v61  ;;  %v1027_v26 = vrot.slane %v1019_v24, %v2948_v61  ;;  %v1141_v30 = vrot.slane %v1133_v20, %v2948_v61 }
0x1449   :  { %v2337_v13 = vpop.eup %2336 }
0x144a   :  { %1785 = vrot.lane.b32.xlu1 %v2337_v13, %s2358_s10  ;;  %v799_v13 = vrot.slane %v791_v15, %v2948_v61 }
0x144c   :  { %v806_v32 = vrot.slane %v799_v13, %v2948_v61 }
0x144d   :  { %v2339_v19 = vpop.eup %2338 }
0x144e   :  { %1897 = vrot.lane.b32.xlu0 %v2339_v19, %s2358_s10  ;;  %v2341_v22 = vpop.eup %2340  ;;  %v913_v19 = vrot.slane %v905_v12, %v2948_v61 }
0x144f   :  { %v1779_v5 = vadd.f32 1.0, %v2341_v22  ;;  %v2343_v11 = vpop.eup %2342  ;;  %v1361_v22 = vpack.c.bf16 %v2819_v1, %v2819_v1  ;;  %v1589_v1 = vpack.c.bf16 %v2887_v52, %v2887_v52 }
0x1450   :  { %v1891_v23 = vadd.f32 1.0, %v2343_v11  ;;  %v1255_v11 = vrot.slane %v1247_v27, %v2948_v61 }
0x1451   :  { %2344 = vrcp.f32 %v1779_v5  ;;  %v920_v5 = vrot.slane %v913_v19, %v2948_v61 }
0x1452   :  { %2346 = vrcp.f32 %v1891_v23  ;;  %v1034_v23 = vrot.slane %v1027_v26, %v2948_v61 }
0x145b   :  { %v2916_v28 = vpop.eup %2344 }
0x145c   :  { %v2920_v37 = vpop.eup %2346  ;;  %v1783_v33 = vmul.f32 %v2916_v28, %v2880_v45 }
0x145d   :  { %v1895_v58 = vmul.f32 %v2920_v37, %v2936_v47 }
0x14bc   :  { %v1786_v6 = vpop.permute.xlu1 %1785 }
0x14bd   :  { %v1788_v34 = vmul.f32 %v2916_v28, %v1786_v6  ;;  %v1369_v6 = vrot.slane %v1361_v22, %v2948_v61 }
0x14bf   :  { %1790 = vrot.lane.b32.xlu1 %v1788_v34, %s2356_s28  ;;  %v1148_v34 = vrot.slane %v1141_v30, %v2948_v61  ;;  %v1376_v42 = vrot.slane %v1369_v6, %v2948_v61 }
0x14c0   :  { %v1898_v38 = vpop.permute.xlu0 %1897 }
0x14c1   :  { %v1900_v41 = vmul.f32 %v2920_v37, %v1898_v38 }
0x14c3   :  { %1802 = vperm.xlu1 %2221, %v2076_v39   ;;  %1902 = vrot.lane.b32.xlu0 %v1900_v41, %s2356_s28  ;;  %v1262_v39 = vrot.slane %v1255_v11, %v2948_v61  ;;  %v1483_v41 = vrot.slane %v1475_v35, %v2948_v61 }
0x14c5   :  { %v1490_v36 = vrot.slane %v1483_v41, %v2948_v61 }
0x14c7   :  { %1809 = vperm.xlu1 %2221, %v1806_v43   ;;  %1914 = vperm.xlu0 %2220, %v1839_v59   ;;  %v1597_v43 = vrot.slane %v1589_v1, %v2948_v61  ;;  %v1703_v59 = vpack.c.bf16 %v2895_v54, %v2895_v54 }
0x14c9   :  { %v1711_v52 = vrot.slane %v1703_v59, %v2948_v61 }
0x14cb   :  { %1921 = vperm.xlu0 %2220, %v1918_v31   ;;  %v1604_v31 = vrot.slane %v1597_v43, %v2948_v61  ;;  %v1718_v54 = vrot.slane %v1711_v52, %v2948_v61 }
0x1531   :  { %v1791_v53 = vpop.permute.xlu1 %1790 }
0x1532   :  { %v2938_v18 = vadd.f32 %v1791_v53, %v1783_v33 }
0x1534   :  { %2348 = vtanh.f32 %v2938_v18 }
0x1535   :  { %v1903_v40 = vpop.permute.xlu0 %1902 }
0x1536   :  { %v2943_v7 = vadd.f32 %v1903_v40, %v1895_v58 }
0x1538   :  { %2350 = vtanh.f32 %v2943_v7 }
0x153e   :  { %v2349_v4 = vpop.eup %2348 }
0x153f   :  { %1796 = vrot.lane.b32.xlu1 %v2349_v4, %s2359_s15 }
0x1542   :  { %v2351_v9 = vpop.eup %2350  ;;  %v1803_v38 = vpop.permute.xlu1 %1802 }
0x1543   :  { %222 = vrot.lane.b32.xlu1 %v221_v3, %s2361_s17  ;;  %1908 = vrot.lane.b32.xlu0 %v2351_v9, %s2359_s15  ;;  %v1814_v49 = vmul.f32 %v1803_v38, %v2938_v18 }
0x1546   :  { %v1810_v25 = vpop.permute.xlu1 %1809  ;;  %v1915_v51 = vpop.permute.xlu0 %1914 }
0x1547   :  { %465 = vrot.lane.b32.xlu1 %v464_v62, %s2361_s17  ;;  %351 = vrot.lane.b32.xlu0 %v350_v16, %s2361_s17  ;;  %v1815_v33 = vmul.f32 %v1810_v25, %v2880_v45  ;;  %v1812_v46 = vmul.f32 %v1810_v25, %v2890_v44  ;;  %v1926_v16 = vmul.f32 %v1915_v51, %v2943_v7 }
0x1549   :  { %v1816_v50 = vadd.f32 %v1815_v33, %v1814_v49 }
0x154a   :  { %v1922_v53 = vpop.permute.xlu0 %1921 }
0x154b   :  { %693 = vrot.lane.b32.xlu1 %v692_v17, %s2361_s17  ;;  %579 = vrot.lane.b32.xlu0 %v578_v56, %s2361_s17  ;;  %v1924_v57 = vmul.f32 %v1922_v53, %v2900_v48  ;;  %v1927_v9 = vmul.f32 %v1922_v53, %v2936_v47 }
0x154d   :  { %v1928_v15 = vadd.f32 %v1927_v9, %v1926_v16 }
0x154f   :  { %921 = vrot.lane.b32.xlu1 %v920_v5, %s2361_s17  ;;  %807 = vrot.lane.b32.xlu0 %v806_v32, %s2361_s17 }
0x1553   :  { %1149 = vrot.lane.b32.xlu1 %v1148_v34, %s2361_s17  ;;  %1035 = vrot.lane.b32.xlu0 %v1034_v23, %s2361_s17 }
0x1557   :  { %1377 = vrot.lane.b32.xlu1 %v1376_v42, %s2361_s17  ;;  %1263 = vrot.lane.b32.xlu0 %v1262_v39, %s2361_s17 }
0x155b   :  { %1605 = vrot.lane.b32.xlu1 %v1604_v31, %s2361_s17  ;;  %1491 = vrot.lane.b32.xlu0 %v1490_v36, %s2361_s17 }
0x155f   :  { %1719 = vrot.lane.b32.xlu0 %v1718_v54, %s2361_s17 }
0x1563   :  { %1956 = vrot.lane.b32.xlu0 %v1816_v50, %s2363_s0 }
0x15b1   :  { %v1797_v58 = vpop.permute.xlu1 %1796 }
0x15b2   :  { %v1799_v29 = vmul.f32 %v2916_v28, %v1797_v58 }
0x15b4   :  { %v1805_v40 = vmul.f32 %v1803_v38, %v1799_v29 }
0x15b5   :  { %v223_v45 = vpop.permute.xlu1 %222  ;;  %v1909_v8 = vpop.permute.xlu0 %1908 }
0x15b6   :  { %v1813_v2 = vadd.f32 %v1812_v46, %v1805_v40  ;;  %v1817_v63 = vpack.c.bf16 %v1805_v40, %v1805_v40  ;;  %226 = vst.msk [vmem:[%s3112_s6] sm:$0x1] %vm225_vm3, %v223_v45  ;;  %v1911_v18 = vmul.f32 %v2920_v37, %v1909_v8 }
0x15b8   :  { %v1825_v0 = vrot.slane %v1817_v63, %v2948_v61  ;;  %v1917_v4 = vmul.f32 %v1915_v51, %v1911_v18  ;;  %1950 = vrot.lane.b32.xlu1 %v1813_v2, %s2361_s17 }
0x15b9   :  { %v466_v28 = vpop.permute.xlu1 %465  ;;  %v352_v14 = vpop.permute.xlu0 %351 }
0x15ba   :  { %v1929_v44 = vpack.c.bf16 %v1917_v4, %v1917_v4  ;;  %2019 = vst.msk [vmem:[%s3112_s6 + $0x1] sm:$0x1] %vm225_vm3, %v466_v28  ;;  %2014 = vst.msk [vmem:[%s3113_s7 + $0x7] sm:$0x1] %vm225_vm3, %v352_v14  ;;  %v1832_v37 = vrot.slane %v1825_v0, %v2948_v61  ;;  %v1925_v10 = vadd.f32 %v1924_v57, %v1917_v4 }
0x15bc   :  { %v1937_v60 = vrot.slane %v1929_v44, %v2948_v61  ;;  %1833 = vrot.lane.b32.xlu1 %v1832_v37, %s2361_s17 }
0x15bd   :  { %v694_v55 = vpop.permute.xlu1 %693  ;;  %v580_v3 = vpop.permute.xlu0 %579 }
0x15be   :  { %2029 = vst.msk [vmem:[%s3112_s6 + $0x2] sm:$0x1] %vm225_vm3, %v694_v55  ;;  %2024 = vst.msk [vmem:[%s3113_s7 + $0x6] sm:$0x1] %vm225_vm3, %v580_v3  ;;  %v1944_v48 = vrot.slane %v1937_v60, %v2948_v61 }
0x15c0   :  { %1945 = vrot.lane.b32.xlu0 %v1944_v48, %s2361_s17  ;;  %1961 = vrot.lane.b32.xlu1 %v1925_v10, %s2361_s17 }
0x15c1   :  { %v922_v47 = vpop.permute.xlu1 %921  ;;  %v808_v21 = vpop.permute.xlu0 %807 }
0x15c2   :  { %2039 = vst.msk [vmem:[%s3112_s6 + $0x3] sm:$0x1] %vm225_vm3, %v922_v47  ;;  %2034 = vst.msk [vmem:[%s3113_s7 + $0x5] sm:$0x1] %vm225_vm3, %v808_v21 }
0x15c4   :  { %1966 = vrot.lane.b32.xlu0 %v1928_v15, %s2363_s0 }
0x15c5   :  { %v1150_v7 = vpop.permute.xlu1 %1149  ;;  %v1036_v61 = vpop.permute.xlu0 %1035 }
0x15c6   :  { %2049 = vst.msk [vmem:[%s3112_s6 + $0x4] sm:$0x1] %vm225_vm3, %v1150_v7  ;;  %2044 = vst.msk [vmem:[%s3113_s7 + $0x4] sm:$0x1] %vm225_vm3, %v1036_v61 }
0x15c9   :  { %v1378_v12 = vpop.permute.xlu1 %1377  ;;  %v1264_v62 = vpop.permute.xlu0 %1263 }
0x15ca   :  { %2059 = vst.msk [vmem:[%s3112_s6 + $0x5] sm:$0x1] %vm225_vm3, %v1378_v12  ;;  %2054 = vst.msk [vmem:[%s3113_s7 + $0x3] sm:$0x1] %vm225_vm3, %v1264_v62 }
0x15cd   :  { %v1606_v24 = vpop.permute.xlu1 %1605  ;;  %v1492_v56 = vpop.permute.xlu0 %1491 }
0x15ce   :  { %2069 = vst.msk [vmem:[%s3112_s6 + $0x6] sm:$0x1] %vm225_vm3, %v1606_v24  ;;  %2064 = vst.msk [vmem:[%s3113_s7 + $0x2] sm:$0x1] %vm225_vm3, %v1492_v56 }
0x15d1   :  { %v1720_v13 = vpop.permute.xlu0 %1719 }
0x15d2   :  { %2074 = vst.msk [vmem:[%s3113_s7 + $0x1] sm:$0x1] %vm225_vm3, %v1720_v13 }
0x15d5   :  { %v1957_v19 = vpop.permute.xlu0 %1956 }
0x15d6   :  { %1959 = vst.msk [vmem:[#allocation3] sm:$0x3] %vm86_vm0, %v1957_v19 }
0x162a   :  { %v1951_v20 = vpop.permute.xlu1 %1950 }
0x162b   :  { %1954 = vst.msk [vmem:[#allocation2] sm:$0x3] %vm86_vm0, %v1951_v20 }
0x162e   :  { %v1834_v17 = vpop.permute.xlu1 %1833 }
0x162f   :  { %2079 = vst.msk [vmem:[%s3112_s6 + $0x7] sm:$0x1] %vm225_vm3, %v1834_v17 }
0x1632   :  { %v1962_v26 = vpop.permute.xlu1 %1961  ;;  %v1946_v27 = vpop.permute.xlu0 %1945 }
0x1633   :  { %1964 = vst.msk [vmem:[#allocation4] sm:$0x3] %vm86_vm0, %v1962_v26 }
0x1634   :  { %1948 = vst.msk [vmem:[%s3113_s7] sm:$0x1] %vm225_vm3, %v1946_v27 }
0x1636   :  { %v1967_v30 = vpop.permute.xlu0 %1966 }
0x1637   :  { %1969 = vst.msk [vmem:[#allocation5] sm:$0x3] %vm86_vm0, %v1967_v30 }

</bundles_post_ra>
